<compile_context>
chip_gen: v7x
topology: tpu7x:2x2x1
jax: 0.10.0
libtpu: 0.0.40
codegen_flags: <defaults>
</compile_context>

<pallas_src>
import numpy as np

import jax
import jax.numpy as jnp
from jax import lax
from jax.experimental import pallas as pl
from jax.experimental.pallas import tpu as pltpu

START_TAG = '<START>'
STOP_TAG = '<STOP>'


def _round_up(x, m):
    return ((x + m - 1) // m) * m


# ----------------------------------------------------------------------------
# Kernel 1: BiLSTM (packed-sequence semantics) + hidden2tag, fused.
#   - fused gates: one wide matmul per operand per direction per step
#   - fwd/bwd chains interleaved in a single unrolled fori_loop
#   - scratch holds the forward hidden2tag partials (lane-dense Kp=128)
# ----------------------------------------------------------------------------
def _bilstm_feats_kernel(embeds_ref, lens_ref,
                         wx_f_ref, wh_f_ref, b_f_ref,
                         wx_b_ref, wh_b_ref, b_b_ref,
                         h0_ref, c0_ref,
                         wt_f_ref, wt_b_ref, b_tag_ref,
                         feats_ref, acc_ref):
    T, Bt, E = embeds_ref.shape
    Hp = h0_ref.shape[2]
    lens = lens_ref[...]                           # (Bt, 1) int32
    b_tag = b_tag_ref[...]                         # (1, Kp) f32

    def cell(t, h, c, wx_ref, wh_ref, b_ref):
        x = embeds_ref[t]                          # (Bt, E) bf16
        # Fused gates: single wide matmul per operand, bf16 MXU, f32 accum.
        g = (jnp.dot(x, wx_ref[...], preferred_element_type=jnp.float32)
             + jnp.dot(h.astype(jnp.bfloat16), wh_ref[...],
                       preferred_element_type=jnp.float32)
             + b_ref[...])                         # (Bt, 4*Hp) f32
        # PyTorch LSTM gate order: input, forget, cell, output.
        i = jax.nn.sigmoid(g[:, 0 * Hp:1 * Hp])
        f = jax.nn.sigmoid(g[:, 1 * Hp:2 * Hp])
        gg = jnp.tanh(g[:, 2 * Hp:3 * Hp])
        o = jax.nn.sigmoid(g[:, 3 * Hp:4 * Hp])
        c_new = f * c + i * gg
        h_new = o * jnp.tanh(c_new)
        mask = lens > t                            # (Bt, 1)
        h_new = jnp.where(mask, h_new, h)
        c_new = jnp.where(mask, c_new, c)
        h_out = jnp.where(mask, h_new, 0.0)        # pad_packed zero-pads
        return h_new, c_new, h_out

    def body(k, carry):
        hf, cf, hb, cb = carry
        # forward chain at t = k; stash its hidden2tag partial (lane-dense Kp).
        hf, cf, hf_out = cell(k, hf, cf, wx_f_ref, wh_f_ref, b_f_ref)
        acc_ref[k] = (jnp.dot(hf_out.astype(jnp.bfloat16), wt_f_ref[...],
                              preferred_element_type=jnp.float32) + b_tag)
        # backward chain at t = T-1-k (independent chain -> co-issues with fwd).
        tb = T - 1 - k
        hb, cb, hb_out = cell(tb, hb, cb, wx_b_ref, wh_b_ref, b_b_ref)
        feats_ref[tb] = jnp.dot(hb_out.astype(jnp.bfloat16), wt_b_ref[...],
                                preferred_element_type=jnp.float32)
        return (hf, cf, hb, cb)

    unroll = True if T <= 16 else 4
    lax.fori_loop(0, T, body,
                  (h0_ref[0], c0_ref[0], h0_ref[1], c0_ref[1]),
                  unroll=unroll)

    # combine the two directions' hidden2tag partials in one lane-dense pass.
    feats_ref[...] = feats_ref[...] + acc_ref[...]


def bilstm_crf_features(embeds_tbe, lens_col, params, batch_tile=None):
    T, B, E = embeds_tbe.shape
    Hp = params['h0'].shape[2]
    Kp = params['b_tag'].shape[1]
    Bt = batch_tile or B
    assert B % Bt == 0, "batch must divide by batch_tile"
    nb = B // Bt

    grid_spec = pltpu.PrefetchScalarGridSpec(
        num_scalar_prefetch=0,
        grid=(nb,),
        in_specs=[
            pl.BlockSpec((T, Bt, E), lambda i: (0, i, 0)),       # embeds (bf16)
            pl.BlockSpec((Bt, 1), lambda i: (i, 0)),             # lengths
            pl.BlockSpec((E, 4 * Hp), lambda i: (0, 0)),         # fused W_ih fwd
            pl.BlockSpec((Hp, 4 * Hp), lambda i: (0, 0)),        # fused W_hh fwd
            pl.BlockSpec((1, 4 * Hp), lambda i: (0, 0)),         # fused bias fwd
            pl.BlockSpec((E, 4 * Hp), lambda i: (0, 0)),         # fused W_ih bwd
            pl.BlockSpec((Hp, 4 * Hp), lambda i: (0, 0)),        # fused W_hh bwd
            pl.BlockSpec((1, 4 * Hp), lambda i: (0, 0)),         # fused bias bwd
            pl.BlockSpec((2, Bt, Hp), lambda i: (0, i, 0)),      # h0
            pl.BlockSpec((2, Bt, Hp), lambda i: (0, i, 0)),      # c0
            pl.BlockSpec((Hp, Kp), lambda i: (0, 0)),            # hidden2tag fwd
            pl.BlockSpec((Hp, Kp), lambda i: (0, 0)),            # hidden2tag bwd
            pl.BlockSpec((1, Kp), lambda i: (0, 0)),             # tag bias
        ],
        out_specs=pl.BlockSpec((T, Bt, Kp), lambda i: (0, i, 0)),
        scratch_shapes=[pltpu.VMEM((T, Bt, Kp), jnp.float32)],
    )
    return pl.pallas_call(
        _bilstm_feats_kernel,
        out_shape=jax.ShapeDtypeStruct((T, B, Kp), jnp.float32),
        grid_spec=grid_spec,
        compiler_params=pltpu.CompilerParams(
            dimension_semantics=("parallel",)),
    )(embeds_tbe, lens_col,
      params['wx_f'], params['wh_f'], params['b_f'],
      params['wx_b'], params['wh_b'], params['b_b'],
      params['h0'], params['c0'],
      params['wt_f'], params['wt_b'], params['b_tag'])


# ----------------------------------------------------------------------------
# Kernel 2: batched Viterbi decode — ONE pallas_call, grid=(B,), lengths in
# SMEM via scalar prefetch, fixed T with per-step length masking.
# ----------------------------------------------------------------------------
def _make_batched_viterbi_kernel(start_idx, stop_idx):
    def kernel(lens_ref, feats_ref, trans_ref, path_ref, score_ref, bp_ref):
        T, _, Kp = feats_ref.shape
        b = pl.program_id(0)
        L = lens_ref[b]                                     # scalar int32 (SMEM)
        NEG = jnp.float32(-10000.0)
        lane_k = lax.broadcasted_iota(jnp.int32, (1, Kp), 1)
        lane_kk = lax.broadcasted_iota(jnp.int32, (Kp, Kp), 1)
        sub_kk = lax.broadcasted_iota(jnp.int32, (Kp, Kp), 0)
        eye = sub_kk == lane_kk
        lane_T = lax.broadcasted_iota(jnp.int32, (1, T), 1)
        trans = trans_ref[...]

        fv0 = jnp.where(lane_k == start_idx, 0.0, NEG)      # (1, Kp)
        unroll = True if T <= 32 else 2

        def step(t, fv):
            M = trans + fv                                  # (Kp,Kp): M[next, prev]
            vmax_col = jnp.max(M, axis=1, keepdims=True)    # (Kp, 1)
            bp_col = jnp.min(jnp.where(M == vmax_col, lane_kk, Kp),
                             axis=1, keepdims=True)         # first argmax, (Kp, 1)
            # (Kp,1) -> (1,Kp) via identity-masked reduce (exact, no rounding).
            vmax_row = jnp.sum(jnp.where(eye, vmax_col, 0.0), axis=0, keepdims=True)
            bp_row = jnp.sum(jnp.where(eye, bp_col, 0), axis=0, keepdims=True)
            bp_ref[pl.ds(t, 1), :] = bp_row
            feat_t = feats_ref[pl.ds(t, 1), pl.ds(b, 1), :].reshape(1, Kp)
            fv_new = vmax_row + feat_t
            return jnp.where(t < L, fv_new, fv)             # mask padded steps

        fv = lax.fori_loop(0, T, step, fv0, unroll=unroll)

        terminal = fv + trans_ref[pl.ds(stop_idx, 1), :]
        terminal = jnp.where((lane_k == stop_idx) | (lane_k == start_idx),
                             NEG, terminal)
        best_score = jnp.max(terminal, axis=1, keepdims=True)              # (1,1)
        best_tag = jnp.min(jnp.where(terminal == best_score, lane_k, Kp),
                           axis=1, keepdims=True)                          # (1,1)
        score_ref[pl.ds(b, 1), :] = best_score

        path0 = jnp.where(lane_T == (L - 1), best_tag, 0)                  # (1,T)

        def back_step(k, carry):
            cur, path = carry
            t = L - 1 - k
            valid = t >= 1
            row = bp_ref[pl.ds(jnp.maximum(t, 0), 1), :]                   # (1,Kp)
            nxt = jnp.sum(jnp.where(lane_k == cur, row, 0),
                          axis=1, keepdims=True)                           # (1,1)
            cur = jnp.where(valid, nxt, cur)
            path = jnp.where(valid & (lane_T == (t - 1)), cur, path)
            return (cur, path)

        _, path = lax.fori_loop(0, T - 1, back_step, (best_tag, path0),
                                unroll=unroll)
        path_ref[pl.ds(b, 1), :] = path

    return kernel


def batched_viterbi(feats_tbk, trans_pad, lens, start_idx, stop_idx):
    T, B, Kp = feats_tbk.shape
    grid_spec = pltpu.PrefetchScalarGridSpec(
        num_scalar_prefetch=1,                    # lengths -> SMEM
        grid=(B,),
        in_specs=[pl.BlockSpec((T, B, Kp), lambda b, lens_ref: (0, 0, 0)),
                  pl.BlockSpec((Kp, Kp), lambda b, lens_ref: (0, 0))],
        out_specs=(pl.BlockSpec((B, T), lambda b, lens_ref: (0, 0)),
                   pl.BlockSpec((B, 1), lambda b, lens_ref: (0, 0))),
        scratch_shapes=[pltpu.VMEM((T, Kp), jnp.int32)],
    )
    return pl.pallas_call(
        _make_batched_viterbi_kernel(int(start_idx), int(stop_idx)),
        out_shape=(jax.ShapeDtypeStruct((B, T), jnp.int32),
                   jax.ShapeDtypeStruct((B, 1), jnp.float32)),
        grid_spec=grid_spec,
        compiler_params=pltpu.CompilerParams(
            dimension_semantics=("arbitrary",)),
    )(lens, feats_tbk, trans_pad)


# ----------------------------------------------------------------------------
# Module-level forward (glue + kernels)
# ----------------------------------------------------------------------------
def batch_bilstm_crf_forward(params, batch_sentence, sentence_length,
                             batch_chars2=None, chars2_length=None):
    # char inputs accepted but unused — matches the PyTorch forward path.
    # TODO(synk): char-LSTM branch declared in __init__ but unused by forward();
    #             nn.Dropout(0.5) applied as eval-mode identity.
    B, T = batch_sentence.shape
    assert params['h0'].shape[1] == B, (
        "init_hidden batch (%d) != runtime batch (%d)"
        % (params['h0'].shape[1], B))
    # Gather embeddings directly time-major -> no (B,T,E)->(T,B,E) transpose pass.
    embeds_tbe = params['word_embed'][batch_sentence.T].astype(jnp.bfloat16)
    lens = jnp.asarray(sentence_length, jnp.int32)
    feats_tbk = bilstm_crf_features(embeds_tbe, lens.reshape(B, 1), params)
    paths, scores = batched_viterbi(feats_tbk, params['transitions_pad'], lens,
                                    params['start_idx'], params['stop_idx'])
    # single device->host transfer for the whole batch
    paths_np = np.asarray(paths)
    scores_np = np.asarray(scores)
    results = [(float(scores_np[b, 0]), [int(x) for x in paths_np[b, :l]])
               for b, l in enumerate(sentence_length)]
    return feats_tbk, results


def init_params(key, vocab_size, embedding_dim, hidden_dim, tag_to_ix, batch):
    Hd = hidden_dim // 2
    K = len(tag_to_ix)
    Hp = _round_up(Hd, 32)       # 4*Hp is a 128-multiple -> lane-dense gate width
    Kp = _round_up(K, 128)       # lane-dense feats / transitions
    ks = jax.random.split(key, 14)

    def rn(k, shape, s=0.1):
        return (s * jax.random.normal(k, shape)).astype(jnp.float32)

    w_ih_f = rn(ks[1], (4, embedding_dim, Hd))
    w_hh_f = rn(ks[2], (4, Hd, Hd))
    b_f = rn(ks[3], (4, 1, Hd))
    w_ih_b = rn(ks[4], (4, embedding_dim, Hd))
    w_hh_b = rn(ks[5], (4, Hd, Hd))
    b_b = rn(ks[6], (4, 1, Hd))
    wt_f = rn(ks[9], (Hd, K))
    wt_b = rn(ks[10], (Hd, K))
    b_tag = rn(ks[11], (1, K))
    transitions = rn(ks[12], (K, K), 1.0)
    # pad tags get very negative transitions so they never appear on a best path
    trans_pad = jnp.full((Kp, Kp), -1e7, jnp.float32).at[:K, :K].set(transitions)

    def fuse_ih(w4):             # (4, in, Hd) -> (in, 4*Hp) bf16, per-gate padded
        out = jnp.zeros((w4.shape[1], 4 * Hp), jnp.float32)
        for g in range(4):
            out = out.at[:, g * Hp:g * Hp + Hd].set(w4[g])
        return out.astype(jnp.bfloat16)

    def fuse_hh(w4):             # (4, Hd, Hd) -> (Hp, 4*Hp) bf16
        out = jnp.zeros((Hp, 4 * Hp), jnp.float32)
        for g in range(4):
            out = out.at[:Hd, g * Hp:g * Hp + Hd].set(w4[g])
        return out.astype(jnp.bfloat16)

    def fuse_b(b4):              # (4, 1, Hd) -> (1, 4*Hp) f32
        out = jnp.zeros((1, 4 * Hp), jnp.float32)
        for g in range(4):
            out = out.at[:, g * Hp:g * Hp + Hd].set(b4[g])
        return out

    def pad2(w, r, c):
        return jnp.zeros((r, c), w.dtype).at[:w.shape[0], :w.shape[1]].set(w)

    h0 = jnp.zeros((2, batch, Hp), jnp.float32).at[:, :, :Hd].set(
        rn(ks[7], (2, batch, Hd), 1.0))      # init_hidden(): randn -> deterministic
    c0 = jnp.zeros((2, batch, Hp), jnp.float32).at[:, :, :Hd].set(
        rn(ks[8], (2, batch, Hd), 1.0))

    return dict(
        word_embed=rn(ks[0], (vocab_size, embedding_dim), 1.0),
        wx_f=fuse_ih(w_ih_f), wh_f=fuse_hh(w_hh_f), b_f=fuse_b(b_f),
        wx_b=fuse_ih(w_ih_b), wh_b=fuse_hh(w_hh_b), b_b=fuse_b(b_b),
        h0=h0, c0=c0,
        wt_f=pad2(wt_f, Hp, Kp).astype(jnp.bfloat16),
        wt_b=pad2(wt_b, Hp, Kp).astype(jnp.bfloat16),
        b_tag=pad2(b_tag, 1, Kp),
        transitions=transitions,
        transitions_pad=trans_pad,
        start_idx=tag_to_ix[START_TAG],
        stop_idx=tag_to_ix[STOP_TAG],
        n_tags=K,
    )


# ----------------------------------------------------------------------------
# Pure JAX / numpy references (light in-script correctness check)
# ----------------------------------------------------------------------------
def _ref_feats(params, embeds_bf16, lens_col):
    T, B, E = embeds_bf16.shape
    Hp = params['h0'].shape[2]

    def cell(x, h, c, wx, wh, b):
        g = (jnp.dot(x, wx, preferred_element_type=jnp.float32)
             + jnp.dot(h.astype(jnp.bfloat16), wh,
                       preferred_element_type=jnp.float32) + b)
        i = jax.nn.sigmoid(g[:, 0 * Hp:1 * Hp])
        f = jax.nn.sigmoid(g[:, 1 * Hp:2 * Hp])
        gg = jnp.tanh(g[:, 2 * Hp:3 * Hp])
        o = jax.nn.sigmoid(g[:, 3 * Hp:4 * Hp])
        c = f * c + i * gg
        return o * jnp.tanh(c), c

    h, c = params['h0'][0], params['c0'][0]
    hf = []
    for t in range(T):
        hn, cn = cell(embeds_bf16[t], h, c,
                      params['wx_f'], params['wh_f'], params['b_f'])
        m = lens_col > t
        h = jnp.where(m, hn, h)
        c = jnp.where(m, cn, c)
        hf.append(jnp.where(m, h, 0.0))
    h, c = params['h0'][1], params['c0'][1]
    hb = [None] * T
    for t in range(T - 1, -1, -1):
        hn, cn = cell(embeds_bf16[t], h, c,
                      params['wx_b'], params['wh_b'], params['b_b'])
        m = lens_col > t
        h = jnp.where(m, hn, h)
        c = jnp.where(m, cn, c)
        hb[t] = jnp.where(m, h, 0.0)
    feats = [jnp.dot(hf[t].astype(jnp.bfloat16), params['wt_f'],
                     preferred_element_type=jnp.float32)
             + jnp.dot(hb[t].astype(jnp.bfloat16), params['wt_b'],
                       preferred_element_type=jnp.float32)
             + params['b_tag'] for t in range(T)]
    return jnp.stack(feats, axis=0)       # (T, B, Kp)


def _ref_viterbi(feats_np, trans_np, start, stop):
    K = trans_np.shape[1]
    fv = np.full((K,), -10000.0, np.float32)
    fv[start] = 0.0
    bps = []
    for f in feats_np:
        M = trans_np + fv[None, :]
        bps.append(M.argmax(axis=1))
        fv = M.max(axis=1) + f
    term = fv + trans_np[stop]
    term[stop] = -10000.0
    term[start] = -10000.0
    best = int(term.argmax())
    score = float(term[best])
    path = [best]
    for bp in reversed(bps):
        best = int(bp[best])
        path.append(best)
    path.pop()            # drop START
    path.reverse()
    return score, path


if __name__ == "__main__":
    vocab_size, embedding_dim, hidden_dim = 50, 32, 32
    tag_to_ix = {'B': 0, 'I': 1, 'O': 2, START_TAG: 3, STOP_TAG: 4}
    B, T = 2, 8
    sentence_length = [8, 6]      # sorted descending (pack_padded_sequence req.)

    key = jax.random.PRNGKey(0)
    kp, kd = jax.random.split(key)
    params = init_params(kp, vocab_size, embedding_dim, hidden_dim, tag_to_ix, B)
    batch_sentence = jax.random.randint(kd, (B, T), 0, vocab_size, dtype=jnp.int32)

    feats_tbk, results = batch_bilstm_crf_forward(params, batch_sentence,
                                                  sentence_length)
    feats_tbk = jax.block_until_ready(feats_tbk)

    # ---- lightweight correctness check against pure-JAX / numpy references ----
    embeds_bf = params['word_embed'][batch_sentence.T].astype(jnp.bfloat16)
    lens_col = jnp.asarray(sentence_length, jnp.int32).reshape(B, 1)
    ref = _ref_feats(params, embeds_bf, lens_col)          # (T, B, Kp)
    np.testing.assert_allclose(np.asarray(ref), np.asarray(feats_tbk),
                               atol=1e-2, rtol=1e-2)

    K = len(tag_to_ix)
    trans_np = np.asarray(params['transitions'])
    feats_np = np.asarray(feats_tbk)
    for b, l in enumerate(sentence_length):
        ref_score, ref_path = _ref_viterbi(feats_np[:l, b, :K], trans_np,
                                           params['start_idx'],
                                           params['stop_idx'])
        k_score, k_path = results[b]
        assert ref_path == k_path, (ref_path, k_path)
        assert abs(ref_score - k_score) < 1e-2, (ref_score, k_score)

    print("KERNEL_OK")
</pallas_src>

<mosaic_0001>
module attributes {stable_mosaic.version = 11 : i64} {
  func.func @_bilstm_feats_kernel(%arg0: i32, %arg1: memref<8x2x32xbf16, #tpu.memory_space<vmem>>, %arg2: memref<2x1xi32, #tpu.memory_space<vmem>>, %arg3: memref<32x128xbf16, #tpu.memory_space<vmem>>, %arg4: memref<32x128xbf16, #tpu.memory_space<vmem>>, %arg5: memref<1x128xf32, #tpu.memory_space<vmem>>, %arg6: memref<32x128xbf16, #tpu.memory_space<vmem>>, %arg7: memref<32x128xbf16, #tpu.memory_space<vmem>>, %arg8: memref<1x128xf32, #tpu.memory_space<vmem>>, %arg9: memref<2x2x32xf32, #tpu.memory_space<vmem>>, %arg10: memref<2x2x32xf32, #tpu.memory_space<vmem>>, %arg11: memref<32x128xbf16, #tpu.memory_space<vmem>>, %arg12: memref<32x128xbf16, #tpu.memory_space<vmem>>, %arg13: memref<1x128xf32, #tpu.memory_space<vmem>>, %arg14: memref<8x2x128xf32, #tpu.memory_space<vmem>>, %arg15: memref<8x2x128xf32, #tpu.memory_space<vmem>>) attributes {dimension_semantics = [#tpu.dimension_semantics<parallel>], iteration_bounds = array<i64: 1>, scalar_prefetch = 0 : i64, scratch_operands = 1 : i64, tpu.core_type = #tpu.core_type<tc>, window_params = [{transform_indices = @transform_0, window_bounds = array<i64: 8, 2, 32>}, {transform_indices = @transform_1, window_bounds = array<i64: 2, 1>}, {pipeline_mode = #tpu.pipeline_mode<synchronous>, transform_indices = @transform_2, window_bounds = array<i64: 32, 128>}, {pipeline_mode = #tpu.pipeline_mode<synchronous>, transform_indices = @transform_3, window_bounds = array<i64: 32, 128>}, {pipeline_mode = #tpu.pipeline_mode<synchronous>, transform_indices = @transform_4, window_bounds = array<i64: 1, 128>}, {pipeline_mode = #tpu.pipeline_mode<synchronous>, transform_indices = @transform_5, window_bounds = array<i64: 32, 128>}, {pipeline_mode = #tpu.pipeline_mode<synchronous>, transform_indices = @transform_6, window_bounds = array<i64: 32, 128>}, {pipeline_mode = #tpu.pipeline_mode<synchronous>, transform_indices = @transform_7, window_bounds = array<i64: 1, 128>}, {transform_indices = @transform_8, window_bounds = array<i64: 2, 2, 32>}, {transform_indices = @transform_9, window_bounds = array<i64: 2, 2, 32>}, {pipeline_mode = #tpu.pipeline_mode<synchronous>, transform_indices = @transform_10, window_bounds = array<i64: 32, 128>}, {pipeline_mode = #tpu.pipeline_mode<synchronous>, transform_indices = @transform_11, window_bounds = array<i64: 32, 128>}, {pipeline_mode = #tpu.pipeline_mode<synchronous>, transform_indices = @transform_12, window_bounds = array<i64: 1, 128>}, {transform_indices = @transform_13, window_bounds = array<i64: 8, 2, 128>}]} {
    %c0 = arith.constant 0 : index
    %c0_0 = arith.constant 0 : index
    %0 = vector.load %arg2[%c0, %c0_0] : memref<2x1xi32, #tpu.memory_space<vmem>>, vector<2x1xi32>
    %c0_1 = arith.constant 0 : index
    %c0_2 = arith.constant 0 : index
    %1 = vector.load %arg13[%c0_1, %c0_2] : memref<1x128xf32, #tpu.memory_space<vmem>>, vector<1x128xf32>
    %c0_3 = arith.constant 0 : index
    %c0_4 = arith.constant 0 : index
    %c0_5 = arith.constant 0 : index
    %2 = vector.load %arg9[%c0_3, %c0_4, %c0_5] : memref<2x2x32xf32, #tpu.memory_space<vmem>>, vector<1x2x32xf32>
    %3 = vector.shape_cast %2 : vector<1x2x32xf32> to vector<2x32xf32>
    %c0_6 = arith.constant 0 : index
    %c0_7 = arith.constant 0 : index
    %c0_8 = arith.constant 0 : index
    %4 = vector.load %arg10[%c0_6, %c0_7, %c0_8] : memref<2x2x32xf32, #tpu.memory_space<vmem>>, vector<1x2x32xf32>
    %5 = vector.shape_cast %4 : vector<1x2x32xf32> to vector<2x32xf32>
    %c1 = arith.constant 1 : index
    %c0_9 = arith.constant 0 : index
    %c0_10 = arith.constant 0 : index
    %6 = vector.load %arg9[%c1, %c0_9, %c0_10] : memref<2x2x32xf32, #tpu.memory_space<vmem>>, vector<1x2x32xf32>
    %7 = vector.shape_cast %6 : vector<1x2x32xf32> to vector<2x32xf32>
    %c1_11 = arith.constant 1 : index
    %c0_12 = arith.constant 0 : index
    %c0_13 = arith.constant 0 : index
    %8 = vector.load %arg10[%c1_11, %c0_12, %c0_13] : memref<2x2x32xf32, #tpu.memory_space<vmem>>, vector<1x2x32xf32>
    %9 = vector.shape_cast %8 : vector<1x2x32xf32> to vector<2x32xf32>
    %c0_i32 = arith.constant 0 : i32
    %10 = arith.index_cast %c0_i32 : i32 to index
    %c0_14 = arith.constant 0 : index
    %c0_15 = arith.constant 0 : index
    %11 = vector.load %arg1[%10, %c0_14, %c0_15] : memref<8x2x32xbf16, #tpu.memory_space<vmem>>, vector<1x2x32xbf16>
    %12 = vector.shape_cast %11 : vector<1x2x32xbf16> to vector<2x32xbf16>
    %c0_16 = arith.constant 0 : index
    %c0_17 = arith.constant 0 : index
    %13 = vector.load %arg3[%c0_16, %c0_17] : memref<32x128xbf16, #tpu.memory_space<vmem>>, vector<32x128xbf16>
    %cst = arith.constant dense<0.000000e+00> : vector<2x128xf32>
    %14 = tpu.matmul %12, %13, %cst {dimension_numbers = #tpu.dot_dimension_numbers<[1], [0], [0], [1], [0, 0, 1, 1], [], []>} : vector<2x32xbf16>, vector<32x128xbf16>, vector<2x128xf32> -> vector<2x128xf32>
    %15 = arith.truncf %3 : vector<2x32xf32> to vector<2x32xbf16>
    %c0_18 = arith.constant 0 : index
    %c0_19 = arith.constant 0 : index
    %16 = vector.load %arg4[%c0_18, %c0_19] : memref<32x128xbf16, #tpu.memory_space<vmem>>, vector<32x128xbf16>
    %cst_20 = arith.constant dense<0.000000e+00> : vector<2x128xf32>
    %17 = tpu.matmul %15, %16, %cst_20 {dimension_numbers = #tpu.dot_dimension_numbers<[1], [0], [0], [1], [0, 0, 1, 1], [], []>} : vector<2x32xbf16>, vector<32x128xbf16>, vector<2x128xf32> -> vector<2x128xf32>
    %18 = arith.addf %14, %17 : vector<2x128xf32>
    %c0_21 = arith.constant 0 : index
    %c0_22 = arith.constant 0 : index
    %19 = vector.load %arg5[%c0_21, %c0_22] : memref<1x128xf32, #tpu.memory_space<vmem>>, vector<1x128xf32>
    %20 = vector.broadcast %19 : vector<1x128xf32> to vector<2x128xf32>
    %21 = arith.addf %18, %20 : vector<2x128xf32>
    %22 = vector.extract_strided_slice %21 {offsets = [0, 0], sizes = [2, 32], strides = [1, 1]} : vector<2x128xf32> to vector<2x32xf32>
    %23 = arith.negf %22 : vector<2x32xf32>
    %24 = math.exp %23 : vector<2x32xf32>
    %cst_23 = arith.constant 1.000000e+00 : f32
    %25 = vector.broadcast %cst_23 : f32 to vector<2x32xf32>
    %26 = arith.addf %25, %24 : vector<2x32xf32>
    %27 = arith.divf %25, %26 : vector<2x32xf32>
    %28 = vector.extract_strided_slice %21 {offsets = [0, 32], sizes = [2, 32], strides = [1, 1]} : vector<2x128xf32> to vector<2x32xf32>
    %29 = arith.negf %28 : vector<2x32xf32>
    %30 = math.exp %29 : vector<2x32xf32>
    %cst_24 = arith.constant 1.000000e+00 : f32
    %31 = vector.broadcast %cst_24 : f32 to vector<2x32xf32>
    %32 = arith.addf %31, %30 : vector<2x32xf32>
    %33 = arith.divf %31, %32 : vector<2x32xf32>
    %34 = vector.extract_strided_slice %21 {offsets = [0, 64], sizes = [2, 32], strides = [1, 1]} : vector<2x128xf32> to vector<2x32xf32>
    %35 = math.tanh %34 : vector<2x32xf32>
    %36 = vector.extract_strided_slice %21 {offsets = [0, 96], sizes = [2, 32], strides = [1, 1]} : vector<2x128xf32> to vector<2x32xf32>
    %37 = arith.negf %36 : vector<2x32xf32>
    %38 = math.exp %37 : vector<2x32xf32>
    %cst_25 = arith.constant 1.000000e+00 : f32
    %39 = vector.broadcast %cst_25 : f32 to vector<2x32xf32>
    %40 = arith.addf %39, %38 : vector<2x32xf32>
    %41 = arith.divf %39, %40 : vector<2x32xf32>
    %42 = arith.mulf %33, %5 : vector<2x32xf32>
    %43 = arith.mulf %27, %35 : vector<2x32xf32>
    %44 = arith.addf %42, %43 : vector<2x32xf32>
    %45 = math.tanh %44 : vector<2x32xf32>
    %46 = arith.mulf %41, %45 : vector<2x32xf32>
    %47 = vector.broadcast %c0_i32 : i32 to vector<2x1xi32>
    %48 = arith.cmpi sgt, %0, %47 : vector<2x1xi32>
    %49 = vector.shape_cast %48 : vector<2x1xi1> to vector<2x1xi1>
    %50 = vector.broadcast %49 : vector<2x1xi1> to vector<2x32xi1>
    %51 = arith.select %50, %46, %3 : vector<2x32xi1>, vector<2x32xf32>
    %52 = vector.shape_cast %48 : vector<2x1xi1> to vector<2x1xi1>
    %53 = vector.broadcast %52 : vector<2x1xi1> to vector<2x32xi1>
    %54 = arith.select %53, %44, %5 : vector<2x32xi1>, vector<2x32xf32>
    %cst_26 = arith.constant 0.000000e+00 : f32
    %55 = vector.shape_cast %48 : vector<2x1xi1> to vector<2x1xi1>
    %56 = vector.broadcast %55 : vector<2x1xi1> to vector<2x32xi1>
    %57 = vector.broadcast %cst_26 : f32 to vector<2x32xf32>
    %58 = arith.select %56, %51, %57 : vector<2x32xi1>, vector<2x32xf32>
    %59 = arith.truncf %58 : vector<2x32xf32> to vector<2x32xbf16>
    %c0_27 = arith.constant 0 : index
    %c0_28 = arith.constant 0 : index
    %60 = vector.load %arg11[%c0_27, %c0_28] : memref<32x128xbf16, #tpu.memory_space<vmem>>, vector<32x128xbf16>
    %cst_29 = arith.constant dense<0.000000e+00> : vector<2x128xf32>
    %61 = tpu.matmul %59, %60, %cst_29 {dimension_numbers = #tpu.dot_dimension_numbers<[1], [0], [0], [1], [0, 0, 1, 1], [], []>} : vector<2x32xbf16>, vector<32x128xbf16>, vector<2x128xf32> -> vector<2x128xf32>
    %62 = vector.broadcast %1 : vector<1x128xf32> to vector<2x128xf32>
    %63 = arith.addf %61, %62 : vector<2x128xf32>
    %64 = arith.index_cast %c0_i32 : i32 to index
    %c0_30 = arith.constant 0 : index
    %c0_31 = arith.constant 0 : index
    %65 = vector.load %arg15[%64, %c0_30, %c0_31] : memref<8x2x128xf32, #tpu.memory_space<vmem>>, vector<1x2x128xf32>
    %66 = vector.shape_cast %65 : vector<1x2x128xf32> to vector<2x128xf32>
    %67 = vector.shape_cast %63 : vector<2x128xf32> to vector<1x2x128xf32>
    tpu.vector_store %arg15[%64, %c0_30, %c0_31], %67 {strides = array<i32>} : memref<8x2x128xf32, #tpu.memory_space<vmem>>, vector<1x2x128xf32>,
    %c7_i32 = arith.constant 7 : i32
    %68 = arith.subi %c7_i32, %c0_i32 : i32
    %69 = arith.index_cast %68 : i32 to index
    %c0_32 = arith.constant 0 : index
    %c0_33 = arith.constant 0 : index
    %70 = vector.load %arg1[%69, %c0_32, %c0_33] : memref<8x2x32xbf16, #tpu.memory_space<vmem>>, vector<1x2x32xbf16>
    %71 = vector.shape_cast %70 : vector<1x2x32xbf16> to vector<2x32xbf16>
    %c0_34 = arith.constant 0 : index
    %c0_35 = arith.constant 0 : index
    %72 = vector.load %arg6[%c0_34, %c0_35] : memref<32x128xbf16, #tpu.memory_space<vmem>>, vector<32x128xbf16>
    %cst_36 = arith.constant dense<0.000000e+00> : vector<2x128xf32>
    %73 = tpu.matmul %71, %72, %cst_36 {dimension_numbers = #tpu.dot_dimension_numbers<[1], [0], [0], [1], [0, 0, 1, 1], [], []>} : vector<2x32xbf16>, vector<32x128xbf16>, vector<2x128xf32> -> vector<2x128xf32>
    %74 = arith.truncf %7 : vector<2x32xf32> to vector<2x32xbf16>
    %c0_37 = arith.constant 0 : index
    %c0_38 = arith.constant 0 : index
    %75 = vector.load %arg7[%c0_37, %c0_38] : memref<32x128xbf16, #tpu.memory_space<vmem>>, vector<32x128xbf16>
    %cst_39 = arith.constant dense<0.000000e+00> : vector<2x128xf32>
    %76 = tpu.matmul %74, %75, %cst_39 {dimension_numbers = #tpu.dot_dimension_numbers<[1], [0], [0], [1], [0, 0, 1, 1], [], []>} : vector<2x32xbf16>, vector<32x128xbf16>, vector<2x128xf32> -> vector<2x128xf32>
    %77 = arith.addf %73, %76 : vector<2x128xf32>
    %c0_40 = arith.constant 0 : index
    %c0_41 = arith.constant 0 : index
    %78 = vector.load %arg8[%c0_40, %c0_41] : memref<1x128xf32, #tpu.memory_space<vmem>>, vector<1x128xf32>
    %79 = vector.broadcast %78 : vector<1x128xf32> to vector<2x128xf32>
    %80 = arith.addf %77, %79 : vector<2x128xf32>
    %81 = vector.extract_strided_slice %80 {offsets = [0, 0], sizes = [2, 32], strides = [1, 1]} : vector<2x128xf32> to vector<2x32xf32>
    %82 = arith.negf %81 : vector<2x32xf32>
    %83 = math.exp %82 : vector<2x32xf32>
    %cst_42 = arith.constant 1.000000e+00 : f32
    %84 = vector.broadcast %cst_42 : f32 to vector<2x32xf32>
    %85 = arith.addf %84, %83 : vector<2x32xf32>
    %86 = arith.divf %84, %85 : vector<2x32xf32>
    %87 = vector.extract_strided_slice %80 {offsets = [0, 32], sizes = [2, 32], strides = [1, 1]} : vector<2x128xf32> to vector<2x32xf32>
    %88 = arith.negf %87 : vector<2x32xf32>
    %89 = math.exp %88 : vector<2x32xf32>
    %cst_43 = arith.constant 1.000000e+00 : f32
    %90 = vector.broadcast %cst_43 : f32 to vector<2x32xf32>
    %91 = arith.addf %90, %89 : vector<2x32xf32>
    %92 = arith.divf %90, %91 : vector<2x32xf32>
    %93 = vector.extract_strided_slice %80 {offsets = [0, 64], sizes = [2, 32], strides = [1, 1]} : vector<2x128xf32> to vector<2x32xf32>
    %94 = math.tanh %93 : vector<2x32xf32>
    %95 = vector.extract_strided_slice %80 {offsets = [0, 96], sizes = [2, 32], strides = [1, 1]} : vector<2x128xf32> to vector<2x32xf32>
    %96 = arith.negf %95 : vector<2x32xf32>
    %97 = math.exp %96 : vector<2x32xf32>
    %cst_44 = arith.constant 1.000000e+00 : f32
    %98 = vector.broadcast %cst_44 : f32 to vector<2x32xf32>
    %99 = arith.addf %98, %97 : vector<2x32xf32>
    %100 = arith.divf %98, %99 : vector<2x32xf32>
    %101 = arith.mulf %92, %9 : vector<2x32xf32>
    %102 = arith.mulf %86, %94 : vector<2x32xf32>
    %103 = arith.addf %101, %102 : vector<2x32xf32>
    %104 = math.tanh %103 : vector<2x32xf32>
    %105 = arith.mulf %100, %104 : vector<2x32xf32>
    %106 = vector.broadcast %68 : i32 to vector<2x1xi32>
    %107 = arith.cmpi sgt, %0, %106 : vector<2x1xi32>
    %108 = vector.shape_cast %107 : vector<2x1xi1> to vector<2x1xi1>
    %109 = vector.broadcast %108 : vector<2x1xi1> to vector<2x32xi1>
    %110 = arith.select %109, %105, %7 : vector<2x32xi1>, vector<2x32xf32>
    %111 = vector.shape_cast %107 : vector<2x1xi1> to vector<2x1xi1>
    %112 = vector.broadcast %111 : vector<2x1xi1> to vector<2x32xi1>
    %113 = arith.select %112, %103, %9 : vector<2x32xi1>, vector<2x32xf32>
    %cst_45 = arith.constant 0.000000e+00 : f32
    %114 = vector.shape_cast %107 : vector<2x1xi1> to vector<2x1xi1>
    %115 = vector.broadcast %114 : vector<2x1xi1> to vector<2x32xi1>
    %116 = vector.broadcast %cst_45 : f32 to vector<2x32xf32>
    %117 = arith.select %115, %110, %116 : vector<2x32xi1>, vector<2x32xf32>
    %118 = arith.truncf %117 : vector<2x32xf32> to vector<2x32xbf16>
    %c0_46 = arith.constant 0 : index
    %c0_47 = arith.constant 0 : index
    %119 = vector.load %arg12[%c0_46, %c0_47] : memref<32x128xbf16, #tpu.memory_space<vmem>>, vector<32x128xbf16>
    %cst_48 = arith.constant dense<0.000000e+00> : vector<2x128xf32>
    %120 = tpu.matmul %118, %119, %cst_48 {dimension_numbers = #tpu.dot_dimension_numbers<[1], [0], [0], [1], [0, 0, 1, 1], [], []>} : vector<2x32xbf16>, vector<32x128xbf16>, vector<2x128xf32> -> vector<2x128xf32>
    %121 = arith.index_cast %68 : i32 to index
    %c0_49 = arith.constant 0 : index
    %c0_50 = arith.constant 0 : index
    %122 = vector.load %arg14[%121, %c0_49, %c0_50] : memref<8x2x128xf32, #tpu.memory_space<vmem>>, vector<1x2x128xf32>
    %123 = vector.shape_cast %122 : vector<1x2x128xf32> to vector<2x128xf32>
    %124 = vector.shape_cast %120 : vector<2x128xf32> to vector<1x2x128xf32>
    tpu.vector_store %arg14[%121, %c0_49, %c0_50], %124 {strides = array<i32>} : memref<8x2x128xf32, #tpu.memory_space<vmem>>, vector<1x2x128xf32>,
    %c1_i32 = arith.constant 1 : i32
    %125 = arith.index_cast %c1_i32 : i32 to index
    %c0_51 = arith.constant 0 : index
    %c0_52 = arith.constant 0 : index
    %126 = vector.load %arg1[%125, %c0_51, %c0_52] : memref<8x2x32xbf16, #tpu.memory_space<vmem>>, vector<1x2x32xbf16>
    %127 = vector.shape_cast %126 : vector<1x2x32xbf16> to vector<2x32xbf16>
    %c0_53 = arith.constant 0 : index
    %c0_54 = arith.constant 0 : index
    %128 = vector.load %arg3[%c0_53, %c0_54] : memref<32x128xbf16, #tpu.memory_space<vmem>>, vector<32x128xbf16>
    %cst_55 = arith.constant dense<0.000000e+00> : vector<2x128xf32>
    %129 = tpu.matmul %127, %128, %cst_55 {dimension_numbers = #tpu.dot_dimension_numbers<[1], [0], [0], [1], [0, 0, 1, 1], [], []>} : vector<2x32xbf16>, vector<32x128xbf16>, vector<2x128xf32> -> vector<2x128xf32>
    %130 = arith.truncf %51 : vector<2x32xf32> to vector<2x32xbf16>
    %c0_56 = arith.constant 0 : index
    %c0_57 = arith.constant 0 : index
    %131 = vector.load %arg4[%c0_56, %c0_57] : memref<32x128xbf16, #tpu.memory_space<vmem>>, vector<32x128xbf16>
    %cst_58 = arith.constant dense<0.000000e+00> : vector<2x128xf32>
    %132 = tpu.matmul %130, %131, %cst_58 {dimension_numbers = #tpu.dot_dimension_numbers<[1], [0], [0], [1], [0, 0, 1, 1], [], []>} : vector<2x32xbf16>, vector<32x128xbf16>, vector<2x128xf32> -> vector<2x128xf32>
    %133 = arith.addf %129, %132 : vector<2x128xf32>
    %c0_59 = arith.constant 0 : index
    %c0_60 = arith.constant 0 : index
    %134 = vector.load %arg5[%c0_59, %c0_60] : memref<1x128xf32, #tpu.memory_space<vmem>>, vector<1x128xf32>
    %135 = vector.broadcast %134 : vector<1x128xf32> to vector<2x128xf32>
    %136 = arith.addf %133, %135 : vector<2x128xf32>
    %137 = vector.extract_strided_slice %136 {offsets = [0, 0], sizes = [2, 32], strides = [1, 1]} : vector<2x128xf32> to vector<2x32xf32>
    %138 = arith.negf %137 : vector<2x32xf32>
    %139 = math.exp %138 : vector<2x32xf32>
    %cst_61 = arith.constant 1.000000e+00 : f32
    %140 = vector.broadcast %cst_61 : f32 to vector<2x32xf32>
    %141 = arith.addf %140, %139 : vector<2x32xf32>
    %142 = arith.divf %140, %141 : vector<2x32xf32>
    %143 = vector.extract_strided_slice %136 {offsets = [0, 32], sizes = [2, 32], strides = [1, 1]} : vector<2x128xf32> to vector<2x32xf32>
    %144 = arith.negf %143 : vector<2x32xf32>
    %145 = math.exp %144 : vector<2x32xf32>
    %cst_62 = arith.constant 1.000000e+00 : f32
    %146 = vector.broadcast %cst_62 : f32 to vector<2x32xf32>
    %147 = arith.addf %146, %145 : vector<2x32xf32>
    %148 = arith.divf %146, %147 : vector<2x32xf32>
    %149 = vector.extract_strided_slice %136 {offsets = [0, 64], sizes = [2, 32], strides = [1, 1]} : vector<2x128xf32> to vector<2x32xf32>
    %150 = math.tanh %149 : vector<2x32xf32>
    %151 = vector.extract_strided_slice %136 {offsets = [0, 96], sizes = [2, 32], strides = [1, 1]} : vector<2x128xf32> to vector<2x32xf32>
    %152 = arith.negf %151 : vector<2x32xf32>
    %153 = math.exp %152 : vector<2x32xf32>
    %cst_63 = arith.constant 1.000000e+00 : f32
    %154 = vector.broadcast %cst_63 : f32 to vector<2x32xf32>
    %155 = arith.addf %154, %153 : vector<2x32xf32>
    %156 = arith.divf %154, %155 : vector<2x32xf32>
    %157 = arith.mulf %148, %54 : vector<2x32xf32>
    %158 = arith.mulf %142, %150 : vector<2x32xf32>
    %159 = arith.addf %157, %158 : vector<2x32xf32>
    %160 = math.tanh %159 : vector<2x32xf32>
    %161 = arith.mulf %156, %160 : vector<2x32xf32>
    %162 = vector.broadcast %c1_i32 : i32 to vector<2x1xi32>
    %163 = arith.cmpi sgt, %0, %162 : vector<2x1xi32>
    %164 = vector.shape_cast %163 : vector<2x1xi1> to vector<2x1xi1>
    %165 = vector.broadcast %164 : vector<2x1xi1> to vector<2x32xi1>
    %166 = arith.select %165, %161, %51 : vector<2x32xi1>, vector<2x32xf32>
    %167 = vector.shape_cast %163 : vector<2x1xi1> to vector<2x1xi1>
    %168 = vector.broadcast %167 : vector<2x1xi1> to vector<2x32xi1>
    %169 = arith.select %168, %159, %54 : vector<2x32xi1>, vector<2x32xf32>
    %cst_64 = arith.constant 0.000000e+00 : f32
    %170 = vector.shape_cast %163 : vector<2x1xi1> to vector<2x1xi1>
    %171 = vector.broadcast %170 : vector<2x1xi1> to vector<2x32xi1>
    %172 = vector.broadcast %cst_64 : f32 to vector<2x32xf32>
    %173 = arith.select %171, %166, %172 : vector<2x32xi1>, vector<2x32xf32>
    %174 = arith.truncf %173 : vector<2x32xf32> to vector<2x32xbf16>
    %c0_65 = arith.constant 0 : index
    %c0_66 = arith.constant 0 : index
    %175 = vector.load %arg11[%c0_65, %c0_66] : memref<32x128xbf16, #tpu.memory_space<vmem>>, vector<32x128xbf16>
    %cst_67 = arith.constant dense<0.000000e+00> : vector<2x128xf32>
    %176 = tpu.matmul %174, %175, %cst_67 {dimension_numbers = #tpu.dot_dimension_numbers<[1], [0], [0], [1], [0, 0, 1, 1], [], []>} : vector<2x32xbf16>, vector<32x128xbf16>, vector<2x128xf32> -> vector<2x128xf32>
    %177 = vector.broadcast %1 : vector<1x128xf32> to vector<2x128xf32>
    %178 = arith.addf %176, %177 : vector<2x128xf32>
    %179 = arith.index_cast %c1_i32 : i32 to index
    %c0_68 = arith.constant 0 : index
    %c0_69 = arith.constant 0 : index
    %180 = vector.load %arg15[%179, %c0_68, %c0_69] : memref<8x2x128xf32, #tpu.memory_space<vmem>>, vector<1x2x128xf32>
    %181 = vector.shape_cast %180 : vector<1x2x128xf32> to vector<2x128xf32>
    %182 = vector.shape_cast %178 : vector<2x128xf32> to vector<1x2x128xf32>
    tpu.vector_store %arg15[%179, %c0_68, %c0_69], %182 {strides = array<i32>} : memref<8x2x128xf32, #tpu.memory_space<vmem>>, vector<1x2x128xf32>,
    %c7_i32_70 = arith.constant 7 : i32
    %183 = arith.subi %c7_i32_70, %c1_i32 : i32
    %184 = arith.index_cast %183 : i32 to index
    %c0_71 = arith.constant 0 : index
    %c0_72 = arith.constant 0 : index
    %185 = vector.load %arg1[%184, %c0_71, %c0_72] : memref<8x2x32xbf16, #tpu.memory_space<vmem>>, vector<1x2x32xbf16>
    %186 = vector.shape_cast %185 : vector<1x2x32xbf16> to vector<2x32xbf16>
    %c0_73 = arith.constant 0 : index
    %c0_74 = arith.constant 0 : index
    %187 = vector.load %arg6[%c0_73, %c0_74] : memref<32x128xbf16, #tpu.memory_space<vmem>>, vector<32x128xbf16>
    %cst_75 = arith.constant dense<0.000000e+00> : vector<2x128xf32>
    %188 = tpu.matmul %186, %187, %cst_75 {dimension_numbers = #tpu.dot_dimension_numbers<[1], [0], [0], [1], [0, 0, 1, 1], [], []>} : vector<2x32xbf16>, vector<32x128xbf16>, vector<2x128xf32> -> vector<2x128xf32>
    %189 = arith.truncf %110 : vector<2x32xf32> to vector<2x32xbf16>
    %c0_76 = arith.constant 0 : index
    %c0_77 = arith.constant 0 : index
    %190 = vector.load %arg7[%c0_76, %c0_77] : memref<32x128xbf16, #tpu.memory_space<vmem>>, vector<32x128xbf16>
    %cst_78 = arith.constant dense<0.000000e+00> : vector<2x128xf32>
    %191 = tpu.matmul %189, %190, %cst_78 {dimension_numbers = #tpu.dot_dimension_numbers<[1], [0], [0], [1], [0, 0, 1, 1], [], []>} : vector<2x32xbf16>, vector<32x128xbf16>, vector<2x128xf32> -> vector<2x128xf32>
    %192 = arith.addf %188, %191 : vector<2x128xf32>
    %c0_79 = arith.constant 0 : index
    %c0_80 = arith.constant 0 : index
    %193 = vector.load %arg8[%c0_79, %c0_80] : memref<1x128xf32, #tpu.memory_space<vmem>>, vector<1x128xf32>
    %194 = vector.broadcast %193 : vector<1x128xf32> to vector<2x128xf32>
    %195 = arith.addf %192, %194 : vector<2x128xf32>
    %196 = vector.extract_strided_slice %195 {offsets = [0, 0], sizes = [2, 32], strides = [1, 1]} : vector<2x128xf32> to vector<2x32xf32>
    %197 = arith.negf %196 : vector<2x32xf32>
    %198 = math.exp %197 : vector<2x32xf32>
    %cst_81 = arith.constant 1.000000e+00 : f32
    %199 = vector.broadcast %cst_81 : f32 to vector<2x32xf32>
    %200 = arith.addf %199, %198 : vector<2x32xf32>
    %201 = arith.divf %199, %200 : vector<2x32xf32>
    %202 = vector.extract_strided_slice %195 {offsets = [0, 32], sizes = [2, 32], strides = [1, 1]} : vector<2x128xf32> to vector<2x32xf32>
    %203 = arith.negf %202 : vector<2x32xf32>
    %204 = math.exp %203 : vector<2x32xf32>
    %cst_82 = arith.constant 1.000000e+00 : f32
    %205 = vector.broadcast %cst_82 : f32 to vector<2x32xf32>
    %206 = arith.addf %205, %204 : vector<2x32xf32>
    %207 = arith.divf %205, %206 : vector<2x32xf32>
    %208 = vector.extract_strided_slice %195 {offsets = [0, 64], sizes = [2, 32], strides = [1, 1]} : vector<2x128xf32> to vector<2x32xf32>
    %209 = math.tanh %208 : vector<2x32xf32>
    %210 = vector.extract_strided_slice %195 {offsets = [0, 96], sizes = [2, 32], strides = [1, 1]} : vector<2x128xf32> to vector<2x32xf32>
    %211 = arith.negf %210 : vector<2x32xf32>
    %212 = math.exp %211 : vector<2x32xf32>
    %cst_83 = arith.constant 1.000000e+00 : f32
    %213 = vector.broadcast %cst_83 : f32 to vector<2x32xf32>
    %214 = arith.addf %213, %212 : vector<2x32xf32>
    %215 = arith.divf %213, %214 : vector<2x32xf32>
    %216 = arith.mulf %207, %113 : vector<2x32xf32>
    %217 = arith.mulf %201, %209 : vector<2x32xf32>
    %218 = arith.addf %216, %217 : vector<2x32xf32>
    %219 = math.tanh %218 : vector<2x32xf32>
    %220 = arith.mulf %215, %219 : vector<2x32xf32>
    %221 = vector.broadcast %183 : i32 to vector<2x1xi32>
    %222 = arith.cmpi sgt, %0, %221 : vector<2x1xi32>
    %223 = vector.shape_cast %222 : vector<2x1xi1> to vector<2x1xi1>
    %224 = vector.broadcast %223 : vector<2x1xi1> to vector<2x32xi1>
    %225 = arith.select %224, %220, %110 : vector<2x32xi1>, vector<2x32xf32>
    %226 = vector.shape_cast %222 : vector<2x1xi1> to vector<2x1xi1>
    %227 = vector.broadcast %226 : vector<2x1xi1> to vector<2x32xi1>
    %228 = arith.select %227, %218, %113 : vector<2x32xi1>, vector<2x32xf32>
    %cst_84 = arith.constant 0.000000e+00 : f32
    %229 = vector.shape_cast %222 : vector<2x1xi1> to vector<2x1xi1>
    %230 = vector.broadcast %229 : vector<2x1xi1> to vector<2x32xi1>
    %231 = vector.broadcast %cst_84 : f32 to vector<2x32xf32>
    %232 = arith.select %230, %225, %231 : vector<2x32xi1>, vector<2x32xf32>
    %233 = arith.truncf %232 : vector<2x32xf32> to vector<2x32xbf16>
    %c0_85 = arith.constant 0 : index
    %c0_86 = arith.constant 0 : index
    %234 = vector.load %arg12[%c0_85, %c0_86] : memref<32x128xbf16, #tpu.memory_space<vmem>>, vector<32x128xbf16>
    %cst_87 = arith.constant dense<0.000000e+00> : vector<2x128xf32>
    %235 = tpu.matmul %233, %234, %cst_87 {dimension_numbers = #tpu.dot_dimension_numbers<[1], [0], [0], [1], [0, 0, 1, 1], [], []>} : vector<2x32xbf16>, vector<32x128xbf16>, vector<2x128xf32> -> vector<2x128xf32>
    %236 = arith.index_cast %183 : i32 to index
    %c0_88 = arith.constant 0 : index
    %c0_89 = arith.constant 0 : index
    %237 = vector.load %arg14[%236, %c0_88, %c0_89] : memref<8x2x128xf32, #tpu.memory_space<vmem>>, vector<1x2x128xf32>
    %238 = vector.shape_cast %237 : vector<1x2x128xf32> to vector<2x128xf32>
    %239 = vector.shape_cast %235 : vector<2x128xf32> to vector<1x2x128xf32>
    tpu.vector_store %arg14[%236, %c0_88, %c0_89], %239 {strides = array<i32>} : memref<8x2x128xf32, #tpu.memory_space<vmem>>, vector<1x2x128xf32>,
    %c2_i32 = arith.constant 2 : i32
    %240 = arith.index_cast %c2_i32 : i32 to index
    %c0_90 = arith.constant 0 : index
    %c0_91 = arith.constant 0 : index
    %241 = vector.load %arg1[%240, %c0_90, %c0_91] : memref<8x2x32xbf16, #tpu.memory_space<vmem>>, vector<1x2x32xbf16>
    %242 = vector.shape_cast %241 : vector<1x2x32xbf16> to vector<2x32xbf16>
    %c0_92 = arith.constant 0 : index
    %c0_93 = arith.constant 0 : index
    %243 = vector.load %arg3[%c0_92, %c0_93] : memref<32x128xbf16, #tpu.memory_space<vmem>>, vector<32x128xbf16>
    %cst_94 = arith.constant dense<0.000000e+00> : vector<2x128xf32>
    %244 = tpu.matmul %242, %243, %cst_94 {dimension_numbers = #tpu.dot_dimension_numbers<[1], [0], [0], [1], [0, 0, 1, 1], [], []>} : vector<2x32xbf16>, vector<32x128xbf16>, vector<2x128xf32> -> vector<2x128xf32>
    %245 = arith.truncf %166 : vector<2x32xf32> to vector<2x32xbf16>
    %c0_95 = arith.constant 0 : index
    %c0_96 = arith.constant 0 : index
    %246 = vector.load %arg4[%c0_95, %c0_96] : memref<32x128xbf16, #tpu.memory_space<vmem>>, vector<32x128xbf16>
    %cst_97 = arith.constant dense<0.000000e+00> : vector<2x128xf32>
    %247 = tpu.matmul %245, %246, %cst_97 {dimension_numbers = #tpu.dot_dimension_numbers<[1], [0], [0], [1], [0, 0, 1, 1], [], []>} : vector<2x32xbf16>, vector<32x128xbf16>, vector<2x128xf32> -> vector<2x128xf32>
    %248 = arith.addf %244, %247 : vector<2x128xf32>
    %c0_98 = arith.constant 0 : index
    %c0_99 = arith.constant 0 : index
    %249 = vector.load %arg5[%c0_98, %c0_99] : memref<1x128xf32, #tpu.memory_space<vmem>>, vector<1x128xf32>
    %250 = vector.broadcast %249 : vector<1x128xf32> to vector<2x128xf32>
    %251 = arith.addf %248, %250 : vector<2x128xf32>
    %252 = vector.extract_strided_slice %251 {offsets = [0, 0], sizes = [2, 32], strides = [1, 1]} : vector<2x128xf32> to vector<2x32xf32>
    %253 = arith.negf %252 : vector<2x32xf32>
    %254 = math.exp %253 : vector<2x32xf32>
    %cst_100 = arith.constant 1.000000e+00 : f32
    %255 = vector.broadcast %cst_100 : f32 to vector<2x32xf32>
    %256 = arith.addf %255, %254 : vector<2x32xf32>
    %257 = arith.divf %255, %256 : vector<2x32xf32>
    %258 = vector.extract_strided_slice %251 {offsets = [0, 32], sizes = [2, 32], strides = [1, 1]} : vector<2x128xf32> to vector<2x32xf32>
    %259 = arith.negf %258 : vector<2x32xf32>
    %260 = math.exp %259 : vector<2x32xf32>
    %cst_101 = arith.constant 1.000000e+00 : f32
    %261 = vector.broadcast %cst_101 : f32 to vector<2x32xf32>
    %262 = arith.addf %261, %260 : vector<2x32xf32>
    %263 = arith.divf %261, %262 : vector<2x32xf32>
    %264 = vector.extract_strided_slice %251 {offsets = [0, 64], sizes = [2, 32], strides = [1, 1]} : vector<2x128xf32> to vector<2x32xf32>
    %265 = math.tanh %264 : vector<2x32xf32>
    %266 = vector.extract_strided_slice %251 {offsets = [0, 96], sizes = [2, 32], strides = [1, 1]} : vector<2x128xf32> to vector<2x32xf32>
    %267 = arith.negf %266 : vector<2x32xf32>
    %268 = math.exp %267 : vector<2x32xf32>
    %cst_102 = arith.constant 1.000000e+00 : f32
    %269 = vector.broadcast %cst_102 : f32 to vector<2x32xf32>
    %270 = arith.addf %269, %268 : vector<2x32xf32>
    %271 = arith.divf %269, %270 : vector<2x32xf32>
    %272 = arith.mulf %263, %169 : vector<2x32xf32>
    %273 = arith.mulf %257, %265 : vector<2x32xf32>
    %274 = arith.addf %272, %273 : vector<2x32xf32>
    %275 = math.tanh %274 : vector<2x32xf32>
    %276 = arith.mulf %271, %275 : vector<2x32xf32>
    %277 = vector.broadcast %c2_i32 : i32 to vector<2x1xi32>
    %278 = arith.cmpi sgt, %0, %277 : vector<2x1xi32>
    %279 = vector.shape_cast %278 : vector<2x1xi1> to vector<2x1xi1>
    %280 = vector.broadcast %279 : vector<2x1xi1> to vector<2x32xi1>
    %281 = arith.select %280, %276, %166 : vector<2x32xi1>, vector<2x32xf32>
    %282 = vector.shape_cast %278 : vector<2x1xi1> to vector<2x1xi1>
    %283 = vector.broadcast %282 : vector<2x1xi1> to vector<2x32xi1>
    %284 = arith.select %283, %274, %169 : vector<2x32xi1>, vector<2x32xf32>
    %cst_103 = arith.constant 0.000000e+00 : f32
    %285 = vector.shape_cast %278 : vector<2x1xi1> to vector<2x1xi1>
    %286 = vector.broadcast %285 : vector<2x1xi1> to vector<2x32xi1>
    %287 = vector.broadcast %cst_103 : f32 to vector<2x32xf32>
    %288 = arith.select %286, %281, %287 : vector<2x32xi1>, vector<2x32xf32>
    %289 = arith.truncf %288 : vector<2x32xf32> to vector<2x32xbf16>
    %c0_104 = arith.constant 0 : index
    %c0_105 = arith.constant 0 : index
    %290 = vector.load %arg11[%c0_104, %c0_105] : memref<32x128xbf16, #tpu.memory_space<vmem>>, vector<32x128xbf16>
    %cst_106 = arith.constant dense<0.000000e+00> : vector<2x128xf32>
    %291 = tpu.matmul %289, %290, %cst_106 {dimension_numbers = #tpu.dot_dimension_numbers<[1], [0], [0], [1], [0, 0, 1, 1], [], []>} : vector<2x32xbf16>, vector<32x128xbf16>, vector<2x128xf32> -> vector<2x128xf32>
    %292 = vector.broadcast %1 : vector<1x128xf32> to vector<2x128xf32>
    %293 = arith.addf %291, %292 : vector<2x128xf32>
    %294 = arith.index_cast %c2_i32 : i32 to index
    %c0_107 = arith.constant 0 : index
    %c0_108 = arith.constant 0 : index
    %295 = vector.load %arg15[%294, %c0_107, %c0_108] : memref<8x2x128xf32, #tpu.memory_space<vmem>>, vector<1x2x128xf32>
    %296 = vector.shape_cast %295 : vector<1x2x128xf32> to vector<2x128xf32>
    %297 = vector.shape_cast %293 : vector<2x128xf32> to vector<1x2x128xf32>
    tpu.vector_store %arg15[%294, %c0_107, %c0_108], %297 {strides = array<i32>} : memref<8x2x128xf32, #tpu.memory_space<vmem>>, vector<1x2x128xf32>,
    %c7_i32_109 = arith.constant 7 : i32
    %298 = arith.subi %c7_i32_109, %c2_i32 : i32
    %299 = arith.index_cast %298 : i32 to index
    %c0_110 = arith.constant 0 : index
    %c0_111 = arith.constant 0 : index
    %300 = vector.load %arg1[%299, %c0_110, %c0_111] : memref<8x2x32xbf16, #tpu.memory_space<vmem>>, vector<1x2x32xbf16>
    %301 = vector.shape_cast %300 : vector<1x2x32xbf16> to vector<2x32xbf16>
    %c0_112 = arith.constant 0 : index
    %c0_113 = arith.constant 0 : index
    %302 = vector.load %arg6[%c0_112, %c0_113] : memref<32x128xbf16, #tpu.memory_space<vmem>>, vector<32x128xbf16>
    %cst_114 = arith.constant dense<0.000000e+00> : vector<2x128xf32>
    %303 = tpu.matmul %301, %302, %cst_114 {dimension_numbers = #tpu.dot_dimension_numbers<[1], [0], [0], [1], [0, 0, 1, 1], [], []>} : vector<2x32xbf16>, vector<32x128xbf16>, vector<2x128xf32> -> vector<2x128xf32>
    %304 = arith.truncf %225 : vector<2x32xf32> to vector<2x32xbf16>
    %c0_115 = arith.constant 0 : index
    %c0_116 = arith.constant 0 : index
    %305 = vector.load %arg7[%c0_115, %c0_116] : memref<32x128xbf16, #tpu.memory_space<vmem>>, vector<32x128xbf16>
    %cst_117 = arith.constant dense<0.000000e+00> : vector<2x128xf32>
    %306 = tpu.matmul %304, %305, %cst_117 {dimension_numbers = #tpu.dot_dimension_numbers<[1], [0], [0], [1], [0, 0, 1, 1], [], []>} : vector<2x32xbf16>, vector<32x128xbf16>, vector<2x128xf32> -> vector<2x128xf32>
    %307 = arith.addf %303, %306 : vector<2x128xf32>
    %c0_118 = arith.constant 0 : index
    %c0_119 = arith.constant 0 : index
    %308 = vector.load %arg8[%c0_118, %c0_119] : memref<1x128xf32, #tpu.memory_space<vmem>>, vector<1x128xf32>
    %309 = vector.broadcast %308 : vector<1x128xf32> to vector<2x128xf32>
    %310 = arith.addf %307, %309 : vector<2x128xf32>
    %311 = vector.extract_strided_slice %310 {offsets = [0, 0], sizes = [2, 32], strides = [1, 1]} : vector<2x128xf32> to vector<2x32xf32>
    %312 = arith.negf %311 : vector<2x32xf32>
    %313 = math.exp %312 : vector<2x32xf32>
    %cst_120 = arith.constant 1.000000e+00 : f32
    %314 = vector.broadcast %cst_120 : f32 to vector<2x32xf32>
    %315 = arith.addf %314, %313 : vector<2x32xf32>
    %316 = arith.divf %314, %315 : vector<2x32xf32>
    %317 = vector.extract_strided_slice %310 {offsets = [0, 32], sizes = [2, 32], strides = [1, 1]} : vector<2x128xf32> to vector<2x32xf32>
    %318 = arith.negf %317 : vector<2x32xf32>
    %319 = math.exp %318 : vector<2x32xf32>
    %cst_121 = arith.constant 1.000000e+00 : f32
    %320 = vector.broadcast %cst_121 : f32 to vector<2x32xf32>
    %321 = arith.addf %320, %319 : vector<2x32xf32>
    %322 = arith.divf %320, %321 : vector<2x32xf32>
    %323 = vector.extract_strided_slice %310 {offsets = [0, 64], sizes = [2, 32], strides = [1, 1]} : vector<2x128xf32> to vector<2x32xf32>
    %324 = math.tanh %323 : vector<2x32xf32>
    %325 = vector.extract_strided_slice %310 {offsets = [0, 96], sizes = [2, 32], strides = [1, 1]} : vector<2x128xf32> to vector<2x32xf32>
    %326 = arith.negf %325 : vector<2x32xf32>
    %327 = math.exp %326 : vector<2x32xf32>
    %cst_122 = arith.constant 1.000000e+00 : f32
    %328 = vector.broadcast %cst_122 : f32 to vector<2x32xf32>
    %329 = arith.addf %328, %327 : vector<2x32xf32>
    %330 = arith.divf %328, %329 : vector<2x32xf32>
    %331 = arith.mulf %322, %228 : vector<2x32xf32>
    %332 = arith.mulf %316, %324 : vector<2x32xf32>
    %333 = arith.addf %331, %332 : vector<2x32xf32>
    %334 = math.tanh %333 : vector<2x32xf32>
    %335 = arith.mulf %330, %334 : vector<2x32xf32>
    %336 = vector.broadcast %298 : i32 to vector<2x1xi32>
    %337 = arith.cmpi sgt, %0, %336 : vector<2x1xi32>
    %338 = vector.shape_cast %337 : vector<2x1xi1> to vector<2x1xi1>
    %339 = vector.broadcast %338 : vector<2x1xi1> to vector<2x32xi1>
    %340 = arith.select %339, %335, %225 : vector<2x32xi1>, vector<2x32xf32>
    %341 = vector.shape_cast %337 : vector<2x1xi1> to vector<2x1xi1>
    %342 = vector.broadcast %341 : vector<2x1xi1> to vector<2x32xi1>
    %343 = arith.select %342, %333, %228 : vector<2x32xi1>, vector<2x32xf32>
    %cst_123 = arith.constant 0.000000e+00 : f32
    %344 = vector.shape_cast %337 : vector<2x1xi1> to vector<2x1xi1>
    %345 = vector.broadcast %344 : vector<2x1xi1> to vector<2x32xi1>
    %346 = vector.broadcast %cst_123 : f32 to vector<2x32xf32>
    %347 = arith.select %345, %340, %346 : vector<2x32xi1>, vector<2x32xf32>
    %348 = arith.truncf %347 : vector<2x32xf32> to vector<2x32xbf16>
    %c0_124 = arith.constant 0 : index
    %c0_125 = arith.constant 0 : index
    %349 = vector.load %arg12[%c0_124, %c0_125] : memref<32x128xbf16, #tpu.memory_space<vmem>>, vector<32x128xbf16>
    %cst_126 = arith.constant dense<0.000000e+00> : vector<2x128xf32>
    %350 = tpu.matmul %348, %349, %cst_126 {dimension_numbers = #tpu.dot_dimension_numbers<[1], [0], [0], [1], [0, 0, 1, 1], [], []>} : vector<2x32xbf16>, vector<32x128xbf16>, vector<2x128xf32> -> vector<2x128xf32>
    %351 = arith.index_cast %298 : i32 to index
    %c0_127 = arith.constant 0 : index
    %c0_128 = arith.constant 0 : index
    %352 = vector.load %arg14[%351, %c0_127, %c0_128] : memref<8x2x128xf32, #tpu.memory_space<vmem>>, vector<1x2x128xf32>
    %353 = vector.shape_cast %352 : vector<1x2x128xf32> to vector<2x128xf32>
    %354 = vector.shape_cast %350 : vector<2x128xf32> to vector<1x2x128xf32>
    tpu.vector_store %arg14[%351, %c0_127, %c0_128], %354 {strides = array<i32>} : memref<8x2x128xf32, #tpu.memory_space<vmem>>, vector<1x2x128xf32>,
    %c3_i32 = arith.constant 3 : i32
    %355 = arith.index_cast %c3_i32 : i32 to index
    %c0_129 = arith.constant 0 : index
    %c0_130 = arith.constant 0 : index
    %356 = vector.load %arg1[%355, %c0_129, %c0_130] : memref<8x2x32xbf16, #tpu.memory_space<vmem>>, vector<1x2x32xbf16>
    %357 = vector.shape_cast %356 : vector<1x2x32xbf16> to vector<2x32xbf16>
    %c0_131 = arith.constant 0 : index
    %c0_132 = arith.constant 0 : index
    %358 = vector.load %arg3[%c0_131, %c0_132] : memref<32x128xbf16, #tpu.memory_space<vmem>>, vector<32x128xbf16>
    %cst_133 = arith.constant dense<0.000000e+00> : vector<2x128xf32>
    %359 = tpu.matmul %357, %358, %cst_133 {dimension_numbers = #tpu.dot_dimension_numbers<[1], [0], [0], [1], [0, 0, 1, 1], [], []>} : vector<2x32xbf16>, vector<32x128xbf16>, vector<2x128xf32> -> vector<2x128xf32>
    %360 = arith.truncf %281 : vector<2x32xf32> to vector<2x32xbf16>
    %c0_134 = arith.constant 0 : index
    %c0_135 = arith.constant 0 : index
    %361 = vector.load %arg4[%c0_134, %c0_135] : memref<32x128xbf16, #tpu.memory_space<vmem>>, vector<32x128xbf16>
    %cst_136 = arith.constant dense<0.000000e+00> : vector<2x128xf32>
    %362 = tpu.matmul %360, %361, %cst_136 {dimension_numbers = #tpu.dot_dimension_numbers<[1], [0], [0], [1], [0, 0, 1, 1], [], []>} : vector<2x32xbf16>, vector<32x128xbf16>, vector<2x128xf32> -> vector<2x128xf32>
    %363 = arith.addf %359, %362 : vector<2x128xf32>
    %c0_137 = arith.constant 0 : index
    %c0_138 = arith.constant 0 : index
    %364 = vector.load %arg5[%c0_137, %c0_138] : memref<1x128xf32, #tpu.memory_space<vmem>>, vector<1x128xf32>
    %365 = vector.broadcast %364 : vector<1x128xf32> to vector<2x128xf32>
    %366 = arith.addf %363, %365 : vector<2x128xf32>
    %367 = vector.extract_strided_slice %366 {offsets = [0, 0], sizes = [2, 32], strides = [1, 1]} : vector<2x128xf32> to vector<2x32xf32>
    %368 = arith.negf %367 : vector<2x32xf32>
    %369 = math.exp %368 : vector<2x32xf32>
    %cst_139 = arith.constant 1.000000e+00 : f32
    %370 = vector.broadcast %cst_139 : f32 to vector<2x32xf32>
    %371 = arith.addf %370, %369 : vector<2x32xf32>
    %372 = arith.divf %370, %371 : vector<2x32xf32>
    %373 = vector.extract_strided_slice %366 {offsets = [0, 32], sizes = [2, 32], strides = [1, 1]} : vector<2x128xf32> to vector<2x32xf32>
    %374 = arith.negf %373 : vector<2x32xf32>
    %375 = math.exp %374 : vector<2x32xf32>
    %cst_140 = arith.constant 1.000000e+00 : f32
    %376 = vector.broadcast %cst_140 : f32 to vector<2x32xf32>
    %377 = arith.addf %376, %375 : vector<2x32xf32>
    %378 = arith.divf %376, %377 : vector<2x32xf32>
    %379 = vector.extract_strided_slice %366 {offsets = [0, 64], sizes = [2, 32], strides = [1, 1]} : vector<2x128xf32> to vector<2x32xf32>
    %380 = math.tanh %379 : vector<2x32xf32>
    %381 = vector.extract_strided_slice %366 {offsets = [0, 96], sizes = [2, 32], strides = [1, 1]} : vector<2x128xf32> to vector<2x32xf32>
    %382 = arith.negf %381 : vector<2x32xf32>
    %383 = math.exp %382 : vector<2x32xf32>
    %cst_141 = arith.constant 1.000000e+00 : f32
    %384 = vector.broadcast %cst_141 : f32 to vector<2x32xf32>
    %385 = arith.addf %384, %383 : vector<2x32xf32>
    %386 = arith.divf %384, %385 : vector<2x32xf32>
    %387 = arith.mulf %378, %284 : vector<2x32xf32>
    %388 = arith.mulf %372, %380 : vector<2x32xf32>
    %389 = arith.addf %387, %388 : vector<2x32xf32>
    %390 = math.tanh %389 : vector<2x32xf32>
    %391 = arith.mulf %386, %390 : vector<2x32xf32>
    %392 = vector.broadcast %c3_i32 : i32 to vector<2x1xi32>
    %393 = arith.cmpi sgt, %0, %392 : vector<2x1xi32>
    %394 = vector.shape_cast %393 : vector<2x1xi1> to vector<2x1xi1>
    %395 = vector.broadcast %394 : vector<2x1xi1> to vector<2x32xi1>
    %396 = arith.select %395, %391, %281 : vector<2x32xi1>, vector<2x32xf32>
    %397 = vector.shape_cast %393 : vector<2x1xi1> to vector<2x1xi1>
    %398 = vector.broadcast %397 : vector<2x1xi1> to vector<2x32xi1>
    %399 = arith.select %398, %389, %284 : vector<2x32xi1>, vector<2x32xf32>
    %cst_142 = arith.constant 0.000000e+00 : f32
    %400 = vector.shape_cast %393 : vector<2x1xi1> to vector<2x1xi1>
    %401 = vector.broadcast %400 : vector<2x1xi1> to vector<2x32xi1>
    %402 = vector.broadcast %cst_142 : f32 to vector<2x32xf32>
    %403 = arith.select %401, %396, %402 : vector<2x32xi1>, vector<2x32xf32>
    %404 = arith.truncf %403 : vector<2x32xf32> to vector<2x32xbf16>
    %c0_143 = arith.constant 0 : index
    %c0_144 = arith.constant 0 : index
    %405 = vector.load %arg11[%c0_143, %c0_144] : memref<32x128xbf16, #tpu.memory_space<vmem>>, vector<32x128xbf16>
    %cst_145 = arith.constant dense<0.000000e+00> : vector<2x128xf32>
    %406 = tpu.matmul %404, %405, %cst_145 {dimension_numbers = #tpu.dot_dimension_numbers<[1], [0], [0], [1], [0, 0, 1, 1], [], []>} : vector<2x32xbf16>, vector<32x128xbf16>, vector<2x128xf32> -> vector<2x128xf32>
    %407 = vector.broadcast %1 : vector<1x128xf32> to vector<2x128xf32>
    %408 = arith.addf %406, %407 : vector<2x128xf32>
    %409 = arith.index_cast %c3_i32 : i32 to index
    %c0_146 = arith.constant 0 : index
    %c0_147 = arith.constant 0 : index
    %410 = vector.load %arg15[%409, %c0_146, %c0_147] : memref<8x2x128xf32, #tpu.memory_space<vmem>>, vector<1x2x128xf32>
    %411 = vector.shape_cast %410 : vector<1x2x128xf32> to vector<2x128xf32>
    %412 = vector.shape_cast %408 : vector<2x128xf32> to vector<1x2x128xf32>
    tpu.vector_store %arg15[%409, %c0_146, %c0_147], %412 {strides = array<i32>} : memref<8x2x128xf32, #tpu.memory_space<vmem>>, vector<1x2x128xf32>,
    %c7_i32_148 = arith.constant 7 : i32
    %413 = arith.subi %c7_i32_148, %c3_i32 : i32
    %414 = arith.index_cast %413 : i32 to index
    %c0_149 = arith.constant 0 : index
    %c0_150 = arith.constant 0 : index
    %415 = vector.load %arg1[%414, %c0_149, %c0_150] : memref<8x2x32xbf16, #tpu.memory_space<vmem>>, vector<1x2x32xbf16>
    %416 = vector.shape_cast %415 : vector<1x2x32xbf16> to vector<2x32xbf16>
    %c0_151 = arith.constant 0 : index
    %c0_152 = arith.constant 0 : index
    %417 = vector.load %arg6[%c0_151, %c0_152] : memref<32x128xbf16, #tpu.memory_space<vmem>>, vector<32x128xbf16>
    %cst_153 = arith.constant dense<0.000000e+00> : vector<2x128xf32>
    %418 = tpu.matmul %416, %417, %cst_153 {dimension_numbers = #tpu.dot_dimension_numbers<[1], [0], [0], [1], [0, 0, 1, 1], [], []>} : vector<2x32xbf16>, vector<32x128xbf16>, vector<2x128xf32> -> vector<2x128xf32>
    %419 = arith.truncf %340 : vector<2x32xf32> to vector<2x32xbf16>
    %c0_154 = arith.constant 0 : index
    %c0_155 = arith.constant 0 : index
    %420 = vector.load %arg7[%c0_154, %c0_155] : memref<32x128xbf16, #tpu.memory_space<vmem>>, vector<32x128xbf16>
    %cst_156 = arith.constant dense<0.000000e+00> : vector<2x128xf32>
    %421 = tpu.matmul %419, %420, %cst_156 {dimension_numbers = #tpu.dot_dimension_numbers<[1], [0], [0], [1], [0, 0, 1, 1], [], []>} : vector<2x32xbf16>, vector<32x128xbf16>, vector<2x128xf32> -> vector<2x128xf32>
    %422 = arith.addf %418, %421 : vector<2x128xf32>
    %c0_157 = arith.constant 0 : index
    %c0_158 = arith.constant 0 : index
    %423 = vector.load %arg8[%c0_157, %c0_158] : memref<1x128xf32, #tpu.memory_space<vmem>>, vector<1x128xf32>
    %424 = vector.broadcast %423 : vector<1x128xf32> to vector<2x128xf32>
    %425 = arith.addf %422, %424 : vector<2x128xf32>
    %426 = vector.extract_strided_slice %425 {offsets = [0, 0], sizes = [2, 32], strides = [1, 1]} : vector<2x128xf32> to vector<2x32xf32>
    %427 = arith.negf %426 : vector<2x32xf32>
    %428 = math.exp %427 : vector<2x32xf32>
    %cst_159 = arith.constant 1.000000e+00 : f32
    %429 = vector.broadcast %cst_159 : f32 to vector<2x32xf32>
    %430 = arith.addf %429, %428 : vector<2x32xf32>
    %431 = arith.divf %429, %430 : vector<2x32xf32>
    %432 = vector.extract_strided_slice %425 {offsets = [0, 32], sizes = [2, 32], strides = [1, 1]} : vector<2x128xf32> to vector<2x32xf32>
    %433 = arith.negf %432 : vector<2x32xf32>
    %434 = math.exp %433 : vector<2x32xf32>
    %cst_160 = arith.constant 1.000000e+00 : f32
    %435 = vector.broadcast %cst_160 : f32 to vector<2x32xf32>
    %436 = arith.addf %435, %434 : vector<2x32xf32>
    %437 = arith.divf %435, %436 : vector<2x32xf32>
    %438 = vector.extract_strided_slice %425 {offsets = [0, 64], sizes = [2, 32], strides = [1, 1]} : vector<2x128xf32> to vector<2x32xf32>
    %439 = math.tanh %438 : vector<2x32xf32>
    %440 = vector.extract_strided_slice %425 {offsets = [0, 96], sizes = [2, 32], strides = [1, 1]} : vector<2x128xf32> to vector<2x32xf32>
    %441 = arith.negf %440 : vector<2x32xf32>
    %442 = math.exp %441 : vector<2x32xf32>
    %cst_161 = arith.constant 1.000000e+00 : f32
    %443 = vector.broadcast %cst_161 : f32 to vector<2x32xf32>
    %444 = arith.addf %443, %442 : vector<2x32xf32>
    %445 = arith.divf %443, %444 : vector<2x32xf32>
    %446 = arith.mulf %437, %343 : vector<2x32xf32>
    %447 = arith.mulf %431, %439 : vector<2x32xf32>
    %448 = arith.addf %446, %447 : vector<2x32xf32>
    %449 = math.tanh %448 : vector<2x32xf32>
    %450 = arith.mulf %445, %449 : vector<2x32xf32>
    %451 = vector.broadcast %413 : i32 to vector<2x1xi32>
    %452 = arith.cmpi sgt, %0, %451 : vector<2x1xi32>
    %453 = vector.shape_cast %452 : vector<2x1xi1> to vector<2x1xi1>
    %454 = vector.broadcast %453 : vector<2x1xi1> to vector<2x32xi1>
    %455 = arith.select %454, %450, %340 : vector<2x32xi1>, vector<2x32xf32>
    %456 = vector.shape_cast %452 : vector<2x1xi1> to vector<2x1xi1>
    %457 = vector.broadcast %456 : vector<2x1xi1> to vector<2x32xi1>
    %458 = arith.select %457, %448, %343 : vector<2x32xi1>, vector<2x32xf32>
    %cst_162 = arith.constant 0.000000e+00 : f32
    %459 = vector.shape_cast %452 : vector<2x1xi1> to vector<2x1xi1>
    %460 = vector.broadcast %459 : vector<2x1xi1> to vector<2x32xi1>
    %461 = vector.broadcast %cst_162 : f32 to vector<2x32xf32>
    %462 = arith.select %460, %455, %461 : vector<2x32xi1>, vector<2x32xf32>
    %463 = arith.truncf %462 : vector<2x32xf32> to vector<2x32xbf16>
    %c0_163 = arith.constant 0 : index
    %c0_164 = arith.constant 0 : index
    %464 = vector.load %arg12[%c0_163, %c0_164] : memref<32x128xbf16, #tpu.memory_space<vmem>>, vector<32x128xbf16>
    %cst_165 = arith.constant dense<0.000000e+00> : vector<2x128xf32>
    %465 = tpu.matmul %463, %464, %cst_165 {dimension_numbers = #tpu.dot_dimension_numbers<[1], [0], [0], [1], [0, 0, 1, 1], [], []>} : vector<2x32xbf16>, vector<32x128xbf16>, vector<2x128xf32> -> vector<2x128xf32>
    %466 = arith.index_cast %413 : i32 to index
    %c0_166 = arith.constant 0 : index
    %c0_167 = arith.constant 0 : index
    %467 = vector.load %arg14[%466, %c0_166, %c0_167] : memref<8x2x128xf32, #tpu.memory_space<vmem>>, vector<1x2x128xf32>
    %468 = vector.shape_cast %467 : vector<1x2x128xf32> to vector<2x128xf32>
    %469 = vector.shape_cast %465 : vector<2x128xf32> to vector<1x2x128xf32>
    tpu.vector_store %arg14[%466, %c0_166, %c0_167], %469 {strides = array<i32>} : memref<8x2x128xf32, #tpu.memory_space<vmem>>, vector<1x2x128xf32>,
    %c4_i32 = arith.constant 4 : i32
    %470 = arith.index_cast %c4_i32 : i32 to index
    %c0_168 = arith.constant 0 : index
    %c0_169 = arith.constant 0 : index
    %471 = vector.load %arg1[%470, %c0_168, %c0_169] : memref<8x2x32xbf16, #tpu.memory_space<vmem>>, vector<1x2x32xbf16>
    %472 = vector.shape_cast %471 : vector<1x2x32xbf16> to vector<2x32xbf16>
    %c0_170 = arith.constant 0 : index
    %c0_171 = arith.constant 0 : index
    %473 = vector.load %arg3[%c0_170, %c0_171] : memref<32x128xbf16, #tpu.memory_space<vmem>>, vector<32x128xbf16>
    %cst_172 = arith.constant dense<0.000000e+00> : vector<2x128xf32>
    %474 = tpu.matmul %472, %473, %cst_172 {dimension_numbers = #tpu.dot_dimension_numbers<[1], [0], [0], [1], [0, 0, 1, 1], [], []>} : vector<2x32xbf16>, vector<32x128xbf16>, vector<2x128xf32> -> vector<2x128xf32>
    %475 = arith.truncf %396 : vector<2x32xf32> to vector<2x32xbf16>
    %c0_173 = arith.constant 0 : index
    %c0_174 = arith.constant 0 : index
    %476 = vector.load %arg4[%c0_173, %c0_174] : memref<32x128xbf16, #tpu.memory_space<vmem>>, vector<32x128xbf16>
    %cst_175 = arith.constant dense<0.000000e+00> : vector<2x128xf32>
    %477 = tpu.matmul %475, %476, %cst_175 {dimension_numbers = #tpu.dot_dimension_numbers<[1], [0], [0], [1], [0, 0, 1, 1], [], []>} : vector<2x32xbf16>, vector<32x128xbf16>, vector<2x128xf32> -> vector<2x128xf32>
    %478 = arith.addf %474, %477 : vector<2x128xf32>
    %c0_176 = arith.constant 0 : index
    %c0_177 = arith.constant 0 : index
    %479 = vector.load %arg5[%c0_176, %c0_177] : memref<1x128xf32, #tpu.memory_space<vmem>>, vector<1x128xf32>
    %480 = vector.broadcast %479 : vector<1x128xf32> to vector<2x128xf32>
    %481 = arith.addf %478, %480 : vector<2x128xf32>
    %482 = vector.extract_strided_slice %481 {offsets = [0, 0], sizes = [2, 32], strides = [1, 1]} : vector<2x128xf32> to vector<2x32xf32>
    %483 = arith.negf %482 : vector<2x32xf32>
    %484 = math.exp %483 : vector<2x32xf32>
    %cst_178 = arith.constant 1.000000e+00 : f32
    %485 = vector.broadcast %cst_178 : f32 to vector<2x32xf32>
    %486 = arith.addf %485, %484 : vector<2x32xf32>
    %487 = arith.divf %485, %486 : vector<2x32xf32>
    %488 = vector.extract_strided_slice %481 {offsets = [0, 32], sizes = [2, 32], strides = [1, 1]} : vector<2x128xf32> to vector<2x32xf32>
    %489 = arith.negf %488 : vector<2x32xf32>
    %490 = math.exp %489 : vector<2x32xf32>
    %cst_179 = arith.constant 1.000000e+00 : f32
    %491 = vector.broadcast %cst_179 : f32 to vector<2x32xf32>
    %492 = arith.addf %491, %490 : vector<2x32xf32>
    %493 = arith.divf %491, %492 : vector<2x32xf32>
    %494 = vector.extract_strided_slice %481 {offsets = [0, 64], sizes = [2, 32], strides = [1, 1]} : vector<2x128xf32> to vector<2x32xf32>
    %495 = math.tanh %494 : vector<2x32xf32>
    %496 = vector.extract_strided_slice %481 {offsets = [0, 96], sizes = [2, 32], strides = [1, 1]} : vector<2x128xf32> to vector<2x32xf32>
    %497 = arith.negf %496 : vector<2x32xf32>
    %498 = math.exp %497 : vector<2x32xf32>
    %cst_180 = arith.constant 1.000000e+00 : f32
    %499 = vector.broadcast %cst_180 : f32 to vector<2x32xf32>
    %500 = arith.addf %499, %498 : vector<2x32xf32>
    %501 = arith.divf %499, %500 : vector<2x32xf32>
    %502 = arith.mulf %493, %399 : vector<2x32xf32>
    %503 = arith.mulf %487, %495 : vector<2x32xf32>
    %504 = arith.addf %502, %503 : vector<2x32xf32>
    %505 = math.tanh %504 : vector<2x32xf32>
    %506 = arith.mulf %501, %505 : vector<2x32xf32>
    %507 = vector.broadcast %c4_i32 : i32 to vector<2x1xi32>
    %508 = arith.cmpi sgt, %0, %507 : vector<2x1xi32>
    %509 = vector.shape_cast %508 : vector<2x1xi1> to vector<2x1xi1>
    %510 = vector.broadcast %509 : vector<2x1xi1> to vector<2x32xi1>
    %511 = arith.select %510, %506, %396 : vector<2x32xi1>, vector<2x32xf32>
    %512 = vector.shape_cast %508 : vector<2x1xi1> to vector<2x1xi1>
    %513 = vector.broadcast %512 : vector<2x1xi1> to vector<2x32xi1>
    %514 = arith.select %513, %504, %399 : vector<2x32xi1>, vector<2x32xf32>
    %cst_181 = arith.constant 0.000000e+00 : f32
    %515 = vector.shape_cast %508 : vector<2x1xi1> to vector<2x1xi1>
    %516 = vector.broadcast %515 : vector<2x1xi1> to vector<2x32xi1>
    %517 = vector.broadcast %cst_181 : f32 to vector<2x32xf32>
    %518 = arith.select %516, %511, %517 : vector<2x32xi1>, vector<2x32xf32>
    %519 = arith.truncf %518 : vector<2x32xf32> to vector<2x32xbf16>
    %c0_182 = arith.constant 0 : index
    %c0_183 = arith.constant 0 : index
    %520 = vector.load %arg11[%c0_182, %c0_183] : memref<32x128xbf16, #tpu.memory_space<vmem>>, vector<32x128xbf16>
    %cst_184 = arith.constant dense<0.000000e+00> : vector<2x128xf32>
    %521 = tpu.matmul %519, %520, %cst_184 {dimension_numbers = #tpu.dot_dimension_numbers<[1], [0], [0], [1], [0, 0, 1, 1], [], []>} : vector<2x32xbf16>, vector<32x128xbf16>, vector<2x128xf32> -> vector<2x128xf32>
    %522 = vector.broadcast %1 : vector<1x128xf32> to vector<2x128xf32>
    %523 = arith.addf %521, %522 : vector<2x128xf32>
    %524 = arith.index_cast %c4_i32 : i32 to index
    %c0_185 = arith.constant 0 : index
    %c0_186 = arith.constant 0 : index
    %525 = vector.load %arg15[%524, %c0_185, %c0_186] : memref<8x2x128xf32, #tpu.memory_space<vmem>>, vector<1x2x128xf32>
    %526 = vector.shape_cast %525 : vector<1x2x128xf32> to vector<2x128xf32>
    %527 = vector.shape_cast %523 : vector<2x128xf32> to vector<1x2x128xf32>
    tpu.vector_store %arg15[%524, %c0_185, %c0_186], %527 {strides = array<i32>} : memref<8x2x128xf32, #tpu.memory_space<vmem>>, vector<1x2x128xf32>,
    %c7_i32_187 = arith.constant 7 : i32
    %528 = arith.subi %c7_i32_187, %c4_i32 : i32
    %529 = arith.index_cast %528 : i32 to index
    %c0_188 = arith.constant 0 : index
    %c0_189 = arith.constant 0 : index
    %530 = vector.load %arg1[%529, %c0_188, %c0_189] : memref<8x2x32xbf16, #tpu.memory_space<vmem>>, vector<1x2x32xbf16>
    %531 = vector.shape_cast %530 : vector<1x2x32xbf16> to vector<2x32xbf16>
    %c0_190 = arith.constant 0 : index
    %c0_191 = arith.constant 0 : index
    %532 = vector.load %arg6[%c0_190, %c0_191] : memref<32x128xbf16, #tpu.memory_space<vmem>>, vector<32x128xbf16>
    %cst_192 = arith.constant dense<0.000000e+00> : vector<2x128xf32>
    %533 = tpu.matmul %531, %532, %cst_192 {dimension_numbers = #tpu.dot_dimension_numbers<[1], [0], [0], [1], [0, 0, 1, 1], [], []>} : vector<2x32xbf16>, vector<32x128xbf16>, vector<2x128xf32> -> vector<2x128xf32>
    %534 = arith.truncf %455 : vector<2x32xf32> to vector<2x32xbf16>
    %c0_193 = arith.constant 0 : index
    %c0_194 = arith.constant 0 : index
    %535 = vector.load %arg7[%c0_193, %c0_194] : memref<32x128xbf16, #tpu.memory_space<vmem>>, vector<32x128xbf16>
    %cst_195 = arith.constant dense<0.000000e+00> : vector<2x128xf32>
    %536 = tpu.matmul %534, %535, %cst_195 {dimension_numbers = #tpu.dot_dimension_numbers<[1], [0], [0], [1], [0, 0, 1, 1], [], []>} : vector<2x32xbf16>, vector<32x128xbf16>, vector<2x128xf32> -> vector<2x128xf32>
    %537 = arith.addf %533, %536 : vector<2x128xf32>
    %c0_196 = arith.constant 0 : index
    %c0_197 = arith.constant 0 : index
    %538 = vector.load %arg8[%c0_196, %c0_197] : memref<1x128xf32, #tpu.memory_space<vmem>>, vector<1x128xf32>
    %539 = vector.broadcast %538 : vector<1x128xf32> to vector<2x128xf32>
    %540 = arith.addf %537, %539 : vector<2x128xf32>
    %541 = vector.extract_strided_slice %540 {offsets = [0, 0], sizes = [2, 32], strides = [1, 1]} : vector<2x128xf32> to vector<2x32xf32>
    %542 = arith.negf %541 : vector<2x32xf32>
    %543 = math.exp %542 : vector<2x32xf32>
    %cst_198 = arith.constant 1.000000e+00 : f32
    %544 = vector.broadcast %cst_198 : f32 to vector<2x32xf32>
    %545 = arith.addf %544, %543 : vector<2x32xf32>
    %546 = arith.divf %544, %545 : vector<2x32xf32>
    %547 = vector.extract_strided_slice %540 {offsets = [0, 32], sizes = [2, 32], strides = [1, 1]} : vector<2x128xf32> to vector<2x32xf32>
    %548 = arith.negf %547 : vector<2x32xf32>
    %549 = math.exp %548 : vector<2x32xf32>
    %cst_199 = arith.constant 1.000000e+00 : f32
    %550 = vector.broadcast %cst_199 : f32 to vector<2x32xf32>
    %551 = arith.addf %550, %549 : vector<2x32xf32>
    %552 = arith.divf %550, %551 : vector<2x32xf32>
    %553 = vector.extract_strided_slice %540 {offsets = [0, 64], sizes = [2, 32], strides = [1, 1]} : vector<2x128xf32> to vector<2x32xf32>
    %554 = math.tanh %553 : vector<2x32xf32>
    %555 = vector.extract_strided_slice %540 {offsets = [0, 96], sizes = [2, 32], strides = [1, 1]} : vector<2x128xf32> to vector<2x32xf32>
    %556 = arith.negf %555 : vector<2x32xf32>
    %557 = math.exp %556 : vector<2x32xf32>
    %cst_200 = arith.constant 1.000000e+00 : f32
    %558 = vector.broadcast %cst_200 : f32 to vector<2x32xf32>
    %559 = arith.addf %558, %557 : vector<2x32xf32>
    %560 = arith.divf %558, %559 : vector<2x32xf32>
    %561 = arith.mulf %552, %458 : vector<2x32xf32>
    %562 = arith.mulf %546, %554 : vector<2x32xf32>
    %563 = arith.addf %561, %562 : vector<2x32xf32>
    %564 = math.tanh %563 : vector<2x32xf32>
    %565 = arith.mulf %560, %564 : vector<2x32xf32>
    %566 = vector.broadcast %528 : i32 to vector<2x1xi32>
    %567 = arith.cmpi sgt, %0, %566 : vector<2x1xi32>
    %568 = vector.shape_cast %567 : vector<2x1xi1> to vector<2x1xi1>
    %569 = vector.broadcast %568 : vector<2x1xi1> to vector<2x32xi1>
    %570 = arith.select %569, %565, %455 : vector<2x32xi1>, vector<2x32xf32>
    %571 = vector.shape_cast %567 : vector<2x1xi1> to vector<2x1xi1>
    %572 = vector.broadcast %571 : vector<2x1xi1> to vector<2x32xi1>
    %573 = arith.select %572, %563, %458 : vector<2x32xi1>, vector<2x32xf32>
    %cst_201 = arith.constant 0.000000e+00 : f32
    %574 = vector.shape_cast %567 : vector<2x1xi1> to vector<2x1xi1>
    %575 = vector.broadcast %574 : vector<2x1xi1> to vector<2x32xi1>
    %576 = vector.broadcast %cst_201 : f32 to vector<2x32xf32>
    %577 = arith.select %575, %570, %576 : vector<2x32xi1>, vector<2x32xf32>
    %578 = arith.truncf %577 : vector<2x32xf32> to vector<2x32xbf16>
    %c0_202 = arith.constant 0 : index
    %c0_203 = arith.constant 0 : index
    %579 = vector.load %arg12[%c0_202, %c0_203] : memref<32x128xbf16, #tpu.memory_space<vmem>>, vector<32x128xbf16>
    %cst_204 = arith.constant dense<0.000000e+00> : vector<2x128xf32>
    %580 = tpu.matmul %578, %579, %cst_204 {dimension_numbers = #tpu.dot_dimension_numbers<[1], [0], [0], [1], [0, 0, 1, 1], [], []>} : vector<2x32xbf16>, vector<32x128xbf16>, vector<2x128xf32> -> vector<2x128xf32>
    %581 = arith.index_cast %528 : i32 to index
    %c0_205 = arith.constant 0 : index
    %c0_206 = arith.constant 0 : index
    %582 = vector.load %arg14[%581, %c0_205, %c0_206] : memref<8x2x128xf32, #tpu.memory_space<vmem>>, vector<1x2x128xf32>
    %583 = vector.shape_cast %582 : vector<1x2x128xf32> to vector<2x128xf32>
    %584 = vector.shape_cast %580 : vector<2x128xf32> to vector<1x2x128xf32>
    tpu.vector_store %arg14[%581, %c0_205, %c0_206], %584 {strides = array<i32>} : memref<8x2x128xf32, #tpu.memory_space<vmem>>, vector<1x2x128xf32>,
    %c5_i32 = arith.constant 5 : i32
    %585 = arith.index_cast %c5_i32 : i32 to index
    %c0_207 = arith.constant 0 : index
    %c0_208 = arith.constant 0 : index
    %586 = vector.load %arg1[%585, %c0_207, %c0_208] : memref<8x2x32xbf16, #tpu.memory_space<vmem>>, vector<1x2x32xbf16>
    %587 = vector.shape_cast %586 : vector<1x2x32xbf16> to vector<2x32xbf16>
    %c0_209 = arith.constant 0 : index
    %c0_210 = arith.constant 0 : index
    %588 = vector.load %arg3[%c0_209, %c0_210] : memref<32x128xbf16, #tpu.memory_space<vmem>>, vector<32x128xbf16>
    %cst_211 = arith.constant dense<0.000000e+00> : vector<2x128xf32>
    %589 = tpu.matmul %587, %588, %cst_211 {dimension_numbers = #tpu.dot_dimension_numbers<[1], [0], [0], [1], [0, 0, 1, 1], [], []>} : vector<2x32xbf16>, vector<32x128xbf16>, vector<2x128xf32> -> vector<2x128xf32>
    %590 = arith.truncf %511 : vector<2x32xf32> to vector<2x32xbf16>
    %c0_212 = arith.constant 0 : index
    %c0_213 = arith.constant 0 : index
    %591 = vector.load %arg4[%c0_212, %c0_213] : memref<32x128xbf16, #tpu.memory_space<vmem>>, vector<32x128xbf16>
    %cst_214 = arith.constant dense<0.000000e+00> : vector<2x128xf32>
    %592 = tpu.matmul %590, %591, %cst_214 {dimension_numbers = #tpu.dot_dimension_numbers<[1], [0], [0], [1], [0, 0, 1, 1], [], []>} : vector<2x32xbf16>, vector<32x128xbf16>, vector<2x128xf32> -> vector<2x128xf32>
    %593 = arith.addf %589, %592 : vector<2x128xf32>
    %c0_215 = arith.constant 0 : index
    %c0_216 = arith.constant 0 : index
    %594 = vector.load %arg5[%c0_215, %c0_216] : memref<1x128xf32, #tpu.memory_space<vmem>>, vector<1x128xf32>
    %595 = vector.broadcast %594 : vector<1x128xf32> to vector<2x128xf32>
    %596 = arith.addf %593, %595 : vector<2x128xf32>
    %597 = vector.extract_strided_slice %596 {offsets = [0, 0], sizes = [2, 32], strides = [1, 1]} : vector<2x128xf32> to vector<2x32xf32>
    %598 = arith.negf %597 : vector<2x32xf32>
    %599 = math.exp %598 : vector<2x32xf32>
    %cst_217 = arith.constant 1.000000e+00 : f32
    %600 = vector.broadcast %cst_217 : f32 to vector<2x32xf32>
    %601 = arith.addf %600, %599 : vector<2x32xf32>
    %602 = arith.divf %600, %601 : vector<2x32xf32>
    %603 = vector.extract_strided_slice %596 {offsets = [0, 32], sizes = [2, 32], strides = [1, 1]} : vector<2x128xf32> to vector<2x32xf32>
    %604 = arith.negf %603 : vector<2x32xf32>
    %605 = math.exp %604 : vector<2x32xf32>
    %cst_218 = arith.constant 1.000000e+00 : f32
    %606 = vector.broadcast %cst_218 : f32 to vector<2x32xf32>
    %607 = arith.addf %606, %605 : vector<2x32xf32>
    %608 = arith.divf %606, %607 : vector<2x32xf32>
    %609 = vector.extract_strided_slice %596 {offsets = [0, 64], sizes = [2, 32], strides = [1, 1]} : vector<2x128xf32> to vector<2x32xf32>
    %610 = math.tanh %609 : vector<2x32xf32>
    %611 = vector.extract_strided_slice %596 {offsets = [0, 96], sizes = [2, 32], strides = [1, 1]} : vector<2x128xf32> to vector<2x32xf32>
    %612 = arith.negf %611 : vector<2x32xf32>
    %613 = math.exp %612 : vector<2x32xf32>
    %cst_219 = arith.constant 1.000000e+00 : f32
    %614 = vector.broadcast %cst_219 : f32 to vector<2x32xf32>
    %615 = arith.addf %614, %613 : vector<2x32xf32>
    %616 = arith.divf %614, %615 : vector<2x32xf32>
    %617 = arith.mulf %608, %514 : vector<2x32xf32>
    %618 = arith.mulf %602, %610 : vector<2x32xf32>
    %619 = arith.addf %617, %618 : vector<2x32xf32>
    %620 = math.tanh %619 : vector<2x32xf32>
    %621 = arith.mulf %616, %620 : vector<2x32xf32>
    %622 = vector.broadcast %c5_i32 : i32 to vector<2x1xi32>
    %623 = arith.cmpi sgt, %0, %622 : vector<2x1xi32>
    %624 = vector.shape_cast %623 : vector<2x1xi1> to vector<2x1xi1>
    %625 = vector.broadcast %624 : vector<2x1xi1> to vector<2x32xi1>
    %626 = arith.select %625, %621, %511 : vector<2x32xi1>, vector<2x32xf32>
    %627 = vector.shape_cast %623 : vector<2x1xi1> to vector<2x1xi1>
    %628 = vector.broadcast %627 : vector<2x1xi1> to vector<2x32xi1>
    %629 = arith.select %628, %619, %514 : vector<2x32xi1>, vector<2x32xf32>
    %cst_220 = arith.constant 0.000000e+00 : f32
    %630 = vector.shape_cast %623 : vector<2x1xi1> to vector<2x1xi1>
    %631 = vector.broadcast %630 : vector<2x1xi1> to vector<2x32xi1>
    %632 = vector.broadcast %cst_220 : f32 to vector<2x32xf32>
    %633 = arith.select %631, %626, %632 : vector<2x32xi1>, vector<2x32xf32>
    %634 = arith.truncf %633 : vector<2x32xf32> to vector<2x32xbf16>
    %c0_221 = arith.constant 0 : index
    %c0_222 = arith.constant 0 : index
    %635 = vector.load %arg11[%c0_221, %c0_222] : memref<32x128xbf16, #tpu.memory_space<vmem>>, vector<32x128xbf16>
    %cst_223 = arith.constant dense<0.000000e+00> : vector<2x128xf32>
    %636 = tpu.matmul %634, %635, %cst_223 {dimension_numbers = #tpu.dot_dimension_numbers<[1], [0], [0], [1], [0, 0, 1, 1], [], []>} : vector<2x32xbf16>, vector<32x128xbf16>, vector<2x128xf32> -> vector<2x128xf32>
    %637 = vector.broadcast %1 : vector<1x128xf32> to vector<2x128xf32>
    %638 = arith.addf %636, %637 : vector<2x128xf32>
    %639 = arith.index_cast %c5_i32 : i32 to index
    %c0_224 = arith.constant 0 : index
    %c0_225 = arith.constant 0 : index
    %640 = vector.load %arg15[%639, %c0_224, %c0_225] : memref<8x2x128xf32, #tpu.memory_space<vmem>>, vector<1x2x128xf32>
    %641 = vector.shape_cast %640 : vector<1x2x128xf32> to vector<2x128xf32>
    %642 = vector.shape_cast %638 : vector<2x128xf32> to vector<1x2x128xf32>
    tpu.vector_store %arg15[%639, %c0_224, %c0_225], %642 {strides = array<i32>} : memref<8x2x128xf32, #tpu.memory_space<vmem>>, vector<1x2x128xf32>,
    %c7_i32_226 = arith.constant 7 : i32
    %643 = arith.subi %c7_i32_226, %c5_i32 : i32
    %644 = arith.index_cast %643 : i32 to index
    %c0_227 = arith.constant 0 : index
    %c0_228 = arith.constant 0 : index
    %645 = vector.load %arg1[%644, %c0_227, %c0_228] : memref<8x2x32xbf16, #tpu.memory_space<vmem>>, vector<1x2x32xbf16>
    %646 = vector.shape_cast %645 : vector<1x2x32xbf16> to vector<2x32xbf16>
    %c0_229 = arith.constant 0 : index
    %c0_230 = arith.constant 0 : index
    %647 = vector.load %arg6[%c0_229, %c0_230] : memref<32x128xbf16, #tpu.memory_space<vmem>>, vector<32x128xbf16>
    %cst_231 = arith.constant dense<0.000000e+00> : vector<2x128xf32>
    %648 = tpu.matmul %646, %647, %cst_231 {dimension_numbers = #tpu.dot_dimension_numbers<[1], [0], [0], [1], [0, 0, 1, 1], [], []>} : vector<2x32xbf16>, vector<32x128xbf16>, vector<2x128xf32> -> vector<2x128xf32>
    %649 = arith.truncf %570 : vector<2x32xf32> to vector<2x32xbf16>
    %c0_232 = arith.constant 0 : index
    %c0_233 = arith.constant 0 : index
    %650 = vector.load %arg7[%c0_232, %c0_233] : memref<32x128xbf16, #tpu.memory_space<vmem>>, vector<32x128xbf16>
    %cst_234 = arith.constant dense<0.000000e+00> : vector<2x128xf32>
    %651 = tpu.matmul %649, %650, %cst_234 {dimension_numbers = #tpu.dot_dimension_numbers<[1], [0], [0], [1], [0, 0, 1, 1], [], []>} : vector<2x32xbf16>, vector<32x128xbf16>, vector<2x128xf32> -> vector<2x128xf32>
    %652 = arith.addf %648, %651 : vector<2x128xf32>
    %c0_235 = arith.constant 0 : index
    %c0_236 = arith.constant 0 : index
    %653 = vector.load %arg8[%c0_235, %c0_236] : memref<1x128xf32, #tpu.memory_space<vmem>>, vector<1x128xf32>
    %654 = vector.broadcast %653 : vector<1x128xf32> to vector<2x128xf32>
    %655 = arith.addf %652, %654 : vector<2x128xf32>
    %656 = vector.extract_strided_slice %655 {offsets = [0, 0], sizes = [2, 32], strides = [1, 1]} : vector<2x128xf32> to vector<2x32xf32>
    %657 = arith.negf %656 : vector<2x32xf32>
    %658 = math.exp %657 : vector<2x32xf32>
    %cst_237 = arith.constant 1.000000e+00 : f32
    %659 = vector.broadcast %cst_237 : f32 to vector<2x32xf32>
    %660 = arith.addf %659, %658 : vector<2x32xf32>
    %661 = arith.divf %659, %660 : vector<2x32xf32>
    %662 = vector.extract_strided_slice %655 {offsets = [0, 32], sizes = [2, 32], strides = [1, 1]} : vector<2x128xf32> to vector<2x32xf32>
    %663 = arith.negf %662 : vector<2x32xf32>
    %664 = math.exp %663 : vector<2x32xf32>
    %cst_238 = arith.constant 1.000000e+00 : f32
    %665 = vector.broadcast %cst_238 : f32 to vector<2x32xf32>
    %666 = arith.addf %665, %664 : vector<2x32xf32>
    %667 = arith.divf %665, %666 : vector<2x32xf32>
    %668 = vector.extract_strided_slice %655 {offsets = [0, 64], sizes = [2, 32], strides = [1, 1]} : vector<2x128xf32> to vector<2x32xf32>
    %669 = math.tanh %668 : vector<2x32xf32>
    %670 = vector.extract_strided_slice %655 {offsets = [0, 96], sizes = [2, 32], strides = [1, 1]} : vector<2x128xf32> to vector<2x32xf32>
    %671 = arith.negf %670 : vector<2x32xf32>
    %672 = math.exp %671 : vector<2x32xf32>
    %cst_239 = arith.constant 1.000000e+00 : f32
    %673 = vector.broadcast %cst_239 : f32 to vector<2x32xf32>
    %674 = arith.addf %673, %672 : vector<2x32xf32>
    %675 = arith.divf %673, %674 : vector<2x32xf32>
    %676 = arith.mulf %667, %573 : vector<2x32xf32>
    %677 = arith.mulf %661, %669 : vector<2x32xf32>
    %678 = arith.addf %676, %677 : vector<2x32xf32>
    %679 = math.tanh %678 : vector<2x32xf32>
    %680 = arith.mulf %675, %679 : vector<2x32xf32>
    %681 = vector.broadcast %643 : i32 to vector<2x1xi32>
    %682 = arith.cmpi sgt, %0, %681 : vector<2x1xi32>
    %683 = vector.shape_cast %682 : vector<2x1xi1> to vector<2x1xi1>
    %684 = vector.broadcast %683 : vector<2x1xi1> to vector<2x32xi1>
    %685 = arith.select %684, %680, %570 : vector<2x32xi1>, vector<2x32xf32>
    %686 = vector.shape_cast %682 : vector<2x1xi1> to vector<2x1xi1>
    %687 = vector.broadcast %686 : vector<2x1xi1> to vector<2x32xi1>
    %688 = arith.select %687, %678, %573 : vector<2x32xi1>, vector<2x32xf32>
    %cst_240 = arith.constant 0.000000e+00 : f32
    %689 = vector.shape_cast %682 : vector<2x1xi1> to vector<2x1xi1>
    %690 = vector.broadcast %689 : vector<2x1xi1> to vector<2x32xi1>
    %691 = vector.broadcast %cst_240 : f32 to vector<2x32xf32>
    %692 = arith.select %690, %685, %691 : vector<2x32xi1>, vector<2x32xf32>
    %693 = arith.truncf %692 : vector<2x32xf32> to vector<2x32xbf16>
    %c0_241 = arith.constant 0 : index
    %c0_242 = arith.constant 0 : index
    %694 = vector.load %arg12[%c0_241, %c0_242] : memref<32x128xbf16, #tpu.memory_space<vmem>>, vector<32x128xbf16>
    %cst_243 = arith.constant dense<0.000000e+00> : vector<2x128xf32>
    %695 = tpu.matmul %693, %694, %cst_243 {dimension_numbers = #tpu.dot_dimension_numbers<[1], [0], [0], [1], [0, 0, 1, 1], [], []>} : vector<2x32xbf16>, vector<32x128xbf16>, vector<2x128xf32> -> vector<2x128xf32>
    %696 = arith.index_cast %643 : i32 to index
    %c0_244 = arith.constant 0 : index
    %c0_245 = arith.constant 0 : index
    %697 = vector.load %arg14[%696, %c0_244, %c0_245] : memref<8x2x128xf32, #tpu.memory_space<vmem>>, vector<1x2x128xf32>
    %698 = vector.shape_cast %697 : vector<1x2x128xf32> to vector<2x128xf32>
    %699 = vector.shape_cast %695 : vector<2x128xf32> to vector<1x2x128xf32>
    tpu.vector_store %arg14[%696, %c0_244, %c0_245], %699 {strides = array<i32>} : memref<8x2x128xf32, #tpu.memory_space<vmem>>, vector<1x2x128xf32>,
    %c6_i32 = arith.constant 6 : i32
    %700 = arith.index_cast %c6_i32 : i32 to index
    %c0_246 = arith.constant 0 : index
    %c0_247 = arith.constant 0 : index
    %701 = vector.load %arg1[%700, %c0_246, %c0_247] : memref<8x2x32xbf16, #tpu.memory_space<vmem>>, vector<1x2x32xbf16>
    %702 = vector.shape_cast %701 : vector<1x2x32xbf16> to vector<2x32xbf16>
    %c0_248 = arith.constant 0 : index
    %c0_249 = arith.constant 0 : index
    %703 = vector.load %arg3[%c0_248, %c0_249] : memref<32x128xbf16, #tpu.memory_space<vmem>>, vector<32x128xbf16>
    %cst_250 = arith.constant dense<0.000000e+00> : vector<2x128xf32>
    %704 = tpu.matmul %702, %703, %cst_250 {dimension_numbers = #tpu.dot_dimension_numbers<[1], [0], [0], [1], [0, 0, 1, 1], [], []>} : vector<2x32xbf16>, vector<32x128xbf16>, vector<2x128xf32> -> vector<2x128xf32>
    %705 = arith.truncf %626 : vector<2x32xf32> to vector<2x32xbf16>
    %c0_251 = arith.constant 0 : index
    %c0_252 = arith.constant 0 : index
    %706 = vector.load %arg4[%c0_251, %c0_252] : memref<32x128xbf16, #tpu.memory_space<vmem>>, vector<32x128xbf16>
    %cst_253 = arith.constant dense<0.000000e+00> : vector<2x128xf32>
    %707 = tpu.matmul %705, %706, %cst_253 {dimension_numbers = #tpu.dot_dimension_numbers<[1], [0], [0], [1], [0, 0, 1, 1], [], []>} : vector<2x32xbf16>, vector<32x128xbf16>, vector<2x128xf32> -> vector<2x128xf32>
    %708 = arith.addf %704, %707 : vector<2x128xf32>
    %c0_254 = arith.constant 0 : index
    %c0_255 = arith.constant 0 : index
    %709 = vector.load %arg5[%c0_254, %c0_255] : memref<1x128xf32, #tpu.memory_space<vmem>>, vector<1x128xf32>
    %710 = vector.broadcast %709 : vector<1x128xf32> to vector<2x128xf32>
    %711 = arith.addf %708, %710 : vector<2x128xf32>
    %712 = vector.extract_strided_slice %711 {offsets = [0, 0], sizes = [2, 32], strides = [1, 1]} : vector<2x128xf32> to vector<2x32xf32>
    %713 = arith.negf %712 : vector<2x32xf32>
    %714 = math.exp %713 : vector<2x32xf32>
    %cst_256 = arith.constant 1.000000e+00 : f32
    %715 = vector.broadcast %cst_256 : f32 to vector<2x32xf32>
    %716 = arith.addf %715, %714 : vector<2x32xf32>
    %717 = arith.divf %715, %716 : vector<2x32xf32>
    %718 = vector.extract_strided_slice %711 {offsets = [0, 32], sizes = [2, 32], strides = [1, 1]} : vector<2x128xf32> to vector<2x32xf32>
    %719 = arith.negf %718 : vector<2x32xf32>
    %720 = math.exp %719 : vector<2x32xf32>
    %cst_257 = arith.constant 1.000000e+00 : f32
    %721 = vector.broadcast %cst_257 : f32 to vector<2x32xf32>
    %722 = arith.addf %721, %720 : vector<2x32xf32>
    %723 = arith.divf %721, %722 : vector<2x32xf32>
    %724 = vector.extract_strided_slice %711 {offsets = [0, 64], sizes = [2, 32], strides = [1, 1]} : vector<2x128xf32> to vector<2x32xf32>
    %725 = math.tanh %724 : vector<2x32xf32>
    %726 = vector.extract_strided_slice %711 {offsets = [0, 96], sizes = [2, 32], strides = [1, 1]} : vector<2x128xf32> to vector<2x32xf32>
    %727 = arith.negf %726 : vector<2x32xf32>
    %728 = math.exp %727 : vector<2x32xf32>
    %cst_258 = arith.constant 1.000000e+00 : f32
    %729 = vector.broadcast %cst_258 : f32 to vector<2x32xf32>
    %730 = arith.addf %729, %728 : vector<2x32xf32>
    %731 = arith.divf %729, %730 : vector<2x32xf32>
    %732 = arith.mulf %723, %629 : vector<2x32xf32>
    %733 = arith.mulf %717, %725 : vector<2x32xf32>
    %734 = arith.addf %732, %733 : vector<2x32xf32>
    %735 = math.tanh %734 : vector<2x32xf32>
    %736 = arith.mulf %731, %735 : vector<2x32xf32>
    %737 = vector.broadcast %c6_i32 : i32 to vector<2x1xi32>
    %738 = arith.cmpi sgt, %0, %737 : vector<2x1xi32>
    %739 = vector.shape_cast %738 : vector<2x1xi1> to vector<2x1xi1>
    %740 = vector.broadcast %739 : vector<2x1xi1> to vector<2x32xi1>
    %741 = arith.select %740, %736, %626 : vector<2x32xi1>, vector<2x32xf32>
    %742 = vector.shape_cast %738 : vector<2x1xi1> to vector<2x1xi1>
    %743 = vector.broadcast %742 : vector<2x1xi1> to vector<2x32xi1>
    %744 = arith.select %743, %734, %629 : vector<2x32xi1>, vector<2x32xf32>
    %cst_259 = arith.constant 0.000000e+00 : f32
    %745 = vector.shape_cast %738 : vector<2x1xi1> to vector<2x1xi1>
    %746 = vector.broadcast %745 : vector<2x1xi1> to vector<2x32xi1>
    %747 = vector.broadcast %cst_259 : f32 to vector<2x32xf32>
    %748 = arith.select %746, %741, %747 : vector<2x32xi1>, vector<2x32xf32>
    %749 = arith.truncf %748 : vector<2x32xf32> to vector<2x32xbf16>
    %c0_260 = arith.constant 0 : index
    %c0_261 = arith.constant 0 : index
    %750 = vector.load %arg11[%c0_260, %c0_261] : memref<32x128xbf16, #tpu.memory_space<vmem>>, vector<32x128xbf16>
    %cst_262 = arith.constant dense<0.000000e+00> : vector<2x128xf32>
    %751 = tpu.matmul %749, %750, %cst_262 {dimension_numbers = #tpu.dot_dimension_numbers<[1], [0], [0], [1], [0, 0, 1, 1], [], []>} : vector<2x32xbf16>, vector<32x128xbf16>, vector<2x128xf32> -> vector<2x128xf32>
    %752 = vector.broadcast %1 : vector<1x128xf32> to vector<2x128xf32>
    %753 = arith.addf %751, %752 : vector<2x128xf32>
    %754 = arith.index_cast %c6_i32 : i32 to index
    %c0_263 = arith.constant 0 : index
    %c0_264 = arith.constant 0 : index
    %755 = vector.load %arg15[%754, %c0_263, %c0_264] : memref<8x2x128xf32, #tpu.memory_space<vmem>>, vector<1x2x128xf32>
    %756 = vector.shape_cast %755 : vector<1x2x128xf32> to vector<2x128xf32>
    %757 = vector.shape_cast %753 : vector<2x128xf32> to vector<1x2x128xf32>
    tpu.vector_store %arg15[%754, %c0_263, %c0_264], %757 {strides = array<i32>} : memref<8x2x128xf32, #tpu.memory_space<vmem>>, vector<1x2x128xf32>,
    %c7_i32_265 = arith.constant 7 : i32
    %758 = arith.subi %c7_i32_265, %c6_i32 : i32
    %759 = arith.index_cast %758 : i32 to index
    %c0_266 = arith.constant 0 : index
    %c0_267 = arith.constant 0 : index
    %760 = vector.load %arg1[%759, %c0_266, %c0_267] : memref<8x2x32xbf16, #tpu.memory_space<vmem>>, vector<1x2x32xbf16>
    %761 = vector.shape_cast %760 : vector<1x2x32xbf16> to vector<2x32xbf16>
    %c0_268 = arith.constant 0 : index
    %c0_269 = arith.constant 0 : index
    %762 = vector.load %arg6[%c0_268, %c0_269] : memref<32x128xbf16, #tpu.memory_space<vmem>>, vector<32x128xbf16>
    %cst_270 = arith.constant dense<0.000000e+00> : vector<2x128xf32>
    %763 = tpu.matmul %761, %762, %cst_270 {dimension_numbers = #tpu.dot_dimension_numbers<[1], [0], [0], [1], [0, 0, 1, 1], [], []>} : vector<2x32xbf16>, vector<32x128xbf16>, vector<2x128xf32> -> vector<2x128xf32>
    %764 = arith.truncf %685 : vector<2x32xf32> to vector<2x32xbf16>
    %c0_271 = arith.constant 0 : index
    %c0_272 = arith.constant 0 : index
    %765 = vector.load %arg7[%c0_271, %c0_272] : memref<32x128xbf16, #tpu.memory_space<vmem>>, vector<32x128xbf16>
    %cst_273 = arith.constant dense<0.000000e+00> : vector<2x128xf32>
    %766 = tpu.matmul %764, %765, %cst_273 {dimension_numbers = #tpu.dot_dimension_numbers<[1], [0], [0], [1], [0, 0, 1, 1], [], []>} : vector<2x32xbf16>, vector<32x128xbf16>, vector<2x128xf32> -> vector<2x128xf32>
    %767 = arith.addf %763, %766 : vector<2x128xf32>
    %c0_274 = arith.constant 0 : index
    %c0_275 = arith.constant 0 : index
    %768 = vector.load %arg8[%c0_274, %c0_275] : memref<1x128xf32, #tpu.memory_space<vmem>>, vector<1x128xf32>
    %769 = vector.broadcast %768 : vector<1x128xf32> to vector<2x128xf32>
    %770 = arith.addf %767, %769 : vector<2x128xf32>
    %771 = vector.extract_strided_slice %770 {offsets = [0, 0], sizes = [2, 32], strides = [1, 1]} : vector<2x128xf32> to vector<2x32xf32>
    %772 = arith.negf %771 : vector<2x32xf32>
    %773 = math.exp %772 : vector<2x32xf32>
    %cst_276 = arith.constant 1.000000e+00 : f32
    %774 = vector.broadcast %cst_276 : f32 to vector<2x32xf32>
    %775 = arith.addf %774, %773 : vector<2x32xf32>
    %776 = arith.divf %774, %775 : vector<2x32xf32>
    %777 = vector.extract_strided_slice %770 {offsets = [0, 32], sizes = [2, 32], strides = [1, 1]} : vector<2x128xf32> to vector<2x32xf32>
    %778 = arith.negf %777 : vector<2x32xf32>
    %779 = math.exp %778 : vector<2x32xf32>
    %cst_277 = arith.constant 1.000000e+00 : f32
    %780 = vector.broadcast %cst_277 : f32 to vector<2x32xf32>
    %781 = arith.addf %780, %779 : vector<2x32xf32>
    %782 = arith.divf %780, %781 : vector<2x32xf32>
    %783 = vector.extract_strided_slice %770 {offsets = [0, 64], sizes = [2, 32], strides = [1, 1]} : vector<2x128xf32> to vector<2x32xf32>
    %784 = math.tanh %783 : vector<2x32xf32>
    %785 = vector.extract_strided_slice %770 {offsets = [0, 96], sizes = [2, 32], strides = [1, 1]} : vector<2x128xf32> to vector<2x32xf32>
    %786 = arith.negf %785 : vector<2x32xf32>
    %787 = math.exp %786 : vector<2x32xf32>
    %cst_278 = arith.constant 1.000000e+00 : f32
    %788 = vector.broadcast %cst_278 : f32 to vector<2x32xf32>
    %789 = arith.addf %788, %787 : vector<2x32xf32>
    %790 = arith.divf %788, %789 : vector<2x32xf32>
    %791 = arith.mulf %782, %688 : vector<2x32xf32>
    %792 = arith.mulf %776, %784 : vector<2x32xf32>
    %793 = arith.addf %791, %792 : vector<2x32xf32>
    %794 = math.tanh %793 : vector<2x32xf32>
    %795 = arith.mulf %790, %794 : vector<2x32xf32>
    %796 = vector.broadcast %758 : i32 to vector<2x1xi32>
    %797 = arith.cmpi sgt, %0, %796 : vector<2x1xi32>
    %798 = vector.shape_cast %797 : vector<2x1xi1> to vector<2x1xi1>
    %799 = vector.broadcast %798 : vector<2x1xi1> to vector<2x32xi1>
    %800 = arith.select %799, %795, %685 : vector<2x32xi1>, vector<2x32xf32>
    %801 = vector.shape_cast %797 : vector<2x1xi1> to vector<2x1xi1>
    %802 = vector.broadcast %801 : vector<2x1xi1> to vector<2x32xi1>
    %803 = arith.select %802, %793, %688 : vector<2x32xi1>, vector<2x32xf32>
    %cst_279 = arith.constant 0.000000e+00 : f32
    %804 = vector.shape_cast %797 : vector<2x1xi1> to vector<2x1xi1>
    %805 = vector.broadcast %804 : vector<2x1xi1> to vector<2x32xi1>
    %806 = vector.broadcast %cst_279 : f32 to vector<2x32xf32>
    %807 = arith.select %805, %800, %806 : vector<2x32xi1>, vector<2x32xf32>
    %808 = arith.truncf %807 : vector<2x32xf32> to vector<2x32xbf16>
    %c0_280 = arith.constant 0 : index
    %c0_281 = arith.constant 0 : index
    %809 = vector.load %arg12[%c0_280, %c0_281] : memref<32x128xbf16, #tpu.memory_space<vmem>>, vector<32x128xbf16>
    %cst_282 = arith.constant dense<0.000000e+00> : vector<2x128xf32>
    %810 = tpu.matmul %808, %809, %cst_282 {dimension_numbers = #tpu.dot_dimension_numbers<[1], [0], [0], [1], [0, 0, 1, 1], [], []>} : vector<2x32xbf16>, vector<32x128xbf16>, vector<2x128xf32> -> vector<2x128xf32>
    %811 = arith.index_cast %758 : i32 to index
    %c0_283 = arith.constant 0 : index
    %c0_284 = arith.constant 0 : index
    %812 = vector.load %arg14[%811, %c0_283, %c0_284] : memref<8x2x128xf32, #tpu.memory_space<vmem>>, vector<1x2x128xf32>
    %813 = vector.shape_cast %812 : vector<1x2x128xf32> to vector<2x128xf32>
    %814 = vector.shape_cast %810 : vector<2x128xf32> to vector<1x2x128xf32>
    tpu.vector_store %arg14[%811, %c0_283, %c0_284], %814 {strides = array<i32>} : memref<8x2x128xf32, #tpu.memory_space<vmem>>, vector<1x2x128xf32>,
    %c7_i32_285 = arith.constant 7 : i32
    %815 = arith.index_cast %c7_i32_285 : i32 to index
    %c0_286 = arith.constant 0 : index
    %c0_287 = arith.constant 0 : index
    %816 = vector.load %arg1[%815, %c0_286, %c0_287] : memref<8x2x32xbf16, #tpu.memory_space<vmem>>, vector<1x2x32xbf16>
    %817 = vector.shape_cast %816 : vector<1x2x32xbf16> to vector<2x32xbf16>
    %c0_288 = arith.constant 0 : index
    %c0_289 = arith.constant 0 : index
    %818 = vector.load %arg3[%c0_288, %c0_289] : memref<32x128xbf16, #tpu.memory_space<vmem>>, vector<32x128xbf16>
    %cst_290 = arith.constant dense<0.000000e+00> : vector<2x128xf32>
    %819 = tpu.matmul %817, %818, %cst_290 {dimension_numbers = #tpu.dot_dimension_numbers<[1], [0], [0], [1], [0, 0, 1, 1], [], []>} : vector<2x32xbf16>, vector<32x128xbf16>, vector<2x128xf32> -> vector<2x128xf32>
    %820 = arith.truncf %741 : vector<2x32xf32> to vector<2x32xbf16>
    %c0_291 = arith.constant 0 : index
    %c0_292 = arith.constant 0 : index
    %821 = vector.load %arg4[%c0_291, %c0_292] : memref<32x128xbf16, #tpu.memory_space<vmem>>, vector<32x128xbf16>
    %cst_293 = arith.constant dense<0.000000e+00> : vector<2x128xf32>
    %822 = tpu.matmul %820, %821, %cst_293 {dimension_numbers = #tpu.dot_dimension_numbers<[1], [0], [0], [1], [0, 0, 1, 1], [], []>} : vector<2x32xbf16>, vector<32x128xbf16>, vector<2x128xf32> -> vector<2x128xf32>
    %823 = arith.addf %819, %822 : vector<2x128xf32>
    %c0_294 = arith.constant 0 : index
    %c0_295 = arith.constant 0 : index
    %824 = vector.load %arg5[%c0_294, %c0_295] : memref<1x128xf32, #tpu.memory_space<vmem>>, vector<1x128xf32>
    %825 = vector.broadcast %824 : vector<1x128xf32> to vector<2x128xf32>
    %826 = arith.addf %823, %825 : vector<2x128xf32>
    %827 = vector.extract_strided_slice %826 {offsets = [0, 0], sizes = [2, 32], strides = [1, 1]} : vector<2x128xf32> to vector<2x32xf32>
    %828 = arith.negf %827 : vector<2x32xf32>
    %829 = math.exp %828 : vector<2x32xf32>
    %cst_296 = arith.constant 1.000000e+00 : f32
    %830 = vector.broadcast %cst_296 : f32 to vector<2x32xf32>
    %831 = arith.addf %830, %829 : vector<2x32xf32>
    %832 = arith.divf %830, %831 : vector<2x32xf32>
    %833 = vector.extract_strided_slice %826 {offsets = [0, 32], sizes = [2, 32], strides = [1, 1]} : vector<2x128xf32> to vector<2x32xf32>
    %834 = arith.negf %833 : vector<2x32xf32>
    %835 = math.exp %834 : vector<2x32xf32>
    %cst_297 = arith.constant 1.000000e+00 : f32
    %836 = vector.broadcast %cst_297 : f32 to vector<2x32xf32>
    %837 = arith.addf %836, %835 : vector<2x32xf32>
    %838 = arith.divf %836, %837 : vector<2x32xf32>
    %839 = vector.extract_strided_slice %826 {offsets = [0, 64], sizes = [2, 32], strides = [1, 1]} : vector<2x128xf32> to vector<2x32xf32>
    %840 = math.tanh %839 : vector<2x32xf32>
    %841 = vector.extract_strided_slice %826 {offsets = [0, 96], sizes = [2, 32], strides = [1, 1]} : vector<2x128xf32> to vector<2x32xf32>
    %842 = arith.negf %841 : vector<2x32xf32>
    %843 = math.exp %842 : vector<2x32xf32>
    %cst_298 = arith.constant 1.000000e+00 : f32
    %844 = vector.broadcast %cst_298 : f32 to vector<2x32xf32>
    %845 = arith.addf %844, %843 : vector<2x32xf32>
    %846 = arith.divf %844, %845 : vector<2x32xf32>
    %847 = arith.mulf %838, %744 : vector<2x32xf32>
    %848 = arith.mulf %832, %840 : vector<2x32xf32>
    %849 = arith.addf %847, %848 : vector<2x32xf32>
    %850 = math.tanh %849 : vector<2x32xf32>
    %851 = arith.mulf %846, %850 : vector<2x32xf32>
    %852 = vector.broadcast %c7_i32_285 : i32 to vector<2x1xi32>
    %853 = arith.cmpi sgt, %0, %852 : vector<2x1xi32>
    %854 = vector.shape_cast %853 : vector<2x1xi1> to vector<2x1xi1>
    %855 = vector.broadcast %854 : vector<2x1xi1> to vector<2x32xi1>
    %856 = arith.select %855, %851, %741 : vector<2x32xi1>, vector<2x32xf32>
    %857 = vector.shape_cast %853 : vector<2x1xi1> to vector<2x1xi1>
    %858 = vector.broadcast %857 : vector<2x1xi1> to vector<2x32xi1>
    %859 = arith.select %858, %849, %744 : vector<2x32xi1>, vector<2x32xf32>
    %cst_299 = arith.constant 0.000000e+00 : f32
    %860 = vector.shape_cast %853 : vector<2x1xi1> to vector<2x1xi1>
    %861 = vector.broadcast %860 : vector<2x1xi1> to vector<2x32xi1>
    %862 = vector.broadcast %cst_299 : f32 to vector<2x32xf32>
    %863 = arith.select %861, %856, %862 : vector<2x32xi1>, vector<2x32xf32>
    %864 = arith.truncf %863 : vector<2x32xf32> to vector<2x32xbf16>
    %c0_300 = arith.constant 0 : index
    %c0_301 = arith.constant 0 : index
    %865 = vector.load %arg11[%c0_300, %c0_301] : memref<32x128xbf16, #tpu.memory_space<vmem>>, vector<32x128xbf16>
    %cst_302 = arith.constant dense<0.000000e+00> : vector<2x128xf32>
    %866 = tpu.matmul %864, %865, %cst_302 {dimension_numbers = #tpu.dot_dimension_numbers<[1], [0], [0], [1], [0, 0, 1, 1], [], []>} : vector<2x32xbf16>, vector<32x128xbf16>, vector<2x128xf32> -> vector<2x128xf32>
    %867 = vector.broadcast %1 : vector<1x128xf32> to vector<2x128xf32>
    %868 = arith.addf %866, %867 : vector<2x128xf32>
    %869 = arith.index_cast %c7_i32_285 : i32 to index
    %c0_303 = arith.constant 0 : index
    %c0_304 = arith.constant 0 : index
    %870 = vector.load %arg15[%869, %c0_303, %c0_304] : memref<8x2x128xf32, #tpu.memory_space<vmem>>, vector<1x2x128xf32>
    %871 = vector.shape_cast %870 : vector<1x2x128xf32> to vector<2x128xf32>
    %872 = vector.shape_cast %868 : vector<2x128xf32> to vector<1x2x128xf32>
    tpu.vector_store %arg15[%869, %c0_303, %c0_304], %872 {strides = array<i32>} : memref<8x2x128xf32, #tpu.memory_space<vmem>>, vector<1x2x128xf32>,
    %c7_i32_305 = arith.constant 7 : i32
    %873 = arith.subi %c7_i32_305, %c7_i32_285 : i32
    %874 = arith.index_cast %873 : i32 to index
    %c0_306 = arith.constant 0 : index
    %c0_307 = arith.constant 0 : index
    %875 = vector.load %arg1[%874, %c0_306, %c0_307] : memref<8x2x32xbf16, #tpu.memory_space<vmem>>, vector<1x2x32xbf16>
    %876 = vector.shape_cast %875 : vector<1x2x32xbf16> to vector<2x32xbf16>
    %c0_308 = arith.constant 0 : index
    %c0_309 = arith.constant 0 : index
    %877 = vector.load %arg6[%c0_308, %c0_309] : memref<32x128xbf16, #tpu.memory_space<vmem>>, vector<32x128xbf16>
    %cst_310 = arith.constant dense<0.000000e+00> : vector<2x128xf32>
    %878 = tpu.matmul %876, %877, %cst_310 {dimension_numbers = #tpu.dot_dimension_numbers<[1], [0], [0], [1], [0, 0, 1, 1], [], []>} : vector<2x32xbf16>, vector<32x128xbf16>, vector<2x128xf32> -> vector<2x128xf32>
    %879 = arith.truncf %800 : vector<2x32xf32> to vector<2x32xbf16>
    %c0_311 = arith.constant 0 : index
    %c0_312 = arith.constant 0 : index
    %880 = vector.load %arg7[%c0_311, %c0_312] : memref<32x128xbf16, #tpu.memory_space<vmem>>, vector<32x128xbf16>
    %cst_313 = arith.constant dense<0.000000e+00> : vector<2x128xf32>
    %881 = tpu.matmul %879, %880, %cst_313 {dimension_numbers = #tpu.dot_dimension_numbers<[1], [0], [0], [1], [0, 0, 1, 1], [], []>} : vector<2x32xbf16>, vector<32x128xbf16>, vector<2x128xf32> -> vector<2x128xf32>
    %882 = arith.addf %878, %881 : vector<2x128xf32>
    %c0_314 = arith.constant 0 : index
    %c0_315 = arith.constant 0 : index
    %883 = vector.load %arg8[%c0_314, %c0_315] : memref<1x128xf32, #tpu.memory_space<vmem>>, vector<1x128xf32>
    %884 = vector.broadcast %883 : vector<1x128xf32> to vector<2x128xf32>
    %885 = arith.addf %882, %884 : vector<2x128xf32>
    %886 = vector.extract_strided_slice %885 {offsets = [0, 0], sizes = [2, 32], strides = [1, 1]} : vector<2x128xf32> to vector<2x32xf32>
    %887 = arith.negf %886 : vector<2x32xf32>
    %888 = math.exp %887 : vector<2x32xf32>
    %cst_316 = arith.constant 1.000000e+00 : f32
    %889 = vector.broadcast %cst_316 : f32 to vector<2x32xf32>
    %890 = arith.addf %889, %888 : vector<2x32xf32>
    %891 = arith.divf %889, %890 : vector<2x32xf32>
    %892 = vector.extract_strided_slice %885 {offsets = [0, 32], sizes = [2, 32], strides = [1, 1]} : vector<2x128xf32> to vector<2x32xf32>
    %893 = arith.negf %892 : vector<2x32xf32>
    %894 = math.exp %893 : vector<2x32xf32>
    %cst_317 = arith.constant 1.000000e+00 : f32
    %895 = vector.broadcast %cst_317 : f32 to vector<2x32xf32>
    %896 = arith.addf %895, %894 : vector<2x32xf32>
    %897 = arith.divf %895, %896 : vector<2x32xf32>
    %898 = vector.extract_strided_slice %885 {offsets = [0, 64], sizes = [2, 32], strides = [1, 1]} : vector<2x128xf32> to vector<2x32xf32>
    %899 = math.tanh %898 : vector<2x32xf32>
    %900 = vector.extract_strided_slice %885 {offsets = [0, 96], sizes = [2, 32], strides = [1, 1]} : vector<2x128xf32> to vector<2x32xf32>
    %901 = arith.negf %900 : vector<2x32xf32>
    %902 = math.exp %901 : vector<2x32xf32>
    %cst_318 = arith.constant 1.000000e+00 : f32
    %903 = vector.broadcast %cst_318 : f32 to vector<2x32xf32>
    %904 = arith.addf %903, %902 : vector<2x32xf32>
    %905 = arith.divf %903, %904 : vector<2x32xf32>
    %906 = arith.mulf %897, %803 : vector<2x32xf32>
    %907 = arith.mulf %891, %899 : vector<2x32xf32>
    %908 = arith.addf %906, %907 : vector<2x32xf32>
    %909 = math.tanh %908 : vector<2x32xf32>
    %910 = arith.mulf %905, %909 : vector<2x32xf32>
    %911 = vector.broadcast %873 : i32 to vector<2x1xi32>
    %912 = arith.cmpi sgt, %0, %911 : vector<2x1xi32>
    %913 = vector.shape_cast %912 : vector<2x1xi1> to vector<2x1xi1>
    %914 = vector.broadcast %913 : vector<2x1xi1> to vector<2x32xi1>
    %915 = arith.select %914, %910, %800 : vector<2x32xi1>, vector<2x32xf32>
    %916 = vector.shape_cast %912 : vector<2x1xi1> to vector<2x1xi1>
    %917 = vector.broadcast %916 : vector<2x1xi1> to vector<2x32xi1>
    %918 = arith.select %917, %908, %803 : vector<2x32xi1>, vector<2x32xf32>
    %cst_319 = arith.constant 0.000000e+00 : f32
    %919 = vector.shape_cast %912 : vector<2x1xi1> to vector<2x1xi1>
    %920 = vector.broadcast %919 : vector<2x1xi1> to vector<2x32xi1>
    %921 = vector.broadcast %cst_319 : f32 to vector<2x32xf32>
    %922 = arith.select %920, %915, %921 : vector<2x32xi1>, vector<2x32xf32>
    %923 = arith.truncf %922 : vector<2x32xf32> to vector<2x32xbf16>
    %c0_320 = arith.constant 0 : index
    %c0_321 = arith.constant 0 : index
    %924 = vector.load %arg12[%c0_320, %c0_321] : memref<32x128xbf16, #tpu.memory_space<vmem>>, vector<32x128xbf16>
    %cst_322 = arith.constant dense<0.000000e+00> : vector<2x128xf32>
    %925 = tpu.matmul %923, %924, %cst_322 {dimension_numbers = #tpu.dot_dimension_numbers<[1], [0], [0], [1], [0, 0, 1, 1], [], []>} : vector<2x32xbf16>, vector<32x128xbf16>, vector<2x128xf32> -> vector<2x128xf32>
    %926 = arith.index_cast %873 : i32 to index
    %c0_323 = arith.constant 0 : index
    %c0_324 = arith.constant 0 : index
    %927 = vector.load %arg14[%926, %c0_323, %c0_324] : memref<8x2x128xf32, #tpu.memory_space<vmem>>, vector<1x2x128xf32>
    %928 = vector.shape_cast %927 : vector<1x2x128xf32> to vector<2x128xf32>
    %929 = vector.shape_cast %925 : vector<2x128xf32> to vector<1x2x128xf32>
    tpu.vector_store %arg14[%926, %c0_323, %c0_324], %929 {strides = array<i32>} : memref<8x2x128xf32, #tpu.memory_space<vmem>>, vector<1x2x128xf32>,
    %c8_i32 = arith.constant 8 : i32
    %c0_325 = arith.constant 0 : index
    %c0_326 = arith.constant 0 : index
    %c0_327 = arith.constant 0 : index
    %930 = vector.load %arg14[%c0_325, %c0_326, %c0_327] : memref<8x2x128xf32, #tpu.memory_space<vmem>>, vector<8x2x128xf32>
    %c0_328 = arith.constant 0 : index
    %c0_329 = arith.constant 0 : index
    %c0_330 = arith.constant 0 : index
    %931 = vector.load %arg15[%c0_328, %c0_329, %c0_330] : memref<8x2x128xf32, #tpu.memory_space<vmem>>, vector<8x2x128xf32>
    %932 = arith.addf %930, %931 : vector<8x2x128xf32>
    %c0_331 = arith.constant 0 : index
    %c0_332 = arith.constant 0 : index
    %c0_333 = arith.constant 0 : index
    %933 = vector.load %arg14[%c0_331, %c0_332, %c0_333] : memref<8x2x128xf32, #tpu.memory_space<vmem>>, vector<8x2x128xf32>
    tpu.vector_store %arg14[%c0_331, %c0_332, %c0_333], %932 {strides = array<i32>} : memref<8x2x128xf32, #tpu.memory_space<vmem>>, vector<8x2x128xf32>,
    return
  }
  func.func @transform_0(%arg0: i32) -> (i32, i32, i32) {
    %c0_i32 = arith.constant 0 : i32
    %c0_i32_0 = arith.constant 0 : i32
    %c0_i32_1 = arith.constant 0 : i32
    return %c0_i32, %arg0, %c0_i32_0 : i32, i32, i32
  }
  func.func @transform_1(%arg0: i32) -> (i32, i32) {
    %c0_i32 = arith.constant 0 : i32
    %c0_i32_0 = arith.constant 0 : i32
    return %arg0, %c0_i32 : i32, i32
  }
  func.func @transform_2(%arg0: i32) -> (i32, i32) {
    %c0_i32 = arith.constant 0 : i32
    %c0_i32_0 = arith.constant 0 : i32
    %c0_i32_1 = arith.constant 0 : i32
    return %c0_i32, %c0_i32_0 : i32, i32
  }
  func.func @transform_3(%arg0: i32) -> (i32, i32) {
    %c0_i32 = arith.constant 0 : i32
    %c0_i32_0 = arith.constant 0 : i32
    %c0_i32_1 = arith.constant 0 : i32
    return %c0_i32, %c0_i32_0 : i32, i32
  }
  func.func @transform_4(%arg0: i32) -> (i32, i32) {
    %c0_i32 = arith.constant 0 : i32
    %c0_i32_0 = arith.constant 0 : i32
    %c0_i32_1 = arith.constant 0 : i32
    return %c0_i32, %c0_i32_0 : i32, i32
  }
  func.func @transform_5(%arg0: i32) -> (i32, i32) {
    %c0_i32 = arith.constant 0 : i32
    %c0_i32_0 = arith.constant 0 : i32
    %c0_i32_1 = arith.constant 0 : i32
    return %c0_i32, %c0_i32_0 : i32, i32
  }
  func.func @transform_6(%arg0: i32) -> (i32, i32) {
    %c0_i32 = arith.constant 0 : i32
    %c0_i32_0 = arith.constant 0 : i32
    %c0_i32_1 = arith.constant 0 : i32
    return %c0_i32, %c0_i32_0 : i32, i32
  }
  func.func @transform_7(%arg0: i32) -> (i32, i32) {
    %c0_i32 = arith.constant 0 : i32
    %c0_i32_0 = arith.constant 0 : i32
    %c0_i32_1 = arith.constant 0 : i32
    return %c0_i32, %c0_i32_0 : i32, i32
  }
  func.func @transform_8(%arg0: i32) -> (i32, i32, i32) {
    %c0_i32 = arith.constant 0 : i32
    %c0_i32_0 = arith.constant 0 : i32
    %c0_i32_1 = arith.constant 0 : i32
    return %c0_i32, %arg0, %c0_i32_0 : i32, i32, i32
  }
  func.func @transform_9(%arg0: i32) -> (i32, i32, i32) {
    %c0_i32 = arith.constant 0 : i32
    %c0_i32_0 = arith.constant 0 : i32
    %c0_i32_1 = arith.constant 0 : i32
    return %c0_i32, %arg0, %c0_i32_0 : i32, i32, i32
  }
  func.func @transform_10(%arg0: i32) -> (i32, i32) {
    %c0_i32 = arith.constant 0 : i32
    %c0_i32_0 = arith.constant 0 : i32
    %c0_i32_1 = arith.constant 0 : i32
    return %c0_i32, %c0_i32_0 : i32, i32
  }
  func.func @transform_11(%arg0: i32) -> (i32, i32) {
    %c0_i32 = arith.constant 0 : i32
    %c0_i32_0 = arith.constant 0 : i32
    %c0_i32_1 = arith.constant 0 : i32
    return %c0_i32, %c0_i32_0 : i32, i32
  }
  func.func @transform_12(%arg0: i32) -> (i32, i32) {
    %c0_i32 = arith.constant 0 : i32
    %c0_i32_0 = arith.constant 0 : i32
    %c0_i32_1 = arith.constant 0 : i32
    return %c0_i32, %c0_i32_0 : i32, i32
  }
  func.func @transform_13(%arg0: i32) -> (i32, i32, i32) {
    %c0_i32 = arith.constant 0 : i32
    %c0_i32_0 = arith.constant 0 : i32
    %c0_i32_1 = arith.constant 0 : i32
    return %c0_i32, %arg0, %c0_i32_0 : i32, i32, i32
  }
}

</mosaic_0001>

<bundles_post_ra>
// kernel: tpu_custom_call.1
= control target key start
LH: loop header
LB: loop body
LE: loop exit
PB: predicated region body
PF: predicated region fallthrough
CT: control target
= control target key end

     0   :  { %18 = vsyncpa [#allocation4], 0  ;;  %s6018_s0 = inlined_call_operand.hbm [shape: bf16[8,2,32], index: 0, kind: input, shape index: {}]   ;;  %s6019_s1 = inlined_call_operand.vmem [shape: s32[2,1], index: 1, kind: input, shape index: {}]   ;;  %s6020_s2 = inlined_call_operand.hbm [shape: bf16[32,128], index: 2, kind: input, shape index: {}]   ;;  %s6021_s3 = inlined_call_operand.hbm [shape: bf16[32,128], index: 3, kind: input, shape index: {}]   ;;  %s6022_s4 = inlined_call_operand.vmem [shape: f32[1,128], index: 4, kind: input, shape index: {}]   ;;  %s6023_s5 = inlined_call_operand.vmem [shape: bf16[32,128], index: 5, kind: input, shape index: {}]   ;;  %s6024_s6 = inlined_call_operand.hbm [shape: bf16[32,128], index: 6, kind: input, shape index: {}]   ;;  %s6025_s7 = inlined_call_operand.hbm [shape: f32[1,128], index: 7, kind: input, shape index: {}]   ;;  %s6026_s8 = inlined_call_operand.hbm [shape: f32[2,2,32], index: 8, kind: input, shape index: {}]   ;;  %s6027_s9 = inlined_call_operand.vmem [shape: f32[2,2,32], index: 9, kind: input, shape index: {}]   ;;  %s6028_s10 = inlined_call_operand.vmem [shape: bf16[32,128], index: 10, kind: input, shape index: {}]   ;;  %s6029_s11 = inlined_call_operand.hbm [shape: bf16[32,128], index: 11, kind: input, shape index: {}]   ;;  %s6030_s12 = inlined_call_operand.vmem [shape: f32[1,128], index: 12, kind: input, shape index: {}]   ;;  %s6031_s13 = inlined_call_operand.hbm [shape: f32[8,2,128], index: 13, kind: output, shape index: {}]  }
   0x1   :  { %19 = vsyncpa [#allocation7], 0 }
   0x2   :  { %20 = vsyncpa [#allocation10], 0 }
   0x3   :  { %21 = vsyncpa [#allocation13], 0 }
   0x4   :  { %22 = vsyncpa [#allocation5], 0  ;;  %s4971_s25 = smov [#allocation6]   ;;  %s4785_s29 = scalar_lea.hbm %s6020_s2, 256 }
   0x5   :  { %s42_s26 = sshll.u32 %s4971_s25, 4  ;;  %p4786_p0 = scmp.ne.s32.totalorder %s6020_s2, %s4785_s29  ;;  %s43_s26 = int_to_ptr.vmem [resolvable:$true] %s42_s26 }
   0x6   :  { %p4789_p1 = scmp.lt.u32.totalorder %s4785_s29, %s6020_s2 }
   0x8   :  { %p4791_p2 = pnand %p4789_p1, %p4786_p0 }
   0xa   :  { %4794 = shalt.err (!%p4791_p2)
}
   0xb   :  { %s4795_s17 = scalar_lea.vmem %s43_s26, 256  ;;  %p4800_p4 = scmp.lt.s32.totalorder %s43_s26, %s43_s26 }
   0xc   :  { %p4796_p3 = scmp.ne.s32.totalorder %s43_s26, %s4795_s17  ;;  %p4801_p5 = scmp.lt.s32.totalorder %s4795_s17, %s4795_s17 }
   0xe   :  { %p4802_p6 = por %p4801_p5, %p4800_p4 }
  0x10   :  { %p4803_p7 = pnand %p4802_p6, %p4796_p3 }
  0x12   :  { %4806 = shalt.err (!%p4803_p7)
}
  0x13   :  { %s4972_s18 = smov 64   ;;  %s4973_s19 = smov 4  }
  0x14   :  { %48 = dma.hbm_to_vmem [thread:$0]  %s6020_s2, 256, %s43_s26, [#allocation7], %s4972_s18, %s4972_s18, %s4973_s19  }
  0x15   :  { %s4974_s22 = smov [#allocation9]   ;;  %s4975_s24 = smov [#allocation12]  }
  0x16   :  { %s70_s23 = sshll.u32 %s4974_s22, 4  ;;  %s92_s25 = sshll.u32 %s4975_s24, 4  ;;  %s71_s23 = int_to_ptr.vmem [resolvable:$true] %s70_s23  ;;  %s93_s25 = int_to_ptr.vmem [resolvable:$true] %s92_s25 }
  0x17   :  { %s4807_s29 = scalar_lea.hbm %s6024_s6, 256 }
  0x18   :  { %p4808_p8 = scmp.ne.s32.totalorder %s6024_s6, %s4807_s29  ;;  %p4811_p9 = scmp.lt.u32.totalorder %s4807_s29, %s6024_s6 }
  0x1a   :  { %p4813_p10 = pnand %p4811_p9, %p4808_p8 }
  0x1c   :  { %4816 = shalt.err (!%p4813_p10)
}
  0x1d   :  { %s4817_s2 = scalar_lea.vmem %s71_s23, 256  ;;  %p4822_p12 = scmp.lt.s32.totalorder %s71_s23, %s71_s23 }
  0x1e   :  { %p4818_p11 = scmp.ne.s32.totalorder %s71_s23, %s4817_s2  ;;  %p4823_p13 = scmp.lt.s32.totalorder %s4817_s2, %s4817_s2 }
  0x20   :  { %p4824_p0 = por %p4823_p13, %p4822_p12 }
  0x22   :  { %p4825_p1 = pnand %p4824_p0, %p4818_p11 }
  0x24   :  { %4828 = shalt.err (!%p4825_p1)
}
  0x25   :  { %76 = dma.hbm_to_vmem [thread:$0]  %s6024_s6, 256, %s71_s23, [#allocation10], %s4972_s18, %s4972_s18, %s4973_s19  }
  0x26   :  { %s4829_s22 = scalar_lea.hbm %s6026_s8, 64 }
  0x27   :  { %p4830_p2 = scmp.ne.s32.totalorder %s6026_s8, %s4829_s22  ;;  %p4833_p3 = scmp.lt.u32.totalorder %s4829_s22, %s6026_s8 }
  0x29   :  { %p4835_p4 = pnand %p4833_p3, %p4830_p2 }
  0x2b   :  { %4838 = shalt.err (!%p4835_p4)
}
  0x2c   :  { %s4839_s30 = scalar_lea.vmem %s93_s25, 64  ;;  %p4844_p6 = scmp.lt.s32.totalorder %s93_s25, %s93_s25 }
  0x2d   :  { %p4840_p5 = scmp.ne.s32.totalorder %s93_s25, %s4839_s30  ;;  %p4845_p7 = scmp.lt.s32.totalorder %s4839_s30, %s4839_s30 }
  0x2f   :  { %p4846_p8 = por %p4845_p7, %p4844_p6 }
  0x31   :  { %p4847_p9 = pnand %p4846_p8, %p4840_p5 }
  0x33   :  { %4850 = shalt.err (!%p4847_p9)
}
  0x34   :  { %s4976_s6 = smov 32   ;;  %s4977_s23 = smov 2  }
  0x35   :  { %98 = dma.hbm_to_vmem [thread:$0]  %s6026_s8, 64, %s93_s25, [#allocation13], %s4976_s6, %s4976_s6, %s4977_s23  }
  0x36   :  { %s4978_s16 = smov [#allocation3]   ;;  %s4851_s20 = scalar_lea.hbm %s6018_s0, 128 }
  0x37   :  { %s28_s2 = sshll.u32 %s4978_s16, 4  ;;  %p4852_p10 = scmp.ne.s32.totalorder %s6018_s0, %s4851_s20  ;;  %s29_s2 = int_to_ptr.vmem [resolvable:$true] %s28_s2 }
  0x38   :  { %p4855_p11 = scmp.lt.u32.totalorder %s4851_s20, %s6018_s0 }
  0x3a   :  { %p4857_p12 = pnand %p4855_p11, %p4852_p10 }
  0x3c   :  { %4860 = shalt.err (!%p4857_p12)
}
  0x3d   :  { %s4861_s28 = scalar_lea.vmem %s29_s2, 128  ;;  %p4866_p0 = scmp.lt.s32.totalorder %s29_s2, %s29_s2 }
  0x3e   :  { %p4862_p13 = scmp.ne.s32.totalorder %s29_s2, %s4861_s28  ;;  %p4867_p1 = scmp.lt.s32.totalorder %s4861_s28, %s4861_s28 }
  0x40   :  { %p4868_p2 = por %p4867_p1, %p4866_p0 }
  0x42   :  { %p4869_p3 = pnand %p4868_p2, %p4862_p13 }
  0x44   :  { %4872 = shalt.err (!%p4869_p3)
}
  0x45   :  { %s4979_s8 = smov 16   ;;  %s4980_s25 = smov 1  }
  0x46   :  { %34 = dma.hbm_to_vmem [thread:$0]  %s6018_s0, 128, %s29_s2, [#allocation4], %s4979_s8, %s4979_s8, %s4980_s25  }
  0x47   :  { %s4981_s14 = smov [#allocation8]   ;;  %s4982_s16 = smov [#allocation11]  }
  0x48   :  { %s54_s15 = sshll.u32 %s4981_s14, 4  ;;  %s83_s26 = sshll.u32 %s4982_s16, 4  ;;  %s55_s15 = int_to_ptr.vmem [resolvable:$true] %s54_s15  ;;  %s84_s26 = int_to_ptr.vmem [resolvable:$true] %s83_s26 }
  0x49   :  { %s4873_s21 = scalar_lea.hbm %s6021_s3, 256 }
  0x4a   :  { %p4874_p4 = scmp.ne.s32.totalorder %s6021_s3, %s4873_s21  ;;  %p4877_p5 = scmp.lt.u32.totalorder %s4873_s21, %s6021_s3 }
  0x4c   :  { %p4879_p6 = pnand %p4877_p5, %p4874_p4 }
  0x4e   :  { %4882 = shalt.err (!%p4879_p6)
}
  0x4f   :  { %s4883_s0 = scalar_lea.vmem %s55_s15, 256  ;;  %p4888_p8 = scmp.lt.s32.totalorder %s55_s15, %s55_s15 }
  0x50   :  { %p4884_p7 = scmp.ne.s32.totalorder %s55_s15, %s4883_s0  ;;  %p4889_p9 = scmp.lt.s32.totalorder %s4883_s0, %s4883_s0 }
  0x52   :  { %p4890_p10 = por %p4889_p9, %p4888_p8 }
  0x54   :  { %p4891_p11 = pnand %p4890_p10, %p4884_p7 }
  0x56   :  { %4894 = shalt.err (!%p4891_p11)
}
  0x57   :  { %60 = dma.hbm_to_vmem [thread:$0]  %s6021_s3, 256, %s55_s15, [#allocation7], %s4972_s18, %s4972_s18, %s4973_s19  }
  0x58   :  { %s4895_s30 = scalar_lea.hbm %s6025_s7, 16 }
  0x59   :  { %p4896_p12 = scmp.ne.s32.totalorder %s6025_s7, %s4895_s30  ;;  %p4899_p13 = scmp.lt.u32.totalorder %s4895_s30, %s6025_s7 }
  0x5b   :  { %p4901_p0 = pnand %p4899_p13, %p4896_p12 }
  0x5d   :  { %4904 = shalt.err (!%p4901_p0)
}
  0x5e   :  { %s4905_s21 = scalar_lea.vmem %s84_s26, 16  ;;  %s4909_s22 = scalar_lea.vmem %s84_s26, 32 }
  0x5f   :  { %p4906_p1 = scmp.ne.s32.totalorder %s84_s26, %s4905_s21  ;;  %p4910_p2 = scmp.lt.s32.totalorder %s84_s26, %s84_s26 }
  0x60   :  { %p4911_p3 = scmp.lt.s32.totalorder %s4909_s22, %s4905_s21 }
  0x62   :  { %p4912_p4 = por %p4911_p3, %p4910_p2 }
  0x64   :  { %p4913_p5 = pnand %p4912_p4, %p4906_p1 }
  0x66   :  { %4916 = shalt.err (!%p4913_p5)
}
  0x67   :  { %86 = dma.hbm_to_vmem [thread:$0]  %s6025_s7, 16, %s84_s26, [#allocation10]  }
  0x68   :  { %s4983_s24 = smov [#allocation14]   ;;  %s4917_s2 = scalar_lea.hbm %s6029_s11, 256 }
  0x69   :  { %s108_s27 = sshll.u32 %s4983_s24, 4  ;;  %p4918_p6 = scmp.ne.s32.totalorder %s6029_s11, %s4917_s2  ;;  %s109_s27 = int_to_ptr.vmem [resolvable:$true] %s108_s27 }
  0x6a   :  { %p4921_p7 = scmp.lt.u32.totalorder %s4917_s2, %s6029_s11 }
  0x6c   :  { %p4923_p8 = pnand %p4921_p7, %p4918_p6 }
  0x6e   :  { %4926 = shalt.err (!%p4923_p8)
}
  0x6f   :  { %s4927_s14 = scalar_lea.vmem %s109_s27, 256  ;;  %p4932_p10 = scmp.lt.s32.totalorder %s109_s27, %s109_s27 }
  0x70   :  { %p4928_p9 = scmp.ne.s32.totalorder %s109_s27, %s4927_s14  ;;  %p4933_p11 = scmp.lt.s32.totalorder %s4927_s14, %s4927_s14 }
  0x72   :  { %p4934_p12 = por %p4933_p11, %p4932_p10 }
  0x74   :  { %p4935_p13 = pnand %p4934_p12, %p4928_p9 }
  0x76   :  { %4938 = shalt.err (!%p4935_p13)
}
  0x77   :  { %114 = dma.hbm_to_vmem [thread:$0]  %s6029_s11, 256, %s109_s27, [#allocation13], %s4972_s18, %s4972_s18, %s4973_s19  }
  0x78   :  { %4961 = dma.done.wait [#allocation4], 128  }
  0x79   :  { %4962 = vsyncadd [#allocation4], 4294967168 }
  0x7a   :  { %4963 = dma.done.wait [#allocation7], 512  }
  0x7b   :  { %4964 = vsyncadd [#allocation7], 4294966784 }
  0x7c   :  { %4965 = dma.done.wait [#allocation10], 272  }
  0x7d   :  { %4966 = vsyncadd [#allocation10], 4294967024 }
  0x7e   :  { %4967 = dma.done.wait [#allocation13], 320  }
  0x7f   :  { %4968 = vsyncadd [#allocation13], 4294966976  ;;  %v4984_v0 = vmov 0.0   ;;  %vm4985_vm0 = vmmov 0   ;;  %v4559_v1 = vld [vmem:[#allocation8] sm:$0xff]   ;;  %v4560_v2 = vld [vmem:[#allocation6] sm:$0xff]  }
  0x80   :  { %4155 = vmatprep.subr.bf16.mxu0 %v4984_v0  ;;  %4163 = vmatprep.subr.bf16.mxu1 %v4984_v0  ;;  %v4561_v3 = vld [vmem:[#allocation8 + $0x8] sm:$0xff]   ;;  %v4562_v4 = vld [vmem:[#allocation6 + $0x8] sm:$0xff]   ;;  %v5166_v5 = vld [vmem:[#allocation12] sm:$0x3]  ;;  %vm169_vm1 = vcmask 261120   ;;  %v4986_v19 = vmov 0  }
  0x81   :  { %4159 = vmatprep.mubr.msk.bf16.mxu0 %vm4985_vm0, %v4984_v0  ;;  %4167 = vmatprep.mubr.msk.bf16.mxu1 %vm4985_vm0, %v4984_v0  ;;  %v152_v6 = vpack.c.bf16 %v5166_v5, %v5166_v5  ;;  %v147_v7 = vld [vmem:[#allocation3] sm:$0x1]  ;;  %v5181_v10 = vld [vmem:[%s6022_s4] ss:$0 sm:$0xff]  ;;  %v4565_v36 = vld [vmem:[#allocation9] sm:$0xff]   ;;  %s4987_s0 = smov 96  }
  0x82   :  { %4156 = vmatpush3.bf16.msra.mxu0 %v4559_v1  ;;  %4164 = vmatpush3.bf16.msra.mxu1 %v4560_v2  ;;  %v142_v21 = vld [vmem:[%s6027_s9] sm:$0x3]  ;;  %v4564_v37 = vld [vmem:[%s6028_s10 + $0x8] sm:$0xff]   ;;  %v3833_v46 = vld [vmem:[%s6027_s9 + $0x2] sm:$0x3] }
  0x83   :  { %4157 = vmatprep.subr.bf16.mxu0 %v4984_v0  ;;  %4165 = vmatprep.subr.bf16.mxu1 %v4984_v0  ;;  %v5194_v25 = vld [vmem:[%s6019_s1] sm:$0x3]  ;;  %v5215_v39 = vld [vmem:[#allocation12 + $0x2] sm:$0x3]  ;;  %v388_v51 = vld [vmem:[#allocation3 + $0x7] sm:$0x1] }
  0x84   :  { %4557 = vset.pattern.permute.xlu1 %v4986_v19  ;;  %4558 = vset.pattern.permute.xlu0 %v4986_v19  ;;  %vm304_vm2 = vcmp.gt.s32.totalorder %v5194_v25, 0  ;;  %v4563_v35 = vld [vmem:[%s6028_s10] sm:$0xff]   ;;  %v393_v40 = vpack.c.bf16 %v5215_v39, %v5215_v39  ;;  %vm544_vm4 = vcmp.gt.s32.totalorder %v5194_v25, 7  ;;  %v4568_v50 = vld [vmem:[%s6023_s5 + $0x8] sm:$0xff]   ;;  %v4570_v53 = vld [vmem:[#allocation8 + $0x8] sm:$0xff]   ;;  %vm778_vm6 = vcmp.gt.s32.totalorder %v5194_v25, 1 }
  0x85   :  { %v305_v29 = vsel %vm304_vm2, 1, %v4986_v19  ;;  %v4567_v38 = vld [vmem:[#allocation9 + $0x8] sm:$0xff]   ;;  %v545_v47 = vsel %vm544_vm4, 1, %v4986_v19  ;;  %v4569_v52 = vld [vmem:[#allocation8] sm:$0xff]   ;;  %vm1008_vm8 = vcmp.gt.s32.totalorder %v5194_v25, 6  ;;  %vm1238_vm10 = vcmp.gt.s32.totalorder %v5194_v25, 2 }
  0x86   :  { %4158 = vmatpush3.bf16.msra.mxu0 %v4561_v3  ;;  %4166 = vmatpush3.bf16.msra.mxu1 %v4562_v4  ;;  %v4566_v48 = vld [vmem:[%s6023_s5] sm:$0xff]   ;;  %vm1468_vm12 = vcmp.gt.s32.totalorder %v5194_v25, 5  ;;  %vm1698_vm14 = vcmp.gt.s32.totalorder %v5194_v25, 3 }
  0x87   :  { %4171 = vmatprep.subr.bf16.mxu0 %v4984_v0  ;;  %4179 = vmatprep.subr.bf16.mxu1 %v4984_v0  ;;  %v5270_v1 = vld [vmem:[%s6030_s12] ss:$0 sm:$0xff] }
  0x89   :  { %4160 = vmatmul.mubr.msk.bf16.vlgmr.msra.gmra.mrb[0].mxu0 %vm169_vm1, %v152_v6  ;;  %4168 = vmatmul.mubr.msk.bf16.vlgmr.msra.gmra.mrb[0].mxu1 %vm169_vm1, %v147_v7 }
  0x8a   :  { %4175 = vmatprep.mubr.msk.bf16.mxu0 %vm4985_vm0, %v4984_v0  ;;  %4183 = vmatprep.mubr.msk.bf16.mxu1 %vm4985_vm0, %v4984_v0 }
  0x8b   :  { %4172 = vmatpush3.bf16.msra.mxu0 %v4563_v35  ;;  %4180 = vmatpush3.bf16.msra.mxu1 %v4565_v36 }
  0x8c   :  { %4173 = vmatprep.subr.bf16.mxu0 %v4984_v0  ;;  %4181 = vmatprep.subr.bf16.mxu1 %v4984_v0 }
  0x8f   :  { %4174 = vmatpush3.bf16.msra.mxu0 %v4564_v37  ;;  %4182 = vmatpush3.bf16.msra.mxu1 %v4567_v38 }
  0x90   :  { %4187 = vmatprep.subr.bf16.mxu0 %v4984_v0  ;;  %4195 = vmatprep.subr.bf16.mxu1 %v4984_v0 }
  0x92   :  { %4184 = vmatmul.mubr.msk.bf16.vlgmr.msra.gmra.mrb[4].mxu1 %vm169_vm1, %v393_v40 }
  0x93   :  { %4199 = vmatprep.mubr.msk.bf16.mxu1 %vm4985_vm0, %v4984_v0 }
 0x15c   :  { %v207_v8 = vpop.f32.mrb[0].mxu0  ;;  %v262_v9 = vpop.f32.mrb[0].mxu1 }
 0x15d   :  { %v4161_v11 = vpop.f32.mrb[1].mxu0  ;;  %v263_v12 = vadd.f32 %v262_v9, %v207_v8  ;;  %v4169_v13 = vpop.f32.mrb[1].mxu1  ;;  %v5273_v8 = vld [vmem:[#allocation11] ss:$0 sm:$0xff] }
 0x15e   :  { %v210_v14 = vpop.f32.mrb[2].mxu0  ;;  %v265_v15 = vpop.f32.mrb[2].mxu1 }
 0x15f   :  { %v4162_v16 = vpop.f32.mrb[3].mxu0  ;;  %v275_v17 = vadd.f32 %v5181_v10, %v263_v12  ;;  %v4170_v18 = vpop.f32.mrb[3].mxu1 }
 0x161   :  { %4655 = vtanh.f32 %v275_v17  ;;  %v3841_v22 = vmul.f32 -1.442695, %v275_v17 }
 0x163   :  { %4657 = vpow2.f32 %v3841_v22 }
 0x165   :  { %v447_v59 = vpop.f32.mrb[4].mxu1 }
 0x166   :  { %v4185_v60 = vpop.f32.mrb[5].mxu1 }
 0x167   :  { %v450_v61 = vpop.f32.mrb[6].mxu1  ;;  %v779_v60 = vsel %vm778_vm6, 1, %v4986_v19 }
 0x168   :  { %v4186_v62 = vpop.f32.mrb[7].mxu1 }
 0x16b   :  { %v4656_v20 = vpop.eup %4655 }
 0x16c   :  { %289 = vrot.lane.b32.xlu0 %v4656_v20, %s4972_s18 }
 0x16d   :  { %v4658_v23 = vpop.eup %4657 }
 0x16e   :  { %v279_v24 = vadd.f32 1.0, %v4658_v23 }
 0x170   :  { %284 = vrot.lane.b32.xlu0 %v142_v21, %s4976_s6  ;;  %4659 = vrcp.f32 %v279_v24 }
 0x17a   :  { %v4660_v26 = vpop.eup %4659 }
 0x1de   :  { %v290_v27 = vpop.permute.xlu0 %289 }
 0x1df   :  { %v292_v28 = vmul.f32 %v4660_v26, %v290_v27 }
 0x1e1   :  { %294 = vrot.lane.b32.xlu1 %v292_v28, %s4976_s6 }
 0x1e2   :  { %v5199_v30 = vpop.permute.xlu0 %284 }
 0x1e3   :  { %v287_v31 = vmul.f32 %v4660_v26, %v5199_v30 }
 0x1e5   :  { %307 = vperm.xlu1 %4557, %v305_v29  }
 0x253   :  { %v295_v32 = vpop.permute.xlu1 %294 }
 0x254   :  { %v5202_v33 = vadd.f32 %v295_v32, %v287_v31  ;;  %v4571_v32 = vld [vmem:[#allocation14] sm:$0xff]  }
 0x255   :  { %4196 = vmatpush3.bf16.msra.mxu1 %v4571_v32 }
 0x256   :  { %4661 = vtanh.f32 %v5202_v33  ;;  %4197 = vmatprep.subr.bf16.mxu1 %v4984_v0 }
 0x260   :  { %v4662_v34 = vpop.eup %4661 }
 0x261   :  { %300 = vrot.lane.b32.xlu0 %v4662_v34, %s4972_s18  ;;  %v4572_v34 = vld [vmem:[#allocation14 + $0x8] sm:$0xff]  }
 0x262   :  { %4198 = vmatpush3.bf16.msra.mxu1 %v4572_v34 }
 0x263   :  { %4211 = vmatprep.subr.bf16.mxu1 %v4984_v0 }
 0x264   :  { %v5221_v41 = vpop.permute.xlu1 %307 }
 0x265   :  { %vm309_vm3 = vcmp.eq.s32.totalorder %v5221_v41, 1 }
 0x2d3   :  { %v301_v42 = vpop.permute.xlu0 %300 }
 0x2d4   :  { %v303_v43 = vmul.f32 %v4660_v26, %v301_v42  ;;  %v4573_v42 = vld [vmem:[#allocation6] sm:$0xff]  }
 0x2d6   :  { %v316_v44 = vsel %vm309_vm3, %v303_v43, 0.0 }
 0x2d7   :  { %v317_v45 = vpack.c.bf16 %v316_v44, %v316_v44  ;;  %v4574_v44 = vld [vmem:[#allocation6 + $0x8] sm:$0xff]  }
 0x2d9   :  { %329 = vrot.lane.b32.xlu1 %v317_v45, %s4976_s6  ;;  %v623_v45 = vld [vmem:[#allocation3 + $0x1] sm:$0x1] }
 0x2dd   :  { %524 = vrot.lane.b32.xlu1 %v3833_v46, %s4976_s6 }
 0x2e1   :  { %547 = vperm.xlu1 %4557, %v545_v47  }
 0x2e5   :  { %311 = vrot.lane.b32.xlu1 %v5166_v5, %s4987_s0 }
 0x34b   :  { %v330_v49 = vpop.permute.xlu1 %329 }
 0x34c   :  { %4176 = vmatmul.mubr.msk.bf16.vlgmr.msra.gmra.mrb[4].mxu0 %vm169_vm1, %v330_v49 }
 0x34d   :  { %4188 = vmatpush3.bf16.msra.mxu0 %v4566_v48  ;;  %4191 = vmatprep.mubr.msk.bf16.mxu0 %vm4985_vm0, %v4984_v0 }
 0x34e   :  { %4189 = vmatprep.subr.bf16.mxu0 %v4984_v0 }
 0x34f   :  { %v5252_v54 = vpop.permute.xlu1 %524 }
 0x351   :  { %4190 = vmatpush3.bf16.msra.mxu0 %v4568_v50 }
 0x352   :  { %4203 = vmatprep.subr.bf16.mxu0 %v4984_v0 }
 0x354   :  { %4192 = vmatmul.mubr.msk.bf16.vlgmr.msra.gmra.mrb[8].mxu0 %vm169_vm1, %v388_v51 }
 0x355   :  { %4204 = vmatpush3.bf16.msra.mxu0 %v4569_v52  ;;  %4207 = vmatprep.mubr.msk.bf16.mxu0 %vm4985_vm0, %v4984_v0 }
 0x356   :  { %4205 = vmatprep.subr.bf16.mxu0 %v4984_v0 }
 0x359   :  { %4206 = vmatpush3.bf16.msra.mxu0 %v4570_v53 }
 0x35a   :  { %4219 = vmatprep.subr.bf16.mxu0 %v4984_v0 }
 0x360   :  { %v5255_v55 = vpop.permute.xlu1 %547 }
 0x361   :  { %vm549_vm5 = vcmp.eq.s32.totalorder %v5255_v55, 1  ;;  %v4652_v55 = vld [vmem:[%s6023_s5 + $0x8] sm:$0xff]  }
 0x364   :  { %v312_v56 = vpop.permute.xlu1 %311 }
 0x365   :  { %v5259_v57 = vsel %vm309_vm3, %v303_v43, %v312_v56 }
 0x366   :  { %v628_v58 = vpack.c.bf16 %v5259_v57, %v5259_v57 }
 0x368   :  { %634 = vrot.lane.b32.xlu1 %v628_v58, %s4976_s6 }
 0x3da   :  { %v635_v63 = vpop.permute.xlu1 %634 }
 0x3db   :  { %4208 = vmatmul.mubr.msk.bf16.vlgmr.msra.gmra.mrb[12].mxu0 %vm169_vm1, %v635_v63 }
 0x3dc   :  { %4223 = vmatprep.mubr.msk.bf16.mxu0 %vm4985_vm0, %v4984_v0 }
 0x41f   :  { %v380_v2 = vpop.f32.mrb[4].mxu0 }
 0x420   :  { %v381_v3 = vadd.f32 %v5270_v1, %v380_v2  ;;  %v4177_v4 = vpop.f32.mrb[5].mxu0 }
 0x421   :  { %v383_v5 = vpop.f32.mrb[6].mxu0 }
 0x422   :  { %386 = vst [vmem:[#allocation2] sm:$0x3] %v381_v3  ;;  %v4178_v6 = vpop.f32.mrb[7].mxu0  ;;  %v5309_v5 = vsel %vm309_vm3, %v5202_v33, %v5199_v30  ;;  %v4578_v30 = vld [vmem:[#allocation9 + $0x8] sm:$0xff]  }
 0x427   :  { %v502_v7 = vpop.f32.mrb[8].mxu0 }
 0x428   :  { %v503_v9 = vadd.f32 %v502_v7, %v447_v59  ;;  %v4193_v11 = vpop.f32.mrb[9].mxu0 }
 0x429   :  { %v505_v12 = vpop.f32.mrb[10].mxu0  ;;  %v4575_v11 = vld [vmem:[%s6028_s10] sm:$0xff]  }
 0x42a   :  { %v515_v13 = vadd.f32 %v5273_v8, %v503_v9  ;;  %v4194_v14 = vpop.f32.mrb[11].mxu0  ;;  %v4576_v12 = vld [vmem:[#allocation9] sm:$0xff]   ;;  %4220 = vmatpush3.bf16.msra.mxu0 %v4575_v11 }
 0x42b   :  { %4221 = vmatprep.subr.bf16.mxu0 %v4984_v0 }
 0x42c   :  { %4663 = vtanh.f32 %v515_v13  ;;  %v3853_v16 = vmul.f32 -1.442695, %v515_v13  ;;  %v4577_v13 = vld [vmem:[%s6028_s10 + $0x8] sm:$0xff]  }
 0x42e   :  { %4665 = vpow2.f32 %v3853_v16  ;;  %4222 = vmatpush3.bf16.msra.mxu0 %v4577_v13 }
 0x42f   :  { %4235 = vmatprep.subr.bf16.mxu0 %v4984_v0 }
 0x436   :  { %v4664_v15 = vpop.eup %4663 }
 0x437   :  { %529 = vrot.lane.b32.xlu0 %v4664_v15, %s4972_s18 }
 0x438   :  { %v4666_v17 = vpop.eup %4665 }
 0x439   :  { %v519_v18 = vadd.f32 1.0, %v4666_v17 }
 0x43b   :  { %4667 = vrcp.f32 %v519_v18 }
 0x445   :  { %v4668_v20 = vpop.eup %4667 }
 0x446   :  { %v527_v28 = vmul.f32 %v4668_v20, %v5252_v54 }
 0x4a9   :  { %v530_v21 = vpop.permute.xlu0 %529 }
 0x4aa   :  { %v532_v22 = vmul.f32 %v4668_v20, %v530_v21 }
 0x4ac   :  { %534 = vrot.lane.b32.xlu0 %v532_v22, %s4976_s6  ;;  %v4579_v22 = vld [vmem:[%s6023_s5] sm:$0xff]  }
 0x4ae   :  { %v685_v23 = vpop.f32.mrb[12].mxu0 }
 0x4af   :  { %v4209_v24 = vpop.f32.mrb[13].mxu0 }
 0x4b0   :  { %v688_v26 = vpop.f32.mrb[14].mxu0 }
 0x4b1   :  { %v4210_v27 = vpop.f32.mrb[15].mxu0  ;;  %v4580_v26 = vld [vmem:[%s6023_s5 + $0x8] sm:$0xff]  }
 0x4b2   :  { %v853_v27 = vld [vmem:[#allocation3 + $0x6] sm:$0x1] }
 0x51e   :  { %v535_v29 = vpop.permute.xlu0 %534 }
 0x51f   :  { %v5279_v31 = vadd.f32 %v535_v29, %v527_v28 }
 0x521   :  { %4669 = vtanh.f32 %v5279_v31 }
 0x52b   :  { %v4670_v35 = vpop.eup %4669 }
 0x52c   :  { %540 = vrot.lane.b32.xlu0 %v4670_v35, %s4972_s18 }
 0x59e   :  { %v541_v36 = vpop.permute.xlu0 %540 }
 0x59f   :  { %v5285_v37 = vmul.f32 %v4668_v20, %v541_v36 }
 0x5a1   :  { %v556_v38 = vsel %vm549_vm5, %v5285_v37, 0.0 }
 0x5a2   :  { %v557_v40 = vpack.c.bf16 %v556_v38, %v556_v38 }
 0x5a4   :  { %563 = vrot.lane.b32.xlu0 %v557_v40, %s4976_s6 }
 0x616   :  { %v564_v43 = vpop.permute.xlu0 %563 }
 0x617   :  { %4200 = vmatmul.mubr.msk.bf16.vlgmr.msra.gmra.mrb[8].mxu1 %vm169_vm1, %v564_v43 }
 0x618   :  { %4212 = vmatpush3.bf16.msra.mxu1 %v4573_v42  ;;  %4215 = vmatprep.mubr.msk.bf16.mxu1 %vm4985_vm0, %v4984_v0 }
 0x619   :  { %4213 = vmatprep.subr.bf16.mxu1 %v4984_v0 }
 0x61c   :  { %4214 = vmatpush3.bf16.msra.mxu1 %v4574_v44 }
 0x61d   :  { %4227 = vmatprep.subr.bf16.mxu1 %v4984_v0 }
 0x61f   :  { %4216 = vmatmul.mubr.msk.bf16.vlgmr.msra.gmra.mrb[12].mxu1 %vm169_vm1, %v623_v45 }
 0x620   :  { %4231 = vmatprep.mubr.msk.bf16.mxu1 %vm4985_vm0, %v4984_v0  ;;  %4228 = vmatpush3.bf16.msra.mxu1 %v4576_v12 }
 0x621   :  { %4229 = vmatprep.subr.bf16.mxu1 %v4984_v0 }
 0x624   :  { %4230 = vmatpush3.bf16.msra.mxu1 %v4578_v30 }
 0x625   :  { %4243 = vmatprep.subr.bf16.mxu1 %v4984_v0 }
 0x6ea   :  { %v614_v46 = vpop.f32.mrb[8].mxu1 }
 0x6eb   :  { %621 = vst [vmem:[#allocation15 + $0xe] sm:$0x3] %v614_v46  ;;  %v4201_v47 = vpop.f32.mrb[9].mxu1 }
 0x6ec   :  { %v617_v48 = vpop.f32.mrb[10].mxu1 }
 0x6ed   :  { %v4202_v49 = vpop.f32.mrb[11].mxu1 }
 0x6ee   :  { %v1009_v49 = vsel %vm1008_vm8, 1, %v4986_v19 }
 0x6f2   :  { %v740_v50 = vpop.f32.mrb[12].mxu1 }
 0x6f3   :  { %v741_v51 = vadd.f32 %v740_v50, %v685_v23  ;;  %v4217_v52 = vpop.f32.mrb[13].mxu1 }
 0x6f4   :  { %v743_v53 = vpop.f32.mrb[14].mxu1 }
 0x6f5   :  { %v753_v56 = vadd.f32 %v5181_v10, %v741_v51  ;;  %v4218_v58 = vpop.f32.mrb[15].mxu1 }
 0x6f7   :  { %4671 = vtanh.f32 %v753_v56  ;;  %v3864_v61 = vmul.f32 -1.442695, %v753_v56 }
 0x6f9   :  { %4673 = vpow2.f32 %v3864_v61 }
 0x701   :  { %v4672_v59 = vpop.eup %4671 }
 0x702   :  { %763 = vrot.lane.b32.xlu0 %v4672_v59, %s4972_s18  ;;  %v4581_v59 = vld [vmem:[#allocation8] sm:$0xff]  }
 0x703   :  { %v4674_v62 = vpop.eup %4673 }
 0x704   :  { %v757_v63 = vadd.f32 1.0, %v4674_v62 }
 0x706   :  { %781 = vperm.xlu0 %4558, %v779_v60   ;;  %4675 = vrcp.f32 %v757_v63  ;;  %v5373_v60 = vsel %vm549_vm5, %v5279_v31, %v5252_v54  ;;  %v4582_v63 = vld [vmem:[#allocation8 + $0x8] sm:$0xff]  }
 0x710   :  { %v4676_v2 = vpop.eup %4675 }
 0x711   :  { %v761_v6 = vmul.f32 %v4676_v2, %v5309_v5 }
 0x774   :  { %v764_v3 = vpop.permute.xlu0 %763 }
 0x775   :  { %v766_v4 = vmul.f32 %v4676_v2, %v764_v3  ;;  %v4583_v3 = vld [vmem:[#allocation14] sm:$0xff]  }
 0x777   :  { %768 = vrot.lane.b32.xlu1 %v766_v4, %s4976_s6  ;;  %v4584_v4 = vld [vmem:[#allocation14 + $0x8] sm:$0xff]  }
 0x785   :  { %v5328_v14 = vpop.permute.xlu0 %781 }
 0x786   :  { %vm783_vm7 = vcmp.eq.s32.totalorder %v5328_v14, 1 }
 0x7e9   :  { %v769_v7 = vpop.permute.xlu1 %768 }
 0x7ea   :  { %v5312_v9 = vadd.f32 %v769_v7, %v761_v6 }
 0x7ec   :  { %4677 = vtanh.f32 %v5312_v9 }
 0x7f6   :  { %v4678_v33 = vpop.eup %4677 }
 0x7f7   :  { %774 = vrot.lane.b32.xlu1 %v4678_v33, %s4972_s18  ;;  %v4585_v33 = vld [vmem:[#allocation6] sm:$0xff]  }
 0x7fb   :  { %551 = vrot.lane.b32.xlu1 %v5215_v39, %s4987_s0 }
 0x869   :  { %v775_v15 = vpop.permute.xlu1 %774 }
 0x86a   :  { %v5330_v16 = vmul.f32 %v4676_v2, %v775_v15 }
 0x86c   :  { %v786_v17 = vsel %vm783_vm7, %v5330_v16, 0.0  ;;  %v5385_v54 = vsel %vm783_vm7, %v5330_v16, %v5259_v57  ;;  %v4586_v16 = vld [vmem:[#allocation6 + $0x8] sm:$0xff]  }
 0x86d   :  { %v552_v18 = vpop.permute.xlu1 %551  ;;  %v787_v20 = vpack.c.bf16 %v786_v17, %v786_v17  ;;  %v1088_v31 = vpack.c.bf16 %v5385_v54, %v5385_v54  ;;  %v1083_v17 = vld [vmem:[#allocation3 + $0x2] sm:$0x1] }
 0x86e   :  { %v5339_v21 = vsel %vm549_vm5, %v5285_v37, %v552_v18 }
 0x86f   :  { %793 = vrot.lane.b32.xlu0 %v787_v20, %s4976_s6  ;;  %v858_v39 = vpack.c.bf16 %v5339_v21, %v5339_v21 }
 0x871   :  { %864 = vrot.lane.b32.xlu1 %v858_v39, %s4976_s6 }
 0x8e1   :  { %v794_v23 = vpop.permute.xlu0 %793 }
 0x8e2   :  { %4224 = vmatmul.mubr.msk.bf16.vlgmr.msra.gmra.mrb[16].mxu0 %vm169_vm1, %v794_v23 }
 0x8e3   :  { %4236 = vmatpush3.bf16.msra.mxu0 %v4579_v22  ;;  %v865_v24 = vpop.permute.xlu1 %864  ;;  %4239 = vmatprep.mubr.msk.bf16.mxu0 %vm4985_vm0, %v4984_v0 }
 0x8e4   :  { %4232 = vmatmul.mubr.msk.bf16.vlgmr.msra.gmra.mrb[16].mxu1 %vm169_vm1, %v865_v24  ;;  %4237 = vmatprep.subr.bf16.mxu0 %v4984_v0 }
 0x8e5   :  { %4247 = vmatprep.mubr.msk.bf16.mxu1 %vm4985_vm0, %v4984_v0  ;;  %4244 = vmatpush3.bf16.msra.mxu1 %v4583_v3  ;;  %v4591_v3 = vld [vmem:[%s6023_s5] sm:$0xff]  }
 0x8e6   :  { %4245 = vmatprep.subr.bf16.mxu1 %v4984_v0 }
 0x8e7   :  { %4238 = vmatpush3.bf16.msra.mxu0 %v4580_v26 }
 0x8e8   :  { %4251 = vmatprep.subr.bf16.mxu0 %v4984_v0 }
 0x8e9   :  { %4246 = vmatpush3.bf16.msra.mxu1 %v4584_v4 }
 0x8ea   :  { %4240 = vmatmul.mubr.msk.bf16.vlgmr.msra.gmra.mrb[20].mxu0 %vm169_vm1, %v853_v27  ;;  %4259 = vmatprep.subr.bf16.mxu1 %v4984_v0 }
 0x8eb   :  { %4255 = vmatprep.mubr.msk.bf16.mxu0 %vm4985_vm0, %v4984_v0  ;;  %4252 = vmatpush3.bf16.msra.mxu0 %v4581_v59 }
 0x8ec   :  { %4253 = vmatprep.subr.bf16.mxu0 %v4984_v0 }
 0x8ef   :  { %4254 = vmatpush3.bf16.msra.mxu0 %v4582_v63 }
 0x8f0   :  { %4267 = vmatprep.subr.bf16.mxu0 %v4984_v0 }
 0x9b5   :  { %v844_v28 = vpop.f32.mrb[16].mxu0 }
 0x9b6   :  { %v845_v29 = vadd.f32 %v5270_v1, %v844_v28  ;;  %v4225_v32 = vpop.f32.mrb[17].mxu0 }
 0x9b7   :  { %v847_v34 = vpop.f32.mrb[18].mxu0  ;;  %v915_v35 = vpop.f32.mrb[16].mxu1 }
 0x9b8   :  { %851 = vst [vmem:[#allocation2 + $0x2] sm:$0x3] %v845_v29  ;;  %v4226_v36 = vpop.f32.mrb[19].mxu0  ;;  %v4233_v37 = vpop.f32.mrb[17].mxu1 }
 0x9b9   :  { %v918_v38 = vpop.f32.mrb[18].mxu1 }
 0x9ba   :  { %v4234_v40 = vpop.f32.mrb[19].mxu1  ;;  %v1239_v38 = vsel %vm1238_vm10, 1, %v4986_v19 }
 0x9bd   :  { %v970_v42 = vpop.f32.mrb[20].mxu0 }
 0x9be   :  { %v971_v43 = vadd.f32 %v970_v42, %v915_v35  ;;  %v4241_v44 = vpop.f32.mrb[21].mxu0 }
 0x9bf   :  { %v973_v45 = vpop.f32.mrb[22].mxu0 }
 0x9c0   :  { %v983_v46 = vadd.f32 %v5273_v8, %v971_v43  ;;  %v4242_v47 = vpop.f32.mrb[23].mxu0 }
 0x9c1   :  { %v5422_v47 = vsel %vm783_vm7, %v5312_v9, %v5309_v5  ;;  %v4590_v5 = vld [vmem:[%s6028_s10 + $0x8] sm:$0xff]  }
 0x9c2   :  { %4679 = vtanh.f32 %v983_v46  ;;  %v3875_v50 = vmul.f32 -1.442695, %v983_v46 }
 0x9c4   :  { %4681 = vpow2.f32 %v3875_v50  ;;  %v4588_v50 = vld [vmem:[#allocation9 + $0x8] sm:$0xff]  }
 0x9cc   :  { %v4680_v48 = vpop.eup %4679 }
 0x9cd   :  { %993 = vrot.lane.b32.xlu0 %v4680_v48, %s4972_s18 }
 0x9ce   :  { %v4682_v51 = vpop.eup %4681 }
 0x9cf   :  { %v987_v52 = vadd.f32 1.0, %v4682_v51 }
 0x9d1   :  { %1011 = vperm.xlu0 %4558, %v1009_v49   ;;  %4683 = vrcp.f32 %v987_v52  ;;  %v4589_v52 = vld [vmem:[%s6028_s10] sm:$0xff]  }
 0x9db   :  { %v4684_v53 = vpop.eup %4683 }
 0x9dc   :  { %v991_v61 = vmul.f32 %v4684_v53, %v5373_v60 }
 0xa3f   :  { %v994_v56 = vpop.permute.xlu0 %993 }
 0xa40   :  { %v996_v58 = vmul.f32 %v4684_v53, %v994_v56 }
 0xa42   :  { %998 = vrot.lane.b32.xlu1 %v996_v58, %s4976_s6 }
 0xa50   :  { %v5392_v7 = vpop.permute.xlu0 %1011 }
 0xa51   :  { %vm1013_vm9 = vcmp.eq.s32.totalorder %v5392_v7, 1 }
 0xab4   :  { %v999_v62 = vpop.permute.xlu1 %998 }
 0xab5   :  { %v5376_v2 = vadd.f32 %v999_v62, %v991_v61 }
 0xab7   :  { %4685 = vtanh.f32 %v5376_v2 }
 0xac1   :  { %v4686_v6 = vpop.eup %4685 }
 0xac2   :  { %1004 = vrot.lane.b32.xlu1 %v4686_v6, %s4972_s18  ;;  %v4592_v6 = vld [vmem:[%s6023_s5 + $0x8] sm:$0xff]  }
 0xac6   :  { %1094 = vrot.lane.b32.xlu1 %v1088_v31, %s4976_s6  ;;  %v1313_v31 = vld [vmem:[#allocation3 + $0x5] sm:$0x1] }
 0xb34   :  { %v1005_v11 = vpop.permute.xlu1 %1004 }
 0xb35   :  { %v5394_v12 = vmul.f32 %v4684_v53, %v1005_v11 }
 0xb37   :  { %v1016_v57 = vsel %vm1013_vm9, %v5394_v12, 0.0  ;;  %v5440_v53 = vsel %vm1013_vm9, %v5394_v12, %v5339_v21 }
 0xb38   :  { %v1095_v13 = vpop.permute.xlu1 %1094  ;;  %v1017_v30 = vpack.c.bf16 %v1016_v57, %v1016_v57  ;;  %v1318_v56 = vpack.c.bf16 %v5440_v53, %v5440_v53 }
 0xb39   :  { %4256 = vmatmul.mubr.msk.bf16.vlgmr.msra.gmra.mrb[24].mxu0 %vm169_vm1, %v1095_v13 }
 0xb3a   :  { %1023 = vrot.lane.b32.xlu0 %v1017_v30, %s4976_s6  ;;  %4271 = vmatprep.mubr.msk.bf16.mxu0 %vm4985_vm0, %v4984_v0 }
 0xb3b   :  { %4268 = vmatpush3.bf16.msra.mxu0 %v4589_v52 }
 0xb3c   :  { %4269 = vmatprep.subr.bf16.mxu0 %v4984_v0 }
 0xb3f   :  { %4270 = vmatpush3.bf16.msra.mxu0 %v4590_v5 }
 0xb40   :  { %4283 = vmatprep.subr.bf16.mxu0 %v4984_v0 }
 0xbac   :  { %v1024_v15 = vpop.permute.xlu0 %1023 }
 0xbad   :  { %4248 = vmatmul.mubr.msk.bf16.vlgmr.msra.gmra.mrb[20].mxu1 %vm169_vm1, %v1024_v15 }
 0xbae   :  { %4260 = vmatpush3.bf16.msra.mxu1 %v4585_v33  ;;  %4263 = vmatprep.mubr.msk.bf16.mxu1 %vm4985_vm0, %v4984_v0 }
 0xbaf   :  { %4261 = vmatprep.subr.bf16.mxu1 %v4984_v0 }
 0xbb2   :  { %4262 = vmatpush3.bf16.msra.mxu1 %v4586_v16 }
 0xbb3   :  { %4275 = vmatprep.subr.bf16.mxu1 %v4984_v0 }
 0xbb5   :  { %4264 = vmatmul.mubr.msk.bf16.vlgmr.msra.gmra.mrb[24].mxu1 %vm169_vm1, %v1083_v17 }
 0xbb6   :  { %4279 = vmatprep.mubr.msk.bf16.mxu1 %vm4985_vm0, %v4984_v0 }
 0xc0c   :  { %v1145_v18 = vpop.f32.mrb[24].mxu0 }
 0xc0d   :  { %v4257_v20 = vpop.f32.mrb[25].mxu0 }
 0xc0e   :  { %v1148_v39 = vpop.f32.mrb[26].mxu0 }
 0xc0f   :  { %v4258_v22 = vpop.f32.mrb[27].mxu0 }
 0xc80   :  { %v1074_v23 = vpop.f32.mrb[20].mxu1 }
 0xc81   :  { %1081 = vst [vmem:[#allocation15 + $0xc] sm:$0x3] %v1074_v23  ;;  %v4249_v24 = vpop.f32.mrb[21].mxu1 }
 0xc82   :  { %v1077_v26 = vpop.f32.mrb[22].mxu1 }
 0xc83   :  { %v4250_v27 = vpop.f32.mrb[23].mxu1 }
 0xc84   :  { %v1469_v27 = vsel %vm1468_vm12, 1, %v4986_v19 }
 0xc88   :  { %v1200_v28 = vpop.f32.mrb[24].mxu1 }
 0xc89   :  { %v1201_v29 = vadd.f32 %v1200_v28, %v1145_v18  ;;  %v4265_v32 = vpop.f32.mrb[25].mxu1 }
 0xc8a   :  { %v1203_v34 = vpop.f32.mrb[26].mxu1 }
 0xc8b   :  { %v1213_v35 = vadd.f32 %v5181_v10, %v1201_v29  ;;  %v4266_v36 = vpop.f32.mrb[27].mxu1  ;;  %v4587_v10 = vld [vmem:[#allocation9] sm:$0xff]  }
 0xc8c   :  { %4276 = vmatpush3.bf16.msra.mxu1 %v4587_v10 }
 0xc8d   :  { %4687 = vtanh.f32 %v1213_v35  ;;  %v3886_v40 = vmul.f32 -1.442695, %v1213_v35  ;;  %4277 = vmatprep.subr.bf16.mxu1 %v4984_v0 }
 0xc8f   :  { %4689 = vpow2.f32 %v3886_v40 }
 0xc90   :  { %4278 = vmatpush3.bf16.msra.mxu1 %v4588_v50 }
 0xc91   :  { %4291 = vmatprep.subr.bf16.mxu1 %v4984_v0 }
 0xc97   :  { %v4688_v37 = vpop.eup %4687 }
 0xc98   :  { %1223 = vrot.lane.b32.xlu0 %v4688_v37, %s4972_s18  ;;  %v4593_v37 = vld [vmem:[#allocation8] sm:$0xff]  }
 0xc99   :  { %v4690_v42 = vpop.eup %4689 }
 0xc9a   :  { %v1217_v43 = vadd.f32 1.0, %v4690_v42 }
 0xc9c   :  { %1241 = vperm.xlu0 %4558, %v1239_v38   ;;  %4691 = vrcp.f32 %v1217_v43  ;;  %v5484_v38 = vsel %vm1013_vm9, %v5376_v2, %v5373_v60  ;;  %v4594_v43 = vld [vmem:[#allocation8 + $0x8] sm:$0xff]  }
 0xca6   :  { %v4692_v44 = vpop.eup %4691 }
 0xca7   :  { %v1221_v48 = vmul.f32 %v4692_v44, %v5422_v47 }
 0xd0a   :  { %v1224_v45 = vpop.permute.xlu0 %1223 }
 0xd0b   :  { %v1226_v46 = vmul.f32 %v4692_v44, %v1224_v45  ;;  %v4595_v45 = vld [vmem:[#allocation14] sm:$0xff]  }
 0xd0d   :  { %1228 = vrot.lane.b32.xlu1 %v1226_v46, %s4976_s6  ;;  %v4596_v46 = vld [vmem:[#allocation14 + $0x8] sm:$0xff]  }
 0xd1b   :  { %v5447_v58 = vpop.permute.xlu0 %1241 }
 0xd1c   :  { %vm1243_vm11 = vcmp.eq.s32.totalorder %v5447_v58, 1 }
 0xd7f   :  { %v1229_v49 = vpop.permute.xlu1 %1228 }
 0xd80   :  { %v5425_v51 = vadd.f32 %v1229_v49, %v1221_v48 }
 0xd82   :  { %4693 = vtanh.f32 %v5425_v51  ;;  %v5538_v25 = vsel %vm1243_vm11, %v5425_v51, %v5422_v47  ;;  %v4602_v47 = vld [vmem:[%s6028_s10 + $0x8] sm:$0xff]  }
 0xd8c   :  { %v4694_v9 = vpop.eup %4693 }
 0xd8d   :  { %1234 = vrot.lane.b32.xlu1 %v4694_v9, %s4972_s18  ;;  %v4597_v9 = vld [vmem:[#allocation6] sm:$0xff]  }
 0xd91   :  { %1324 = vrot.lane.b32.xlu1 %v1318_v56, %s4976_s6 }
 0xdff   :  { %v1235_v59 = vpop.permute.xlu1 %1234 }
 0xe00   :  { %v5449_v61 = vmul.f32 %v4692_v44, %v1235_v59  ;;  %v4598_v59 = vld [vmem:[#allocation6 + $0x8] sm:$0xff]  }
 0xe02   :  { %v1246_v21 = vsel %vm1243_vm11, %v5449_v61, 0.0  ;;  %v5496_v60 = vsel %vm1243_vm11, %v5449_v61, %v5385_v54  ;;  %v1543_v61 = vld [vmem:[#allocation3 + $0x3] sm:$0x1] }
 0xe03   :  { %v1325_v62 = vpop.permute.xlu1 %1324  ;;  %v1247_v63 = vpack.c.bf16 %v1246_v21, %v1246_v21  ;;  %v1548_v2 = vpack.c.bf16 %v5496_v60, %v5496_v60 }
 0xe04   :  { %4280 = vmatmul.mubr.msk.bf16.vlgmr.msra.gmra.mrb[28].mxu1 %vm169_vm1, %v1325_v62 }
 0xe05   :  { %1253 = vrot.lane.b32.xlu0 %v1247_v63, %s4976_s6  ;;  %4295 = vmatprep.mubr.msk.bf16.mxu1 %vm4985_vm0, %v4984_v0 }
 0xe06   :  { %4292 = vmatpush3.bf16.msra.mxu1 %v4595_v45 }
 0xe07   :  { %4293 = vmatprep.subr.bf16.mxu1 %v4984_v0 }
 0xe0a   :  { %4294 = vmatpush3.bf16.msra.mxu1 %v4596_v46 }
 0xe0b   :  { %4307 = vmatprep.subr.bf16.mxu1 %v4984_v0 }
 0xe77   :  { %v1254_v4 = vpop.permute.xlu0 %1253 }
 0xe78   :  { %4272 = vmatmul.mubr.msk.bf16.vlgmr.msra.gmra.mrb[28].mxu0 %vm169_vm1, %v1254_v4 }
 0xe79   :  { %4284 = vmatpush3.bf16.msra.mxu0 %v4591_v3  ;;  %4287 = vmatprep.mubr.msk.bf16.mxu0 %vm4985_vm0, %v4984_v0 }
 0xe7a   :  { %4285 = vmatprep.subr.bf16.mxu0 %v4984_v0 }
 0xe7d   :  { %4286 = vmatpush3.bf16.msra.mxu0 %v4592_v6 }
 0xe7e   :  { %4299 = vmatprep.subr.bf16.mxu0 %v4984_v0 }
 0xe80   :  { %4288 = vmatmul.mubr.msk.bf16.vlgmr.msra.gmra.mrb[32].mxu0 %vm169_vm1, %v1313_v31 }
 0xe81   :  { %4303 = vmatprep.mubr.msk.bf16.mxu0 %vm4985_vm0, %v4984_v0  ;;  %4300 = vmatpush3.bf16.msra.mxu0 %v4593_v37 }
 0xe82   :  { %4301 = vmatprep.subr.bf16.mxu0 %v4984_v0 }
 0xe85   :  { %4302 = vmatpush3.bf16.msra.mxu0 %v4594_v43 }
 0xe86   :  { %4315 = vmatprep.subr.bf16.mxu0 %v4984_v0 }
 0xed7   :  { %v1375_v11 = vpop.f32.mrb[28].mxu1 }
 0xed8   :  { %v4281_v12 = vpop.f32.mrb[29].mxu1 }
 0xed9   :  { %v1378_v57 = vpop.f32.mrb[30].mxu1 }
 0xeda   :  { %v4282_v13 = vpop.f32.mrb[31].mxu1  ;;  %v5526_v57 = vld [vmem:[%s6022_s4] ss:$0 sm:$0xff] }
 0xf4b   :  { %v1304_v30 = vpop.f32.mrb[28].mxu0 }
 0xf4c   :  { %v1305_v33 = vadd.f32 %v5270_v1, %v1304_v30  ;;  %v4273_v15 = vpop.f32.mrb[29].mxu0 }
 0xf4d   :  { %v1307_v16 = vpop.f32.mrb[30].mxu0 }
 0xf4e   :  { %1311 = vst [vmem:[#allocation2 + $0x4] sm:$0x3] %v1305_v33  ;;  %v4274_v17 = vpop.f32.mrb[31].mxu0 }
 0xf53   :  { %v1430_v18 = vpop.f32.mrb[32].mxu0 }
 0xf54   :  { %v1431_v20 = vadd.f32 %v1430_v18, %v1375_v11  ;;  %v4289_v39 = vpop.f32.mrb[33].mxu0  ;;  %v1699_v18 = vsel %vm1698_vm14, 1, %v4986_v19 }
 0xf55   :  { %v1433_v22 = vpop.f32.mrb[34].mxu0 }
 0xf56   :  { %v1443_v23 = vadd.f32 %v5273_v8, %v1431_v20  ;;  %v4290_v24 = vpop.f32.mrb[35].mxu0 }
 0xf58   :  { %4695 = vtanh.f32 %v1443_v23  ;;  %v3897_v28 = vmul.f32 -1.442695, %v1443_v23 }
 0xf5a   :  { %4697 = vpow2.f32 %v3897_v28 }
 0xf62   :  { %v4696_v26 = vpop.eup %4695 }
 0xf63   :  { %1453 = vrot.lane.b32.xlu0 %v4696_v26, %s4972_s18 }
 0xf64   :  { %v4698_v29 = vpop.eup %4697 }
 0xf65   :  { %v1447_v32 = vadd.f32 1.0, %v4698_v29 }
 0xf67   :  { %1471 = vperm.xlu0 %4558, %v1469_v27   ;;  %4699 = vrcp.f32 %v1447_v32  ;;  %v4599_v27 = vld [vmem:[#allocation9] sm:$0xff]   ;;  %v4600_v32 = vld [vmem:[#allocation9 + $0x8] sm:$0xff]  }
 0xf71   :  { %v4700_v34 = vpop.eup %4699 }
 0xf72   :  { %v1451_v40 = vmul.f32 %v4700_v34, %v5484_v38 }
 0xfd5   :  { %v1454_v35 = vpop.permute.xlu0 %1453 }
 0xfd6   :  { %v1456_v36 = vmul.f32 %v4700_v34, %v1454_v35  ;;  %v4601_v35 = vld [vmem:[%s6028_s10] sm:$0xff]  }
 0xfd8   :  { %1458 = vrot.lane.b32.xlu1 %v1456_v36, %s4976_s6 }
 0xfe6   :  { %v5503_v48 = vpop.permute.xlu0 %1471 }
 0xfe7   :  { %vm1473_vm13 = vcmp.eq.s32.totalorder %v5503_v48, 1  ;;  %v4638_v48 = vld [vmem:[%s6028_s10 + $0x8] sm:$0xff]  }
0x104a   :  { %v1459_v42 = vpop.permute.xlu1 %1458 }
0x104b   :  { %v5487_v44 = vadd.f32 %v1459_v42, %v1451_v40 }
0x104d   :  { %4701 = vtanh.f32 %v5487_v44 }
0x1057   :  { %v4702_v10 = vpop.eup %4701 }
0x1058   :  { %1464 = vrot.lane.b32.xlu1 %v4702_v10, %s4972_s18  ;;  %v4603_v10 = vld [vmem:[%s6023_s5] sm:$0xff]  }
0x105c   :  { %1554 = vrot.lane.b32.xlu1 %v1548_v2, %s4976_s6 }
0x10ca   :  { %v1465_v49 = vpop.permute.xlu1 %1464 }
0x10cb   :  { %v5505_v50 = vmul.f32 %v4700_v34, %v1465_v49  ;;  %v4604_v49 = vld [vmem:[%s6023_s5 + $0x8] sm:$0xff]  }
0x10cd   :  { %v1476_v54 = vsel %vm1473_vm13, %v5505_v50, 0.0  ;;  %v5556_v36 = vsel %vm1473_vm13, %v5505_v50, %v5440_v53  ;;  %v1773_v50 = vld [vmem:[#allocation3 + $0x4] sm:$0x1] }
0x10ce   :  { %v1555_v52 = vpop.permute.xlu1 %1554  ;;  %v1477_v5 = vpack.c.bf16 %v1476_v54, %v1476_v54  ;;  %v1778_v37 = vpack.c.bf16 %v5556_v36, %v5556_v36 }
0x10cf   :  { %4304 = vmatmul.mubr.msk.bf16.vlgmr.msra.gmra.mrb[36].mxu0 %vm169_vm1, %v1555_v52 }
0x10d0   :  { %1483 = vrot.lane.b32.xlu0 %v1477_v5, %s4976_s6  ;;  %4319 = vmatprep.mubr.msk.bf16.mxu0 %vm4985_vm0, %v4984_v0 }
0x10d1   :  { %4316 = vmatpush3.bf16.msra.mxu0 %v4601_v35 }
0x10d2   :  { %4317 = vmatprep.subr.bf16.mxu0 %v4984_v0 }
0x10d5   :  { %4318 = vmatpush3.bf16.msra.mxu0 %v4602_v47 }
0x10d6   :  { %4331 = vmatprep.subr.bf16.mxu0 %v4984_v0 }
0x1142   :  { %v1484_v56 = vpop.permute.xlu0 %1483 }
0x1143   :  { %4296 = vmatmul.mubr.msk.bf16.vlgmr.msra.gmra.mrb[32].mxu1 %vm169_vm1, %v1484_v56 }
0x1144   :  { %4308 = vmatpush3.bf16.msra.mxu1 %v4597_v9  ;;  %4311 = vmatprep.mubr.msk.bf16.mxu1 %vm4985_vm0, %v4984_v0 }
0x1145   :  { %4309 = vmatprep.subr.bf16.mxu1 %v4984_v0 }
0x1148   :  { %4310 = vmatpush3.bf16.msra.mxu1 %v4598_v59 }
0x1149   :  { %4323 = vmatprep.subr.bf16.mxu1 %v4984_v0 }
0x114b   :  { %4312 = vmatmul.mubr.msk.bf16.vlgmr.msra.gmra.mrb[36].mxu1 %vm169_vm1, %v1543_v61 }
0x114c   :  { %4327 = vmatprep.mubr.msk.bf16.mxu1 %vm4985_vm0, %v4984_v0  ;;  %4324 = vmatpush3.bf16.msra.mxu1 %v4599_v27 }
0x114d   :  { %4325 = vmatprep.subr.bf16.mxu1 %v4984_v0 }
0x1150   :  { %4326 = vmatpush3.bf16.msra.mxu1 %v4600_v32 }
0x1151   :  { %4339 = vmatprep.subr.bf16.mxu1 %v4984_v0 }
0x11a2   :  { %v1605_v21 = vpop.f32.mrb[36].mxu0 }
0x11a3   :  { %v4305_v62 = vpop.f32.mrb[37].mxu0 }
0x11a4   :  { %v1608_v63 = vpop.f32.mrb[38].mxu0 }
0x11a5   :  { %v4306_v3 = vpop.f32.mrb[39].mxu0 }
0x1216   :  { %v1534_v4 = vpop.f32.mrb[32].mxu1 }
0x1217   :  { %1541 = vst [vmem:[#allocation15 + $0xa] sm:$0x3] %v1534_v4  ;;  %v4297_v6 = vpop.f32.mrb[33].mxu1 }
0x1218   :  { %v1537_v31 = vpop.f32.mrb[34].mxu1 }
0x1219   :  { %v4298_v11 = vpop.f32.mrb[35].mxu1 }
0x121e   :  { %v1660_v12 = vpop.f32.mrb[36].mxu1 }
0x121f   :  { %v1661_v13 = vadd.f32 %v1660_v12, %v1605_v21  ;;  %v4313_v30 = vpop.f32.mrb[37].mxu1  ;;  %v4783_v12 = vld [vmem:[%s6019_s1] sm:$0x3] }
0x1220   :  { %v1663_v33 = vpop.f32.mrb[38].mxu1  ;;  %vm1928_vm2 = vcmp.gt.s32.totalorder %v4783_v12, 4 }
0x1221   :  { %v1673_v15 = vadd.f32 %v5526_v57, %v1661_v13  ;;  %v4314_v16 = vpop.f32.mrb[39].mxu1 }
0x1223   :  { %4703 = vtanh.f32 %v1673_v15  ;;  %v3908_v20 = vmul.f32 -1.442695, %v1673_v15 }
0x1225   :  { %4705 = vpow2.f32 %v3908_v20 }
0x122d   :  { %v4704_v17 = vpop.eup %4703 }
0x122e   :  { %1683 = vrot.lane.b32.xlu0 %v4704_v17, %s4972_s18 }
0x122f   :  { %v4706_v39 = vpop.eup %4705 }
0x1230   :  { %v1677_v22 = vadd.f32 1.0, %v4706_v39 }
0x1232   :  { %1701 = vperm.xlu0 %4558, %v1699_v18   ;;  %4707 = vrcp.f32 %v1677_v22  ;;  %v4605_v18 = vld [vmem:[#allocation8] sm:$0xff]   ;;  %v4606_v22 = vld [vmem:[#allocation8 + $0x8] sm:$0xff]  }
0x123c   :  { %v4708_v23 = vpop.eup %4707 }
0x123d   :  { %v1681_v28 = vmul.f32 %v4708_v23, %v5538_v25 }
0x12a0   :  { %v1684_v24 = vpop.permute.xlu0 %1683 }
0x12a1   :  { %v1686_v26 = vmul.f32 %v4708_v23, %v1684_v24  ;;  %v4607_v24 = vld [vmem:[#allocation14] sm:$0xff]  }
0x12a3   :  { %1688 = vrot.lane.b32.xlu1 %v1686_v26, %s4976_s6  ;;  %v4608_v26 = vld [vmem:[#allocation14 + $0x8] sm:$0xff]  }
0x12b1   :  { %v5563_v40 = vpop.permute.xlu0 %1701 }
0x12b2   :  { %vm1703_vm15 = vcmp.eq.s32.totalorder %v5563_v40, 1 }
0x1315   :  { %v1689_v29 = vpop.permute.xlu1 %1688 }
0x1316   :  { %v5541_v34 = vadd.f32 %v1689_v29, %v1681_v28 }
0x1318   :  { %4709 = vtanh.f32 %v5541_v34  ;;  %v5649_v12 = vsel %vm1703_vm15, %v5541_v34, %v5538_v25  ;;  %v4614_v25 = vld [vmem:[%s6028_s10 + $0x8] sm:$0xff]  }
0x1322   :  { %v4710_v51 = vpop.eup %4709 }
0x1323   :  { %1694 = vrot.lane.b32.xlu1 %v4710_v51, %s4972_s18  ;;  %v4609_v51 = vld [vmem:[#allocation6] sm:$0xff]  }
0x1327   :  { %1784 = vrot.lane.b32.xlu1 %v1778_v37, %s4976_s6 }
0x1395   :  { %v1695_v42 = vpop.permute.xlu1 %1694 }
0x1396   :  { %v5565_v43 = vmul.f32 %v4708_v23, %v1695_v42  ;;  %v4610_v42 = vld [vmem:[#allocation6 + $0x8] sm:$0xff]  }
0x1398   :  { %v1706_v53 = vsel %vm1703_vm15, %v5565_v43, 0.0 }
0x1399   :  { %v1785_v45 = vpop.permute.xlu1 %1784  ;;  %v1707_v46 = vpack.c.bf16 %v1706_v53, %v1706_v53 }
0x139a   :  { %4328 = vmatmul.mubr.msk.bf16.vlgmr.msra.gmra.mrb[40].mxu1 %vm169_vm1, %v1785_v45 }
0x139b   :  { %1713 = vrot.lane.b32.xlu0 %v1707_v46, %s4976_s6  ;;  %4343 = vmatprep.mubr.msk.bf16.mxu1 %vm4985_vm0, %v4984_v0 }
0x139c   :  { %4340 = vmatpush3.bf16.msra.mxu1 %v4607_v24 }
0x139d   :  { %4341 = vmatprep.subr.bf16.mxu1 %v4984_v0 }
0x13a0   :  { %4342 = vmatpush3.bf16.msra.mxu1 %v4608_v26  ;;  %v4616_v26 = vld [vmem:[%s6023_s5 + $0x8] sm:$0xff]  }
0x13a1   :  { %4355 = vmatprep.subr.bf16.mxu1 %v4984_v0 }
0x140d   :  { %v1714_v2 = vpop.permute.xlu0 %1713 }
0x140e   :  { %4320 = vmatmul.mubr.msk.bf16.vlgmr.msra.gmra.mrb[40].mxu0 %vm169_vm1, %v1714_v2 }
0x140f   :  { %4332 = vmatpush3.bf16.msra.mxu0 %v4603_v10  ;;  %4335 = vmatprep.mubr.msk.bf16.mxu0 %vm4985_vm0, %v4984_v0 }
0x1410   :  { %4333 = vmatprep.subr.bf16.mxu0 %v4984_v0 }
0x1413   :  { %4334 = vmatpush3.bf16.msra.mxu0 %v4604_v49 }
0x1414   :  { %4347 = vmatprep.subr.bf16.mxu0 %v4984_v0 }
0x1416   :  { %4336 = vmatmul.mubr.msk.bf16.vlgmr.msra.gmra.mrb[44].mxu0 %vm169_vm1, %v1773_v50 }
0x1417   :  { %4351 = vmatprep.mubr.msk.bf16.mxu0 %vm4985_vm0, %v4984_v0  ;;  %4348 = vmatpush3.bf16.msra.mxu0 %v4605_v18 }
0x1418   :  { %4349 = vmatprep.subr.bf16.mxu0 %v4984_v0 }
0x141b   :  { %4350 = vmatpush3.bf16.msra.mxu0 %v4606_v22 }
0x141c   :  { %4363 = vmatprep.subr.bf16.mxu0 %v4984_v0 }
0x146d   :  { %v1835_v54 = vpop.f32.mrb[40].mxu1 }
0x146e   :  { %v4329_v52 = vpop.f32.mrb[41].mxu1 }
0x146f   :  { %v1838_v5 = vpop.f32.mrb[42].mxu1 }
0x1470   :  { %v4330_v9 = vpop.f32.mrb[43].mxu1 }
0x14e1   :  { %v1764_v56 = vpop.f32.mrb[40].mxu0 }
0x14e2   :  { %v1765_v59 = vadd.f32 %v5270_v1, %v1764_v56  ;;  %v4321_v61 = vpop.f32.mrb[41].mxu0  ;;  %v1929_v1 = vsel %vm1928_vm2, 1, %v4986_v19  ;;  %v5602_v19 = vsel %vm1473_vm13, %v5487_v44, %v5484_v38  ;;  %v5614_v38 = vsel %vm1703_vm15, %v5565_v43, %v5496_v60  ;;  %v2002_v43 = vld [vmem:[#allocation3 + $0x4] sm:$0x1] }
0x14e3   :  { %v1767_v21 = vpop.f32.mrb[42].mxu0  ;;  %v2007_v44 = vpack.c.bf16 %v5614_v38, %v5614_v38 }
0x14e4   :  { %1771 = vst [vmem:[#allocation2 + $0x6] sm:$0x3] %v1765_v59  ;;  %v4322_v62 = vpop.f32.mrb[43].mxu0 }
0x14e9   :  { %v1890_v63 = vpop.f32.mrb[44].mxu0 }
0x14ea   :  { %v1891_v3 = vadd.f32 %v1890_v63, %v1835_v54  ;;  %v4337_v4 = vpop.f32.mrb[45].mxu0 }
0x14eb   :  { %v1893_v6 = vpop.f32.mrb[46].mxu0 }
0x14ec   :  { %v1903_v31 = vadd.f32 %v5273_v8, %v1891_v3  ;;  %v4338_v11 = vpop.f32.mrb[47].mxu0 }
0x14ed   :  { %v4611_v11 = vld [vmem:[#allocation9] sm:$0xff]  }
0x14ee   :  { %4711 = vtanh.f32 %v1903_v31  ;;  %v3919_v30 = vmul.f32 -1.442695, %v1903_v31 }
0x14f0   :  { %4713 = vpow2.f32 %v3919_v30  ;;  %v4612_v30 = vld [vmem:[#allocation9 + $0x8] sm:$0xff]  }
0x14f8   :  { %v4712_v13 = vpop.eup %4711 }
0x14f9   :  { %1913 = vrot.lane.b32.xlu0 %v4712_v13, %s4972_s18 }
0x14fa   :  { %v4714_v33 = vpop.eup %4713 }
0x14fb   :  { %v1907_v15 = vadd.f32 1.0, %v4714_v33 }
0x14fd   :  { %1931 = vperm.xlu0 %4558, %v1929_v1   ;;  %4715 = vrcp.f32 %v1907_v15  ;;  %v4613_v15 = vld [vmem:[%s6028_s10] sm:$0xff]  }
0x1507   :  { %v4716_v16 = vpop.eup %4715 }
0x1508   :  { %v1911_v20 = vmul.f32 %v4716_v16, %v5602_v19 }
0x156b   :  { %v1914_v8 = vpop.permute.xlu0 %1913 }
0x156c   :  { %v1916_v17 = vmul.f32 %v4716_v16, %v1914_v8 }
0x156e   :  { %1918 = vrot.lane.b32.xlu1 %v1916_v17, %s4976_s6 }
0x157c   :  { %v5621_v28 = vpop.permute.xlu0 %1931 }
0x157d   :  { %vm1933_vm4 = vcmp.eq.s32.totalorder %v5621_v28, 1  ;;  %v4626_v28 = vld [vmem:[%s6028_s10 + $0x8] sm:$0xff]  }
0x15e0   :  { %v1919_v39 = vpop.permute.xlu1 %1918 }
0x15e1   :  { %v5605_v23 = vadd.f32 %v1919_v39, %v1911_v20 }
0x15e3   :  { %4717 = vtanh.f32 %v5605_v23 }
0x15ed   :  { %v4718_v27 = vpop.eup %4717 }
0x15ee   :  { %1924 = vrot.lane.b32.xlu1 %v4718_v27, %s4972_s18  ;;  %v2225_v27 = vld [vmem:[#allocation3 + $0x3] sm:$0x1] }
0x15f2   :  { %2013 = vrot.lane.b32.xlu1 %v2007_v44, %s4976_s6 }
0x1660   :  { %v1925_v29 = vpop.permute.xlu1 %1924 }
0x1661   :  { %v5623_v32 = vmul.f32 %v4716_v16, %v1925_v29 }
0x1663   :  { %v1936_v60 = vsel %vm1933_vm4, %v5623_v32, 0.0  ;;  %v5667_v16 = vsel %vm1933_vm4, %v5623_v32, %v5556_v36  ;;  %v4615_v36 = vld [vmem:[%s6023_s5] sm:$0xff]  }
0x1664   :  { %v2014_v35 = vpop.permute.xlu1 %2013  ;;  %v1937_v47 = vpack.c.bf16 %v1936_v60, %v1936_v60  ;;  %v2230_v8 = vpack.c.bf16 %v5667_v16, %v5667_v16 }
0x1665   :  { %4352 = vmatmul.mubr.msk.bf16.vlgmr.msra.gmra.mrb[48].mxu0 %vm169_vm1, %v2014_v35 }
0x1666   :  { %1943 = vrot.lane.b32.xlu0 %v1937_v47, %s4976_s6  ;;  %4367 = vmatprep.mubr.msk.bf16.mxu0 %vm4985_vm0, %v4984_v0  ;;  %v5700_v47 = vld [vmem:[%s6030_s12] ss:$0 sm:$0xff] }
0x1667   :  { %4364 = vmatpush3.bf16.msra.mxu0 %v4613_v15 }
0x1668   :  { %4365 = vmatprep.subr.bf16.mxu0 %v4984_v0 }
0x166b   :  { %4366 = vmatpush3.bf16.msra.mxu0 %v4614_v25 }
0x166c   :  { %4379 = vmatprep.subr.bf16.mxu0 %v4984_v0 }
0x16d8   :  { %v1944_v37 = vpop.permute.xlu0 %1943 }
0x16d9   :  { %4344 = vmatmul.mubr.msk.bf16.vlgmr.msra.gmra.mrb[44].mxu1 %vm169_vm1, %v1944_v37 }
0x16da   :  { %4356 = vmatpush3.bf16.msra.mxu1 %v4609_v51  ;;  %4359 = vmatprep.mubr.msk.bf16.mxu1 %vm4985_vm0, %v4984_v0 }
0x16db   :  { %4357 = vmatprep.subr.bf16.mxu1 %v4984_v0 }
0x16de   :  { %4358 = vmatpush3.bf16.msra.mxu1 %v4610_v42 }
0x16df   :  { %4371 = vmatprep.subr.bf16.mxu1 %v4984_v0 }
0x16e1   :  { %4360 = vmatmul.mubr.msk.bf16.vlgmr.msra.gmra.mrb[48].mxu1 %vm169_vm1, %v2002_v43 }
0x16e2   :  { %4375 = vmatprep.mubr.msk.bf16.mxu1 %vm4985_vm0, %v4984_v0  ;;  %4372 = vmatpush3.bf16.msra.mxu1 %v4611_v11  ;;  %v4618_v11 = vld [vmem:[#allocation8 + $0x8] sm:$0xff]  }
0x16e3   :  { %4373 = vmatprep.subr.bf16.mxu1 %v4984_v0 }
0x16e6   :  { %4374 = vmatpush3.bf16.msra.mxu1 %v4612_v30  ;;  %v4620_v30 = vld [vmem:[#allocation14 + $0x8] sm:$0xff]  }
0x16e7   :  { %4387 = vmatprep.subr.bf16.mxu1 %v4984_v0 }
0x1738   :  { %v2064_v53 = vpop.f32.mrb[48].mxu0 }
0x1739   :  { %v4353_v45 = vpop.f32.mrb[49].mxu0 }
0x173a   :  { %v2067_v46 = vpop.f32.mrb[50].mxu0  ;;  %v5703_v45 = vld [vmem:[#allocation11] ss:$0 sm:$0xff] }
0x173b   :  { %v4354_v10 = vpop.f32.mrb[51].mxu0 }
0x17ac   :  { %v1994_v2 = vpop.f32.mrb[44].mxu1 }
0x17ad   :  { %2001 = vst [vmem:[#allocation15 + $0x8] sm:$0x3] %v1994_v2  ;;  %v4345_v49 = vpop.f32.mrb[45].mxu1 }
0x17ae   :  { %v1997_v50 = vpop.f32.mrb[46].mxu1 }
0x17af   :  { %v4346_v54 = vpop.f32.mrb[47].mxu1 }
0x17b4   :  { %v2119_v52 = vpop.f32.mrb[48].mxu1  ;;  %v3785_v49 = vld [vmem:[#allocation15 + $0x8] sm:$0x3] }
0x17b5   :  { %v2120_v5 = vadd.f32 %v2119_v52, %v2064_v53  ;;  %v4361_v9 = vpop.f32.mrb[49].mxu1 }
0x17b6   :  { %v2122_v56 = vpop.f32.mrb[50].mxu1 }
0x17b7   :  { %v2132_v59 = vadd.f32 %v5526_v57, %v2120_v5  ;;  %v4362_v61 = vpop.f32.mrb[51].mxu1 }
0x17b9   :  { %4719 = vtanh.f32 %v2132_v59  ;;  %v3930_v62 = vmul.f32 -1.442695, %v2132_v59 }
0x17bb   :  { %4721 = vpow2.f32 %v3930_v62 }
0x17c3   :  { %v4720_v21 = vpop.eup %4719 }
0x17c4   :  { %2142 = vrot.lane.b32.xlu0 %v4720_v21, %s4972_s18 }
0x17c5   :  { %v4722_v63 = vpop.eup %4721 }
0x17c6   :  { %v2136_v3 = vadd.f32 1.0, %v4722_v63 }
0x17c8   :  { %4723 = vrcp.f32 %v2136_v3  ;;  %v4617_v3 = vld [vmem:[#allocation8] sm:$0xff]  }
0x17d2   :  { %v4724_v4 = vpop.eup %4723 }
0x17d3   :  { %v2140_v13 = vmul.f32 %v4724_v4, %v5649_v12 }
0x1836   :  { %v2143_v6 = vpop.permute.xlu0 %2142 }
0x1837   :  { %v2145_v31 = vmul.f32 %v4724_v4, %v2143_v6 }
0x1839   :  { %2147 = vrot.lane.b32.xlu1 %v2145_v31, %s4976_s6 }
0x18ab   :  { %v2148_v1 = vpop.permute.xlu1 %2147 }
0x18ac   :  { %v5652_v33 = vadd.f32 %v2148_v1, %v2140_v13  ;;  %v4619_v1 = vld [vmem:[#allocation14] sm:$0xff]  }
0x18ae   :  { %4725 = vtanh.f32 %v5652_v33 }
0x18b8   :  { %v4726_v34 = vpop.eup %4725 }
0x18b9   :  { %2153 = vrot.lane.b32.xlu0 %v4726_v34, %s4972_s18 }
0x18bd   :  { %2236 = vrot.lane.b32.xlu0 %v2230_v8, %s4976_s6 }
0x192b   :  { %v2154_v17 = vpop.permute.xlu0 %2153 }
0x192c   :  { %v5674_v18 = vmul.f32 %v4724_v4, %v2154_v17  ;;  %v5713_v4 = vsel %vm1933_vm4, %v5605_v23, %v5602_v19 }
0x192e   :  { %v2159_v20 = vsel %vm1933_vm4, %v5674_v18, 0.0  ;;  %v5725_v19 = vsel %vm1933_vm4, %v5674_v18, %v5614_v38  ;;  %v4621_v38 = vld [vmem:[#allocation6] sm:$0xff]  }
0x192f   :  { %v2237_v39 = vpop.permute.xlu0 %2236  ;;  %v2160_v22 = vpack.c.bf16 %v2159_v20, %v2159_v20  ;;  %v2453_v23 = vpack.c.bf16 %v5725_v19, %v5725_v19 }
0x1930   :  { %4376 = vmatmul.mubr.msk.bf16.vlgmr.msra.gmra.mrb[52].mxu1 %vm169_vm1, %v2237_v39  ;;  %v4622_v39 = vld [vmem:[#allocation6 + $0x8] sm:$0xff]  }
0x1931   :  { %2166 = vrot.lane.b32.xlu1 %v2160_v22, %s4976_s6  ;;  %4391 = vmatprep.mubr.msk.bf16.mxu1 %vm4985_vm0, %v4984_v0  ;;  %v2448_v22 = vld [vmem:[#allocation3 + $0x5] sm:$0x1] }
0x1932   :  { %4388 = vmatpush3.bf16.msra.mxu1 %v4619_v1 }
0x1933   :  { %4389 = vmatprep.subr.bf16.mxu1 %v4984_v0 }
0x1936   :  { %4390 = vmatpush3.bf16.msra.mxu1 %v4620_v30 }
0x1937   :  { %4403 = vmatprep.subr.bf16.mxu1 %v4984_v0 }
0x19a3   :  { %v2167_v24 = vpop.permute.xlu1 %2166 }
0x19a4   :  { %4368 = vmatmul.mubr.msk.bf16.vlgmr.msra.gmra.mrb[52].mxu0 %vm169_vm1, %v2167_v24 }
0x19a5   :  { %4380 = vmatpush3.bf16.msra.mxu0 %v4615_v36  ;;  %4383 = vmatprep.mubr.msk.bf16.mxu0 %vm4985_vm0, %v4984_v0 }
0x19a6   :  { %4381 = vmatprep.subr.bf16.mxu0 %v4984_v0 }
0x19a9   :  { %4382 = vmatpush3.bf16.msra.mxu0 %v4616_v26 }
0x19aa   :  { %4395 = vmatprep.subr.bf16.mxu0 %v4984_v0 }
0x19ac   :  { %4384 = vmatmul.mubr.msk.bf16.vlgmr.msra.gmra.mrb[56].mxu0 %vm169_vm1, %v2225_v27 }
0x19ad   :  { %4399 = vmatprep.mubr.msk.bf16.mxu0 %vm4985_vm0, %v4984_v0  ;;  %4396 = vmatpush3.bf16.msra.mxu0 %v4617_v3 }
0x19ae   :  { %4397 = vmatprep.subr.bf16.mxu0 %v4984_v0 }
0x19b1   :  { %4398 = vmatpush3.bf16.msra.mxu0 %v4618_v11 }
0x19b2   :  { %4411 = vmatprep.subr.bf16.mxu0 %v4984_v0 }
0x1a03   :  { %v2287_v44 = vpop.f32.mrb[52].mxu1 }
0x1a04   :  { %v4377_v29 = vpop.f32.mrb[53].mxu1 }
0x1a05   :  { %v2290_v32 = vpop.f32.mrb[54].mxu1 }
0x1a06   :  { %v4378_v60 = vpop.f32.mrb[55].mxu1 }
0x1a77   :  { %v2217_v35 = vpop.f32.mrb[52].mxu0 }
0x1a78   :  { %v2218_v51 = vadd.f32 %v5700_v47, %v2217_v35  ;;  %v4369_v37 = vpop.f32.mrb[53].mxu0 }
0x1a79   :  { %v2220_v42 = vpop.f32.mrb[54].mxu0 }
0x1a7a   :  { %2224 = vst [vmem:[#allocation2 + $0x8] sm:$0x3] %v2218_v51  ;;  %v4370_v43 = vpop.f32.mrb[55].mxu0  ;;  %v3792_v51 = vld [vmem:[#allocation2 + $0x6] sm:$0x3] }
0x1a7f   :  { %v2342_v53 = vpop.f32.mrb[56].mxu0 }
0x1a80   :  { %v2343_v46 = vadd.f32 %v2342_v53, %v2287_v44  ;;  %v4385_v10 = vpop.f32.mrb[57].mxu0 }
0x1a81   :  { %v2345_v2 = vpop.f32.mrb[58].mxu0  ;;  %v3793_v50 = vld [vmem:[#allocation2 + $0x8] sm:$0x3] }
0x1a82   :  { %v2355_v54 = vadd.f32 %v5703_v45, %v2343_v46  ;;  %v4386_v52 = vpop.f32.mrb[59].mxu0  ;;  %v3801_v5 = vadd.f32 %v3793_v50, %v3785_v49 }
0x1a84   :  { %4727 = vtanh.f32 %v2355_v54  ;;  %3809 = vst [vmem:[#allocation15 + $0x8] sm:$0x3] %v3801_v5  ;;  %v3941_v56 = vmul.f32 -1.442695, %v2355_v54 }
0x1a86   :  { %4729 = vpow2.f32 %v3941_v56 }
0x1a8e   :  { %v4728_v9 = vpop.eup %4727 }
0x1a8f   :  { %2365 = vrot.lane.b32.xlu1 %v4728_v9, %s4972_s18 }
0x1a90   :  { %v4730_v59 = vpop.eup %4729 }
0x1a91   :  { %v2359_v61 = vadd.f32 1.0, %v4730_v59  ;;  %v4623_v59 = vld [vmem:[#allocation9] sm:$0xff]  }
0x1a93   :  { %4731 = vrcp.f32 %v2359_v61  ;;  %v5757_v61 = vsel %vm1933_vm4, %v5652_v33, %v5649_v12 }
0x1a9d   :  { %v4732_v21 = vpop.eup %4731 }
0x1a9e   :  { %v2363_v6 = vmul.f32 %v4732_v21, %v5713_v4 }
0x1b01   :  { %v2366_v62 = vpop.permute.xlu1 %2365 }
0x1b02   :  { %v2368_v63 = vmul.f32 %v4732_v21, %v2366_v62 }
0x1b04   :  { %2370 = vrot.lane.b32.xlu0 %v2368_v63, %s4976_s6  ;;  %v4624_v63 = vld [vmem:[#allocation9 + $0x8] sm:$0xff]  }
0x1b76   :  { %v2371_v31 = vpop.permute.xlu0 %2370 }
0x1b77   :  { %v5716_v13 = vadd.f32 %v2371_v31, %v2363_v6  ;;  %v4625_v6 = vld [vmem:[%s6028_s10] sm:$0xff]  }
0x1b79   :  { %4733 = vtanh.f32 %v5716_v13 }
0x1b83   :  { %v4734_v15 = vpop.eup %4733 }
0x1b84   :  { %2376 = vrot.lane.b32.xlu1 %v4734_v15, %s4972_s18 }
0x1b88   :  { %2459 = vrot.lane.b32.xlu1 %v2453_v23, %s4976_s6 }
0x1bf6   :  { %v2377_v25 = vpop.permute.xlu1 %2376 }
0x1bf7   :  { %v5732_v34 = vmul.f32 %v4732_v21, %v2377_v25 }
0x1bf9   :  { %v2382_v8 = vsel %vm1703_vm15, %v5732_v34, 0.0  ;;  %v5775_v33 = vsel %vm1703_vm15, %v5732_v34, %v5667_v16  ;;  %v4627_v16 = vld [vmem:[%s6023_s5] sm:$0xff]   ;;  %v4628_v34 = vld [vmem:[%s6023_s5 + $0x8] sm:$0xff]  }
0x1bfa   :  { %v2460_v17 = vpop.permute.xlu1 %2459  ;;  %v2383_v20 = vpack.c.bf16 %v2382_v8, %v2382_v8  ;;  %v2676_v31 = vpack.c.bf16 %v5775_v33, %v5775_v33  ;;  %v2671_v8 = vld [vmem:[#allocation3 + $0x2] sm:$0x1] }
0x1bfb   :  { %4400 = vmatmul.mubr.msk.bf16.vlgmr.msra.gmra.mrb[60].mxu0 %vm169_vm1, %v2460_v17 }
0x1bfc   :  { %2389 = vrot.lane.b32.xlu0 %v2383_v20, %s4976_s6  ;;  %4415 = vmatprep.mubr.msk.bf16.mxu0 %vm4985_vm0, %v4984_v0 }
0x1bfd   :  { %4412 = vmatpush3.bf16.msra.mxu0 %v4625_v6 }
0x1bfe   :  { %4413 = vmatprep.subr.bf16.mxu0 %v4984_v0 }
0x1c01   :  { %4414 = vmatpush3.bf16.msra.mxu0 %v4626_v28 }
0x1c02   :  { %4427 = vmatprep.subr.bf16.mxu0 %v4984_v0 }
0x1c6e   :  { %v2390_v18 = vpop.permute.xlu0 %2389 }
0x1c6f   :  { %4392 = vmatmul.mubr.msk.bf16.vlgmr.msra.gmra.mrb[56].mxu1 %vm169_vm1, %v2390_v18 }
0x1c70   :  { %4404 = vmatpush3.bf16.msra.mxu1 %v4621_v38  ;;  %4407 = vmatprep.mubr.msk.bf16.mxu1 %vm4985_vm0, %v4984_v0 }
0x1c71   :  { %4405 = vmatprep.subr.bf16.mxu1 %v4984_v0 }
0x1c74   :  { %4406 = vmatpush3.bf16.msra.mxu1 %v4622_v39 }
0x1c75   :  { %4419 = vmatprep.subr.bf16.mxu1 %v4984_v0 }
0x1c77   :  { %4408 = vmatmul.mubr.msk.bf16.vlgmr.msra.gmra.mrb[60].mxu1 %vm169_vm1, %v2448_v22 }
0x1c78   :  { %4423 = vmatprep.mubr.msk.bf16.mxu1 %vm4985_vm0, %v4984_v0  ;;  %4420 = vmatpush3.bf16.msra.mxu1 %v4623_v59 }
0x1c79   :  { %4421 = vmatprep.subr.bf16.mxu1 %v4984_v0 }
0x1c7c   :  { %4422 = vmatpush3.bf16.msra.mxu1 %v4624_v63 }
0x1c7d   :  { %4435 = vmatprep.subr.bf16.mxu1 %v4984_v0 }
0x1cce   :  { %v2510_v36 = vpop.f32.mrb[60].mxu0 }
0x1ccf   :  { %v4401_v24 = vpop.f32.mrb[61].mxu0 }
0x1cd0   :  { %v2513_v26 = vpop.f32.mrb[62].mxu0 }
0x1cd1   :  { %v4402_v27 = vpop.f32.mrb[63].mxu0 }
0x1d42   :  { %v2440_v44 = vpop.f32.mrb[56].mxu1 }
0x1d43   :  { %2447 = vst [vmem:[#allocation15 + $0x6] sm:$0x3] %v2440_v44  ;;  %v4393_v29 = vpop.f32.mrb[57].mxu1 }
0x1d44   :  { %v2443_v32 = vpop.f32.mrb[58].mxu1 }
0x1d45   :  { %v4394_v60 = vpop.f32.mrb[59].mxu1 }
0x1d46   :  { %v3786_v60 = vld [vmem:[#allocation15 + $0xa] sm:$0x3] }
0x1d4a   :  { %v3784_v35 = vld [vmem:[#allocation15 + $0x6] sm:$0x3]  ;;  %v2565_v37 = vpop.f32.mrb[60].mxu1 }
0x1d4b   :  { %v3800_v42 = vadd.f32 %v3792_v51, %v3784_v35  ;;  %v2566_v43 = vadd.f32 %v2565_v37, %v2510_v36  ;;  %v4409_v53 = vpop.f32.mrb[61].mxu1 }
0x1d4c   :  { %v2568_v46 = vpop.f32.mrb[62].mxu1 }
0x1d4d   :  { %3808 = vst [vmem:[#allocation15 + $0x6] sm:$0x3] %v3800_v42  ;;  %v2578_v10 = vadd.f32 %v5526_v57, %v2566_v43  ;;  %v4410_v2 = vpop.f32.mrb[63].mxu1 }
0x1d4f   :  { %4735 = vtanh.f32 %v2578_v10  ;;  %v3952_v50 = vmul.f32 -1.442695, %v2578_v10 }
0x1d51   :  { %4737 = vpow2.f32 %v3952_v50 }
0x1d59   :  { %v4736_v49 = vpop.eup %4735 }
0x1d5a   :  { %2588 = vrot.lane.b32.xlu0 %v4736_v49, %s4972_s18 }
0x1d5b   :  { %v4738_v54 = vpop.eup %4737 }
0x1d5c   :  { %v2582_v52 = vadd.f32 1.0, %v4738_v54  ;;  %v4629_v54 = vld [vmem:[#allocation8] sm:$0xff]  }
0x1d5e   :  { %4739 = vrcp.f32 %v2582_v52  ;;  %v5814_v52 = vsel %vm1703_vm15, %v5716_v13, %v5713_v4 }
0x1d68   :  { %v4740_v5 = vpop.eup %4739 }
0x1d69   :  { %v2586_v21 = vmul.f32 %v4740_v5, %v5757_v61 }
0x1dcc   :  { %v2589_v9 = vpop.permute.xlu0 %2588 }
0x1dcd   :  { %v2591_v56 = vmul.f32 %v4740_v5, %v2589_v9 }
0x1dcf   :  { %2593 = vrot.lane.b32.xlu1 %v2591_v56, %s4976_s6  ;;  %v4630_v56 = vld [vmem:[#allocation8 + $0x8] sm:$0xff]  }
0x1e41   :  { %v2594_v62 = vpop.permute.xlu1 %2593 }
0x1e42   :  { %v5760_v3 = vadd.f32 %v2594_v62, %v2586_v21  ;;  %v4631_v21 = vld [vmem:[#allocation14] sm:$0xff]   ;;  %v4632_v62 = vld [vmem:[#allocation14 + $0x8] sm:$0xff]  }
0x1e44   :  { %4741 = vtanh.f32 %v5760_v3 }
0x1e4e   :  { %v4742_v12 = vpop.eup %4741 }
0x1e4f   :  { %2599 = vrot.lane.b32.xlu0 %v4742_v12, %s4972_s18 }
0x1e53   :  { %2682 = vrot.lane.b32.xlu0 %v2676_v31, %s4976_s6 }
0x1ec1   :  { %v2600_v11 = vpop.permute.xlu0 %2599 }
0x1ec2   :  { %v5782_v1 = vmul.f32 %v4740_v5, %v2600_v11 }
0x1ec4   :  { %v2605_v30 = vsel %vm1473_vm13, %v5782_v1, 0.0  ;;  %v5826_v4 = vsel %vm1473_vm13, %v5782_v1, %v5725_v19  ;;  %v4633_v19 = vld [vmem:[#allocation6] sm:$0xff]   ;;  %v4634_v1 = vld [vmem:[#allocation6 + $0x8] sm:$0xff]  }
0x1ec5   :  { %v2683_v15 = vpop.permute.xlu0 %2682  ;;  %v2606_v23 = vpack.c.bf16 %v2605_v30, %v2605_v30  ;;  %v2899_v13 = vpack.c.bf16 %v5826_v4, %v5826_v4  ;;  %v2894_v30 = vld [vmem:[#allocation3 + $0x6] sm:$0x1] }
0x1ec6   :  { %4424 = vmatmul.mubr.msk.bf16.vlgmr.msra.gmra.mrb[64].mxu1 %vm169_vm1, %v2683_v15 }
0x1ec7   :  { %2612 = vrot.lane.b32.xlu1 %v2606_v23, %s4976_s6  ;;  %4439 = vmatprep.mubr.msk.bf16.mxu1 %vm4985_vm0, %v4984_v0 }
0x1ec8   :  { %4436 = vmatpush3.bf16.msra.mxu1 %v4631_v21 }
0x1ec9   :  { %4437 = vmatprep.subr.bf16.mxu1 %v4984_v0 }
0x1ecc   :  { %4438 = vmatpush3.bf16.msra.mxu1 %v4632_v62 }
0x1ecd   :  { %4451 = vmatprep.subr.bf16.mxu1 %v4984_v0 }
0x1f39   :  { %v2613_v25 = vpop.permute.xlu1 %2612 }
0x1f3a   :  { %4416 = vmatmul.mubr.msk.bf16.vlgmr.msra.gmra.mrb[64].mxu0 %vm169_vm1, %v2613_v25 }
0x1f3b   :  { %4428 = vmatpush3.bf16.msra.mxu0 %v4627_v16  ;;  %4431 = vmatprep.mubr.msk.bf16.mxu0 %vm4985_vm0, %v4984_v0 }
0x1f3c   :  { %4429 = vmatprep.subr.bf16.mxu0 %v4984_v0 }
0x1f3f   :  { %4430 = vmatpush3.bf16.msra.mxu0 %v4628_v34 }
0x1f40   :  { %4443 = vmatprep.subr.bf16.mxu0 %v4984_v0 }
0x1f42   :  { %4432 = vmatmul.mubr.msk.bf16.vlgmr.msra.gmra.mrb[68].mxu0 %vm169_vm1, %v2671_v8 }
0x1f43   :  { %4447 = vmatprep.mubr.msk.bf16.mxu0 %vm4985_vm0, %v4984_v0  ;;  %4444 = vmatpush3.bf16.msra.mxu0 %v4629_v54 }
0x1f44   :  { %4445 = vmatprep.subr.bf16.mxu0 %v4984_v0 }
0x1f47   :  { %4446 = vmatpush3.bf16.msra.mxu0 %v4630_v56 }
0x1f48   :  { %4459 = vmatprep.subr.bf16.mxu0 %v4984_v0 }
0x1f99   :  { %v2733_v17 = vpop.f32.mrb[64].mxu1 }
0x1f9a   :  { %v4425_v20 = vpop.f32.mrb[65].mxu1 }
0x1f9b   :  { %v2736_v38 = vpop.f32.mrb[66].mxu1 }
0x1f9c   :  { %v4426_v18 = vpop.f32.mrb[67].mxu1 }
0x1f9d   :  { %v3791_v18 = vld [vmem:[#allocation2 + $0x4] sm:$0x3] }
0x200d   :  { %v2663_v39 = vpop.f32.mrb[64].mxu0 }
0x200e   :  { %v2664_v22 = vadd.f32 %v5700_v47, %v2663_v39  ;;  %v4417_v36 = vpop.f32.mrb[65].mxu0 }
0x200f   :  { %v2666_v24 = vpop.f32.mrb[66].mxu0 }
0x2010   :  { %2670 = vst [vmem:[#allocation2 + $0xa] sm:$0x3] %v2664_v22  ;;  %v4418_v26 = vpop.f32.mrb[67].mxu0 }
0x2015   :  { %v2788_v27 = vpop.f32.mrb[68].mxu0 }
0x2016   :  { %v2789_v44 = vadd.f32 %v2788_v27, %v2733_v17  ;;  %v4433_v29 = vpop.f32.mrb[69].mxu0 }
0x2017   :  { %v2791_v32 = vpop.f32.mrb[70].mxu0  ;;  %v3794_v35 = vld [vmem:[#allocation2 + $0xa] sm:$0x3] }
0x2018   :  { %v2801_v51 = vadd.f32 %v5703_v45, %v2789_v44  ;;  %v4434_v37 = vpop.f32.mrb[71].mxu0  ;;  %v3802_v42 = vadd.f32 %v3794_v35, %v3786_v60 }
0x201a   :  { %4743 = vtanh.f32 %v2801_v51  ;;  %3810 = vst [vmem:[#allocation15 + $0xa] sm:$0x3] %v3802_v42  ;;  %v3963_v53 = vmul.f32 -1.442695, %v2801_v51 }
0x201c   :  { %4745 = vpow2.f32 %v3963_v53 }
0x2024   :  { %v4744_v43 = vpop.eup %4743 }
0x2025   :  { %2811 = vrot.lane.b32.xlu1 %v4744_v43, %s4972_s18  ;;  %v4635_v43 = vld [vmem:[#allocation9] sm:$0xff]  }
0x2026   :  { %v4746_v46 = vpop.eup %4745 }
0x2027   :  { %v2805_v10 = vadd.f32 1.0, %v4746_v46 }
0x2029   :  { %4747 = vrcp.f32 %v2805_v10  ;;  %v4636_v10 = vld [vmem:[#allocation9 + $0x8] sm:$0xff]  }
0x2033   :  { %v4748_v2 = vpop.eup %4747 }
0x2034   :  { %v2809_v5 = vmul.f32 %v4748_v2, %v5814_v52 }
0x2097   :  { %v2812_v49 = vpop.permute.xlu1 %2811 }
0x2098   :  { %v2814_v50 = vmul.f32 %v4748_v2, %v2812_v49  ;;  %v4637_v49 = vld [vmem:[%s6028_s10] sm:$0xff]  }
0x209a   :  { %2816 = vrot.lane.b32.xlu0 %v2814_v50, %s4976_s6 }
0x210c   :  { %v2817_v9 = vpop.permute.xlu0 %2816 }
0x210d   :  { %v5817_v59 = vadd.f32 %v2817_v9, %v2809_v5 }
0x210f   :  { %4749 = vtanh.f32 %v5817_v59 }
0x2119   :  { %v4750_v40 = vpop.eup %4749 }
0x211a   :  { %2822 = vrot.lane.b32.xlu1 %v4750_v40, %s4972_s18  ;;  %v4640_v40 = vld [vmem:[%s6023_s5 + $0x8] sm:$0xff]  }
0x211e   :  { %2905 = vrot.lane.b32.xlu1 %v2899_v13, %s4976_s6  ;;  %v3117_v13 = vld [vmem:[#allocation3 + $0x1] sm:$0x1] }
0x218c   :  { %v2823_v63 = vpop.permute.xlu1 %2822 }
0x218d   :  { %v5833_v6 = vmul.f32 %v4748_v2, %v2823_v63 }
0x218f   :  { %v2828_v28 = vsel %vm1243_vm11, %v5833_v6, 0.0 }
0x2190   :  { %v2906_v12 = vpop.permute.xlu1 %2905  ;;  %v2829_v31 = vpack.c.bf16 %v2828_v28, %v2828_v28 }
0x2191   :  { %4448 = vmatmul.mubr.msk.bf16.vlgmr.msra.gmra.mrb[72].mxu0 %vm169_vm1, %v2906_v12 }
0x2192   :  { %2835 = vrot.lane.b32.xlu0 %v2829_v31, %s4976_s6  ;;  %4463 = vmatprep.mubr.msk.bf16.mxu0 %vm4985_vm0, %v4984_v0 }
0x2193   :  { %4460 = vmatpush3.bf16.msra.mxu0 %v4637_v49 }
0x2194   :  { %4461 = vmatprep.subr.bf16.mxu0 %v4984_v0 }
0x2197   :  { %4462 = vmatpush3.bf16.msra.mxu0 %v4638_v48 }
0x2198   :  { %4475 = vmatprep.subr.bf16.mxu0 %v4984_v0 }
0x2204   :  { %v2836_v11 = vpop.permute.xlu0 %2835 }
0x2205   :  { %4440 = vmatmul.mubr.msk.bf16.vlgmr.msra.gmra.mrb[68].mxu1 %vm169_vm1, %v2836_v11 }
0x2206   :  { %4452 = vmatpush3.bf16.msra.mxu1 %v4633_v19  ;;  %4455 = vmatprep.mubr.msk.bf16.mxu1 %vm4985_vm0, %v4984_v0 }
0x2207   :  { %4453 = vmatprep.subr.bf16.mxu1 %v4984_v0 }
0x220a   :  { %4454 = vmatpush3.bf16.msra.mxu1 %v4634_v1 }
0x220b   :  { %4467 = vmatprep.subr.bf16.mxu1 %v4984_v0 }
0x220d   :  { %4456 = vmatmul.mubr.msk.bf16.vlgmr.msra.gmra.mrb[72].mxu1 %vm169_vm1, %v2894_v30 }
0x220e   :  { %4471 = vmatprep.mubr.msk.bf16.mxu1 %vm4985_vm0, %v4984_v0  ;;  %4468 = vmatpush3.bf16.msra.mxu1 %v4635_v43 }
0x220f   :  { %4469 = vmatprep.subr.bf16.mxu1 %v4984_v0 }
0x2212   :  { %4470 = vmatpush3.bf16.msra.mxu1 %v4636_v10 }
0x2213   :  { %4483 = vmatprep.subr.bf16.mxu1 %v4984_v0 }
0x2264   :  { %v2956_v15 = vpop.f32.mrb[72].mxu0 }
0x2265   :  { %v4449_v23 = vpop.f32.mrb[73].mxu0 }
0x2266   :  { %v2959_v16 = vpop.f32.mrb[74].mxu0 }
0x2267   :  { %v4450_v25 = vpop.f32.mrb[75].mxu0 }
0x22d8   :  { %v2886_v34 = vpop.f32.mrb[68].mxu1 }
0x22d9   :  { %2893 = vst [vmem:[#allocation15 + $0x4] sm:$0x3] %v2886_v34  ;;  %v4441_v8 = vpop.f32.mrb[69].mxu1  ;;  %v3787_v34 = vld [vmem:[#allocation15 + $0xc] sm:$0x3] }
0x22da   :  { %v2889_v17 = vpop.f32.mrb[70].mxu1 }
0x22db   :  { %v4442_v20 = vpop.f32.mrb[71].mxu1 }
0x22e0   :  { %v3783_v38 = vld [vmem:[#allocation15 + $0x4] sm:$0x3]  ;;  %v3011_v39 = vpop.f32.mrb[72].mxu1 }
0x22e1   :  { %v3799_v22 = vadd.f32 %v3791_v18, %v3783_v38  ;;  %v3012_v36 = vadd.f32 %v3011_v39, %v2956_v15  ;;  %v4457_v24 = vpop.f32.mrb[73].mxu1 }
0x22e2   :  { %v3014_v26 = vpop.f32.mrb[74].mxu1 }
0x22e3   :  { %3807 = vst [vmem:[#allocation15 + $0x4] sm:$0x3] %v3799_v22  ;;  %v3024_v27 = vadd.f32 %v5526_v57, %v3012_v36  ;;  %v4458_v44 = vpop.f32.mrb[75].mxu1  ;;  %v5858_v57 = vsel %vm1473_vm13, %v5760_v3, %v5757_v61  ;;  %v5876_v3 = vsel %vm1243_vm11, %v5833_v6, %v5775_v33  ;;  %v4639_v33 = vld [vmem:[%s6023_s5] sm:$0xff]  }
0x22e4   :  { %v3122_v50 = vpack.c.bf16 %v5876_v3, %v5876_v3  ;;  %v4641_v44 = vld [vmem:[#allocation8] sm:$0xff]  }
0x22e5   :  { %4751 = vtanh.f32 %v3024_v27  ;;  %v3974_v32 = vmul.f32 -1.442695, %v3024_v27 }
0x22e7   :  { %4753 = vpow2.f32 %v3974_v32 }
0x22ef   :  { %v4752_v29 = vpop.eup %4751 }
0x22f0   :  { %3034 = vrot.lane.b32.xlu0 %v4752_v29, %s4972_s18  ;;  %v5915_v29 = vsel %vm1243_vm11, %v5817_v59, %v5814_v52 }
0x22f1   :  { %v4754_v60 = vpop.eup %4753 }
0x22f2   :  { %v3028_v35 = vadd.f32 1.0, %v4754_v60 }
0x22f4   :  { %4755 = vrcp.f32 %v3028_v35  ;;  %v4642_v35 = vld [vmem:[#allocation8 + $0x8] sm:$0xff]  }
0x22fe   :  { %v4756_v51 = vpop.eup %4755 }
0x22ff   :  { %v3032_v53 = vmul.f32 %v4756_v51, %v5858_v57 }
0x2362   :  { %v3035_v37 = vpop.permute.xlu0 %3034 }
0x2363   :  { %v3037_v42 = vmul.f32 %v4756_v51, %v3035_v37  ;;  %v4643_v37 = vld [vmem:[#allocation14] sm:$0xff]  }
0x2365   :  { %3039 = vrot.lane.b32.xlu1 %v3037_v42, %s4976_s6  ;;  %v4644_v42 = vld [vmem:[#allocation14 + $0x8] sm:$0xff]  }
0x23d7   :  { %v3040_v46 = vpop.permute.xlu1 %3039 }
0x23d8   :  { %v5861_v2 = vadd.f32 %v3040_v46, %v3032_v53 }
0x23da   :  { %4757 = vtanh.f32 %v5861_v2 }
0x23e4   :  { %v4758_v61 = vpop.eup %4757 }
0x23e5   :  { %3045 = vrot.lane.b32.xlu0 %v4758_v61, %s4972_s18  ;;  %v4646_v61 = vld [vmem:[#allocation6 + $0x8] sm:$0xff]  }
0x23e9   :  { %3128 = vrot.lane.b32.xlu0 %v3122_v50, %s4976_s6  ;;  %v3340_v50 = vld [vmem:[#allocation3 + $0x7] sm:$0x1] }
0x2457   :  { %v3046_v54 = vpop.permute.xlu0 %3045 }
0x2458   :  { %v5883_v5 = vmul.f32 %v4756_v51, %v3046_v54 }
0x245a   :  { %v3051_v9 = vsel %vm1013_vm9, %v5883_v5, 0.0  ;;  %v3049_v52 = vsel %vm1013_vm9, %v5883_v5, %v5826_v4  ;;  %v4645_v4 = vld [vmem:[#allocation6] sm:$0xff]  }
0x245b   :  { %v3129_v56 = vpop.permute.xlu0 %3128  ;;  %v3052_v21 = vpack.c.bf16 %v3051_v9, %v3051_v9  ;;  %v3345_v59 = vpack.c.bf16 %v3049_v52, %v3049_v52 }
0x245c   :  { %4472 = vmatmul.mubr.msk.bf16.vlgmr.msra.gmra.mrb[76].mxu1 %vm169_vm1, %v3129_v56 }
0x245d   :  { %3058 = vrot.lane.b32.xlu1 %v3052_v21, %s4976_s6  ;;  %4487 = vmatprep.mubr.msk.bf16.mxu1 %vm4985_vm0, %v4984_v0 }
0x245e   :  { %4484 = vmatpush3.bf16.msra.mxu1 %v4643_v37 }
0x245f   :  { %4485 = vmatprep.subr.bf16.mxu1 %v4984_v0 }
0x2462   :  { %4486 = vmatpush3.bf16.msra.mxu1 %v4644_v42  ;;  %v3561_v42 = vld [vmem:[#allocation3] sm:$0x1] }
0x2463   :  { %4499 = vmatprep.subr.bf16.mxu1 %v4984_v0 }
0x24cf   :  { %v3059_v62 = vpop.permute.xlu1 %3058 }
0x24d0   :  { %4464 = vmatmul.mubr.msk.bf16.vlgmr.msra.gmra.mrb[76].mxu0 %vm169_vm1, %v3059_v62 }
0x24d1   :  { %4476 = vmatpush3.bf16.msra.mxu0 %v4639_v33  ;;  %4479 = vmatprep.mubr.msk.bf16.mxu0 %vm4985_vm0, %v4984_v0 }
0x24d2   :  { %4477 = vmatprep.subr.bf16.mxu0 %v4984_v0 }
0x24d5   :  { %4478 = vmatpush3.bf16.msra.mxu0 %v4640_v40 }
0x24d6   :  { %4491 = vmatprep.subr.bf16.mxu0 %v4984_v0 }
0x24d8   :  { %4480 = vmatmul.mubr.msk.bf16.vlgmr.msra.gmra.mrb[80].mxu0 %vm169_vm1, %v3117_v13  ;;  %v3790_v13 = vld [vmem:[#allocation2 + $0x2] sm:$0x3] }
0x24d9   :  { %4495 = vmatprep.mubr.msk.bf16.mxu0 %vm4985_vm0, %v4984_v0  ;;  %4492 = vmatpush3.bf16.msra.mxu0 %v4641_v44 }
0x24da   :  { %4493 = vmatprep.subr.bf16.mxu0 %v4984_v0 }
0x24dd   :  { %4494 = vmatpush3.bf16.msra.mxu0 %v4642_v35 }
0x24de   :  { %4507 = vmatprep.subr.bf16.mxu0 %v4984_v0 }
0x252f   :  { %v3179_v63 = vpop.f32.mrb[76].mxu1 }
0x2530   :  { %v4473_v6 = vpop.f32.mrb[77].mxu1 }
0x2531   :  { %v3182_v28 = vpop.f32.mrb[78].mxu1 }
0x2532   :  { %v4474_v12 = vpop.f32.mrb[79].mxu1  ;;  %v3995_v28 = vld [vmem:[%s6022_s4] ss:$0 sm:$0xff] }
0x25a3   :  { %v3109_v31 = vpop.f32.mrb[76].mxu0 }
0x25a4   :  { %v3110_v19 = vadd.f32 %v5700_v47, %v3109_v31  ;;  %v4465_v11 = vpop.f32.mrb[77].mxu0 }
0x25a5   :  { %v3112_v1 = vpop.f32.mrb[78].mxu0 }
0x25a6   :  { %3116 = vst [vmem:[#allocation2 + $0xc] sm:$0x3] %v3110_v19  ;;  %v4466_v30 = vpop.f32.mrb[79].mxu0 }
0x25ab   :  { %v3234_v15 = vpop.f32.mrb[80].mxu0 }
0x25ac   :  { %v3235_v23 = vadd.f32 %v3234_v15, %v3179_v63  ;;  %v4481_v16 = vpop.f32.mrb[81].mxu0 }
0x25ad   :  { %v3237_v25 = vpop.f32.mrb[82].mxu0  ;;  %v3795_v8 = vld [vmem:[#allocation2 + $0xc] sm:$0x3] }
0x25ae   :  { %v3247_v17 = vadd.f32 %v5703_v45, %v3235_v23  ;;  %v4482_v20 = vpop.f32.mrb[83].mxu0  ;;  %v3803_v38 = vadd.f32 %v3795_v8, %v3787_v34 }
0x25af   :  { %v4647_v20 = vld [vmem:[#allocation9] sm:$0xff]  }
0x25b0   :  { %4759 = vtanh.f32 %v3247_v17  ;;  %3811 = vst [vmem:[#allocation15 + $0xc] sm:$0x3] %v3803_v38  ;;  %v3985_v39 = vmul.f32 -1.442695, %v3247_v17  ;;  %v3050_v38 = vsel %vm1013_vm9, %v5861_v2, %v5858_v57 }
0x25b2   :  { %4761 = vpow2.f32 %v3985_v39 }
0x25ba   :  { %v4760_v18 = vpop.eup %4759 }
0x25bb   :  { %3257 = vrot.lane.b32.xlu1 %v4760_v18, %s4972_s18 }
0x25bc   :  { %v4762_v22 = vpop.eup %4761 }
0x25bd   :  { %v3251_v36 = vadd.f32 1.0, %v4762_v22  ;;  %v4648_v22 = vld [vmem:[#allocation9 + $0x8] sm:$0xff]  }
0x25bf   :  { %4763 = vrcp.f32 %v3251_v36 }
0x25c9   :  { %v4764_v24 = vpop.eup %4763 }
0x25ca   :  { %v3255_v32 = vmul.f32 %v4764_v24, %v5915_v29 }
0x262d   :  { %v3258_v26 = vpop.permute.xlu1 %3257 }
0x262e   :  { %v3260_v27 = vmul.f32 %v4764_v24, %v3258_v26  ;;  %v4650_v26 = vld [vmem:[%s6028_s10 + $0x8] sm:$0xff]  }
0x2630   :  { %3262 = vrot.lane.b32.xlu0 %v3260_v27, %s4976_s6 }
0x26a2   :  { %v3263_v60 = vpop.permute.xlu0 %3262 }
0x26a3   :  { %v5918_v51 = vadd.f32 %v3263_v60, %v3255_v32 }
0x26a5   :  { %4765 = vtanh.f32 %v5918_v51 }
0x26af   :  { %v4766_v58 = vpop.eup %4765 }
0x26b0   :  { %3268 = vrot.lane.b32.xlu1 %v4766_v58, %s4972_s18 }
0x26b4   :  { %3351 = vrot.lane.b32.xlu1 %v3345_v59, %s4976_s6 }
0x2722   :  { %v3269_v43 = vpop.permute.xlu1 %3268 }
0x2723   :  { %v5930_v53 = vmul.f32 %v4764_v24, %v3269_v43  ;;  %v4649_v24 = vld [vmem:[%s6028_s10] sm:$0xff]  }
0x2725   :  { %v3274_v46 = vsel %vm783_vm7, %v5930_v53, 0.0  ;;  %v3272_v57 = vsel %vm783_vm7, %v5930_v53, %v5876_v3  ;;  %v4651_v3 = vld [vmem:[%s6023_s5] sm:$0xff]   ;;  %s4988_s5 = smov [#allocation15]  }
0x2726   :  { %v3352_v10 = vpop.permute.xlu1 %3351  ;;  %v3275_v49 = vpack.c.bf16 %v3274_v46, %v3274_v46  ;;  %v3566_v2 = vpack.c.bf16 %v3272_v57, %v3272_v57  ;;  %s3818_s12 = sshll.u32 %s4988_s5, 4  ;;  %s3819_s12 = int_to_ptr.vmem [resolvable:$true] %s3818_s12 }
0x2727   :  { %4496 = vmatmul.mubr.msk.bf16.vlgmr.msra.gmra.mrb[84].mxu0 %vm169_vm1, %v3352_v10  ;;  %p4944_p1 = scmp.lt.s32.totalorder %s3819_s12, %s3819_s12 }
0x2728   :  { %3281 = vrot.lane.b32.xlu0 %v3275_v49, %s4976_s6  ;;  %4511 = vmatprep.mubr.msk.bf16.mxu0 %vm4985_vm0, %v4984_v0 }
0x2729   :  { %4508 = vmatpush3.bf16.msra.mxu0 %v4649_v24 }
0x272a   :  { %4509 = vmatprep.subr.bf16.mxu0 %v4984_v0 }
0x272d   :  { %4510 = vmatpush3.bf16.msra.mxu0 %v4650_v26 }
0x272e   :  { %4523 = vmatprep.subr.bf16.mxu0 %v4984_v0 }
0x279a   :  { %v3282_v48 = vpop.permute.xlu0 %3281 }
0x279b   :  { %4488 = vmatmul.mubr.msk.bf16.vlgmr.msra.gmra.mrb[80].mxu1 %vm169_vm1, %v3282_v48 }
0x279c   :  { %4500 = vmatpush3.bf16.msra.mxu1 %v4645_v4  ;;  %4503 = vmatprep.mubr.msk.bf16.mxu1 %vm4985_vm0, %v4984_v0 }
0x279d   :  { %4501 = vmatprep.subr.bf16.mxu1 %v4984_v0 }
0x27a0   :  { %4502 = vmatpush3.bf16.msra.mxu1 %v4646_v61 }
0x27a1   :  { %4515 = vmatprep.subr.bf16.mxu1 %v4984_v0 }
0x27a3   :  { %4504 = vmatmul.mubr.msk.bf16.vlgmr.msra.gmra.mrb[84].mxu1 %vm169_vm1, %v3340_v50 }
0x27a4   :  { %4519 = vmatprep.mubr.msk.bf16.mxu1 %vm4985_vm0, %v4984_v0  ;;  %4516 = vmatpush3.bf16.msra.mxu1 %v4647_v20 }
0x27a5   :  { %4517 = vmatprep.subr.bf16.mxu1 %v4984_v0 }
0x27a8   :  { %4518 = vmatpush3.bf16.msra.mxu1 %v4648_v22 }
0x27a9   :  { %4531 = vmatprep.subr.bf16.mxu1 %v4984_v0 }
0x27fa   :  { %v3402_v54 = vpop.f32.mrb[84].mxu0 }
0x27fb   :  { %v4497_v5 = vpop.f32.mrb[85].mxu0 }
0x27fc   :  { %v3405_v9 = vpop.f32.mrb[86].mxu0  ;;  %v3788_v5 = vld [vmem:[#allocation15 + $0xe] sm:$0x3] }
0x27fd   :  { %v4498_v56 = vpop.f32.mrb[87].mxu0 }
0x286e   :  { %v3332_v21 = vpop.f32.mrb[80].mxu1 }
0x286f   :  { %3339 = vst [vmem:[#allocation15 + $0x2] sm:$0x3] %v3332_v21  ;;  %v4489_v33 = vpop.f32.mrb[81].mxu1 }
0x2870   :  { %v3335_v62 = vpop.f32.mrb[82].mxu1 }
0x2871   :  { %v4490_v40 = vpop.f32.mrb[83].mxu1 }
0x2876   :  { %v3782_v63 = vld [vmem:[#allocation15 + $0x2] sm:$0x3]  ;;  %v3457_v6 = vpop.f32.mrb[84].mxu1 }
0x2877   :  { %v3798_v12 = vadd.f32 %v3790_v13, %v3782_v63  ;;  %v3458_v31 = vadd.f32 %v3457_v6, %v3402_v54  ;;  %v4505_v19 = vpop.f32.mrb[85].mxu1 }
0x2878   :  { %v3460_v11 = vpop.f32.mrb[86].mxu1 }
0x2879   :  { %3806 = vst [vmem:[#allocation15 + $0x2] sm:$0x3] %v3798_v12  ;;  %v3470_v1 = vadd.f32 %v3995_v28, %v3458_v31  ;;  %v4506_v30 = vpop.f32.mrb[87].mxu1  ;;  %v4653_v11 = vld [vmem:[#allocation14] sm:$0xff]  }
0x287b   :  { %4767 = vtanh.f32 %v3470_v1  ;;  %v3996_v23 = vmul.f32 -1.442695, %v3470_v1  ;;  %v4654_v1 = vld [vmem:[#allocation14 + $0x8] sm:$0xff]  }
0x287d   :  { %4769 = vpow2.f32 %v3996_v23 }
0x2885   :  { %v4768_v15 = vpop.eup %4767 }
0x2886   :  { %3480 = vrot.lane.b32.xlu0 %v4768_v15, %s4972_s18 }
0x2887   :  { %v4770_v16 = vpop.eup %4769 }
0x2888   :  { %v3474_v25 = vadd.f32 1.0, %v4770_v16 }
0x288a   :  { %4771 = vrcp.f32 %v3474_v25 }
0x2894   :  { %v4772_v34 = vpop.eup %4771 }
0x2895   :  { %v3478_v18 = vmul.f32 %v4772_v34, %v3050_v38 }
0x28f8   :  { %v3481_v8 = vpop.permute.xlu0 %3480 }
0x28f9   :  { %v3483_v17 = vmul.f32 %v4772_v34, %v3481_v8 }
0x28fb   :  { %3485 = vrot.lane.b32.xlu1 %v3483_v17, %s4976_s6  ;;  %v3789_v17 = vld [vmem:[#allocation2] sm:$0x3] }
0x296d   :  { %v3486_v39 = vpop.permute.xlu1 %3485 }
0x296e   :  { %v3488_v36 = vadd.f32 %v3486_v39, %v3478_v18 }
0x2970   :  { %4773 = vtanh.f32 %v3488_v36 }
0x297a   :  { %v4774_v7 = vpop.eup %4773 }
0x297b   :  { %3491 = vrot.lane.b32.xlu0 %v4774_v7, %s4972_s18 }
0x297f   :  { %3572 = vrot.lane.b32.xlu0 %v3566_v2, %s4976_s6 }
0x29ed   :  { %v3492_v27 = vpop.permute.xlu0 %3491 }
0x29ee   :  { %v3494_v44 = vmul.f32 %v4772_v34, %v3492_v27 }
0x29f0   :  { %v3495_v32 = vsel %vm549_vm5, %v3494_v44, 0.0 }
0x29f1   :  { %v3573_v60 = vpop.permute.xlu0 %3572  ;;  %v3496_v35 = vpack.c.bf16 %v3495_v32, %v3495_v32 }
0x29f2   :  { %4520 = vmatmul.mubr.msk.bf16.vlgmr.msra.gmra.mrb[88].mxu1 %vm169_vm1, %v3573_v60 }
0x29f3   :  { %3502 = vrot.lane.b32.xlu1 %v3496_v35, %s4976_s6  ;;  %4535 = vmatprep.mubr.msk.bf16.mxu1 %vm4985_vm0, %v4984_v0 }
0x29f4   :  { %4532 = vmatpush3.bf16.msra.mxu1 %v4653_v11 }
0x29f5   :  { %4533 = vmatprep.subr.bf16.mxu1 %v4984_v0 }
0x29f8   :  { %4534 = vmatpush3.bf16.msra.mxu1 %v4654_v1 }
0x2a65   :  { %v3503_v37 = vpop.permute.xlu1 %3502 }
0x2a66   :  { %4512 = vmatmul.mubr.msk.bf16.vlgmr.msra.gmra.mrb[88].mxu0 %vm169_vm1, %v3503_v37 }
0x2a67   :  { %4524 = vmatpush3.bf16.msra.mxu0 %v4651_v3  ;;  %4527 = vmatprep.mubr.msk.bf16.mxu0 %vm4985_vm0, %v4984_v0 }
0x2a68   :  { %4525 = vmatprep.subr.bf16.mxu0 %v4984_v0 }
0x2a6b   :  { %4526 = vmatpush3.bf16.msra.mxu0 %v4652_v55 }
0x2a6e   :  { %4528 = vmatmul.mubr.msk.bf16.vlgmr.msra.gmra.mrb[92].mxu0 %vm169_vm1, %v3561_v42 }
0x2ac5   :  { %v3623_v58 = vpop.f32.mrb[88].mxu1 }
0x2ac6   :  { %v4521_v52 = vpop.f32.mrb[89].mxu1 }
0x2ac7   :  { %v3626_v59 = vpop.f32.mrb[90].mxu1 }
0x2ac8   :  { %v4522_v43 = vpop.f32.mrb[91].mxu1 }
0x2b39   :  { %v3553_v53 = vpop.f32.mrb[88].mxu0 }
0x2b3a   :  { %v3554_v46 = vadd.f32 %v5700_v47, %v3553_v53  ;;  %v4513_v10 = vpop.f32.mrb[89].mxu0 }
0x2b3b   :  { %v3556_v49 = vpop.f32.mrb[90].mxu0 }
0x2b3c   :  { %3560 = vst [vmem:[#allocation2 + $0xe] sm:$0x3] %v3554_v46  ;;  %v4514_v4 = vpop.f32.mrb[91].mxu0 }
0x2b41   :  { %v3678_v48 = vpop.f32.mrb[92].mxu0 }
0x2b42   :  { %v3679_v61 = vadd.f32 %v3678_v48, %v3623_v58  ;;  %v4529_v50 = vpop.f32.mrb[93].mxu0 }
0x2b43   :  { %v3681_v54 = vpop.f32.mrb[94].mxu0  ;;  %v3796_v9 = vld [vmem:[#allocation2 + $0xe] sm:$0x3] }
0x2b44   :  { %v3691_v56 = vadd.f32 %v5703_v45, %v3679_v61  ;;  %v4530_v21 = vpop.f32.mrb[95].mxu0  ;;  %v3804_v33 = vadd.f32 %v3796_v9, %v3788_v5  ;;  %v3273_v45 = vsel %vm783_vm7, %v5918_v51, %v5915_v29 }
0x2b46   :  { %4775 = vtanh.f32 %v3691_v56  ;;  %3812 = vst [vmem:[#allocation15 + $0xe] sm:$0x3] %v3804_v33  ;;  %v4007_v47 = vmul.f32 -1.442695, %v3691_v56 }
0x2b48   :  { %4777 = vpow2.f32 %v4007_v47 }
0x2b50   :  { %v4776_v62 = vpop.eup %4775 }
0x2b51   :  { %3701 = vrot.lane.b32.xlu1 %v4776_v62, %s4972_s18 }
0x2b52   :  { %v4778_v40 = vpop.eup %4777 }
0x2b53   :  { %v3695_v13 = vadd.f32 1.0, %v4778_v40 }
0x2b55   :  { %4779 = vrcp.f32 %v3695_v13 }
0x2b5f   :  { %v4780_v63 = vpop.eup %4779 }
0x2b60   :  { %v3699_v12 = vmul.f32 %v4780_v63, %v3273_v45 }
0x2bc3   :  { %v3702_v6 = vpop.permute.xlu1 %3701 }
0x2bc4   :  { %v3704_v28 = vmul.f32 %v4780_v63, %v3702_v6 }
0x2bc6   :  { %3706 = vrot.lane.b32.xlu0 %v3704_v28, %s4976_s6 }
0x2c38   :  { %v3707_v31 = vpop.permute.xlu0 %3706 }
0x2c39   :  { %v3709_v19 = vadd.f32 %v3707_v31, %v3699_v12 }
0x2c3b   :  { %4781 = vtanh.f32 %v3709_v19 }
0x2c45   :  { %v4782_v30 = vpop.eup %4781 }
0x2c46   :  { %3712 = vrot.lane.b32.xlu1 %v4782_v30, %s4972_s18  ;;  %s4939_s18 = scalar_lea.vmem %s3819_s12, 256 }
0x2c47   :  { %p4940_p0 = scmp.ne.s32.totalorder %s3819_s12, %s4939_s18  ;;  %p4945_p2 = scmp.lt.s32.totalorder %s4939_s18, %s4939_s18 }
0x2c49   :  { %p4946_p3 = por %p4945_p2, %p4944_p1 }
0x2c4b   :  { %p4947_p4 = pnand %p4946_p3, %p4940_p0 }
0x2cb8   :  { %v3713_v15 = vpop.permute.xlu1 %3712 }
0x2cb9   :  { %v3715_v23 = vmul.f32 %v4780_v63, %v3713_v15 }
0x2cbb   :  { %v3716_v16 = vsel %vm309_vm3, %v3715_v23, 0.0 }
0x2cbc   :  { %v3717_v14 = vpack.c.bf16 %v3716_v16, %v3716_v16 }
0x2cbe   :  { %3723 = vrot.lane.b32.xlu0 %v3717_v14, %s4976_s6 }
0x2d30   :  { %v3724_v29 = vpop.permute.xlu0 %3723 }
0x2d31   :  { %4536 = vmatmul.mubr.msk.bf16.vlgmr.msra.gmra.mrb[92].mxu1 %vm169_vm1, %v3724_v29 }
0x2e04   :  { %v3774_v51 = vpop.f32.mrb[92].mxu1 }
0x2e05   :  { %3780 = vst [vmem:[#allocation15] sm:$0x3] %v3774_v51  ;;  %v4537_v25 = vpop.f32.mrb[93].mxu1 }
0x2e06   :  { %v3777_v34 = vpop.f32.mrb[94].mxu1 }
0x2e07   :  { %v4538_v0 = vpop.f32.mrb[95].mxu1 }
0x2e0c   :  { %v3781_v8 = vld [vmem:[#allocation15] sm:$0x3] }
0x2e0d   :  { %v3797_v20 = vadd.f32 %v3789_v17, %v3781_v8 }
0x2e0f   :  { %3805 = vst [vmem:[#allocation15] sm:$0x3] %v3797_v20 }
0x2e10   :  { %4950 = shalt.err (!%p4947_p4)
}
0x2e11   :  { %s4951_s8 = scalar_lea.hbm %s6031_s13, 256 }
0x2e12   :  { %p4952_p5 = scmp.ne.s32.totalorder %s6031_s13, %s4951_s8  ;;  %p4955_p6 = scmp.lt.u32.totalorder %s4951_s8, %s6031_s13 }
0x2e14   :  { %p4957_p7 = pnand %p4955_p6, %p4952_p5 }
0x2e16   :  { %4960 = shalt.err (!%p4957_p7)
}
0x2e17   :  { %3824 = dma.vmem_to_hbm [thread:$0]  %s3819_s12, 256, %s6031_s13, [#allocation5], %s4976_s6, %s4976_s6, %s4977_s23  }
0x2e18   :  { %4969 = dma.done.wait [#allocation5], 256  }
0x2e19   :  { %4970 = vsyncadd [#allocation5], 4294967040 }
0x2e1a   :  { %3828 = vsyncpa [#allocation4], 1 }
0x2e1b   :  { %3829 = vsyncpa [#allocation7], 1 }
0x2e1c   :  { %3830 = vsyncpa [#allocation10], 1 }
0x2e1d   :  { %3831 = vsyncpa [#allocation13], 1 }
0x2e1e   :  { %3832 = vsyncpa [#allocation5], 1 }

</bundles_post_ra>
